<compile_context>
chip_gen: v7x
topology: tpu7x:2x2x1
jax: 0.10.0
libtpu: 0.0.40
codegen_flags: <defaults>
</compile_context>

<pallas_src>
import functools

import numpy as np
import jax
import jax.numpy as jnp
from jax.experimental import pallas as pl
from jax.experimental.pallas import tpu as pltpu


# ----------------------------- in-kernel helpers -----------------------------

def _mish(v):
    # mish(x) = x * tanh(softplus(x)); numerically stable softplus
    sp = jnp.maximum(v, 0.0) + jnp.log1p(jnp.exp(-jnp.abs(v)))
    return v * jnp.tanh(sp)


def _conv3(h, w_ref, b_ref, L):
    # 3-tap 1D conv (padding=1) along the horizon axis of a sample-stacked (B*L, Cin) slab.
    # Neighbour rows are produced with pltpu.roll (sublane rotate on the otherwise-idle XLU);
    # rows that would cross a sample boundary (== the zero padding) are masked to 0.
    # The three taps stay as separate dots against w_ref[k]: a single (B*L, 3*Cin) operand
    # would require an unaligned lane-concatenate, and at K = 4..32 the MXU is nowhere near
    # binding once the whole network runs in one launch.
    BL, Cin = h.shape
    pos = jax.lax.broadcasted_iota(jnp.int32, (BL, Cin), 0) % L
    h_prev = jnp.where(pos == 0, 0.0, pltpu.roll(h, shift=1, axis=0))
    h_next = jnp.where(pos == L - 1, 0.0, pltpu.roll(h, shift=BL - 1, axis=0))
    y = (jnp.dot(h_prev, w_ref[0], preferred_element_type=jnp.float32)
         + jnp.dot(h, w_ref[1], preferred_element_type=jnp.float32)
         + jnp.dot(h_next, w_ref[2], preferred_element_type=jnp.float32))
    return y + b_ref[...]


def _group_norm(h, gamma, beta, prow, pcol, eps=1e-5):
    # Segmented (per-sample, per-group) GroupNorm on the (B*L, C) slab.
    #   prow: (B*L, B*L) per-sample row-averaging matrix (1/L within a sample)
    #   pcol: (C, C)     per-group channel-averaging matrix (1/group_size within a group)
    # Both are exact precomputed constants (hoisted out of the kernel). Two-pass variance.
    mean = jnp.dot(jnp.dot(prow, h, preferred_element_type=jnp.float32), pcol,
                   preferred_element_type=jnp.float32)
    d = h - mean
    var = jnp.dot(jnp.dot(prow, d * d, preferred_element_type=jnp.float32), pcol,
                  preferred_element_type=jnp.float32)
    return d * jax.lax.rsqrt(var + eps) * gamma + beta


# ----------------------------- fused Pallas kernel ----------------------------

def _unet_fused_kernel(*refs, L, block_has_res):
    out_ref = refs[-1]
    it = iter(refs[:-1])
    nxt = lambda: next(it)

    x_ref, emb_ref, gcond_ref, prow_ref, pcol_ref = (nxt() for _ in range(5))
    sw1, sb1, sw2, sb2 = (nxt() for _ in range(4))

    prow = prow_ref[...]
    pcol = pcol_ref[...]

    # diffusion_step_encoder: Linear -> Mish -> Linear.
    # Computed on the B*L-row slab (rows of one sample carry identical embeddings), which
    # doubles as the per-row broadcast of the conditioning — still a single MXU pass.
    t_feat = jnp.dot(emb_ref[...], sw1[...], preferred_element_type=jnp.float32) + sb1[...]
    t_feat = _mish(t_feat)
    t_feat = jnp.dot(t_feat, sw2[...], preferred_element_type=jnp.float32) + sb2[...]

    # FiLM input mish(concat([t_feat, global_cond])) computed ONCE for the whole forward;
    # the concat is folded into split cond-encoder weights (wct / wcg), so no in-kernel
    # lane concatenate is needed and the mish is not recomputed per block.
    mish_t = _mish(t_feat)            # (B*L, dsed)
    mish_g = _mish(gcond_ref[...])    # (B*L, gcd)

    h = x_ref[...]                    # (B*L, Cin0)
    for has_res in block_has_res:
        w1, b1, g1, be1 = (nxt() for _ in range(4))
        wct, wcg, bc = (nxt() for _ in range(3))
        w2, b2, g2, be2 = (nxt() for _ in range(4))
        wr, br = (nxt(), nxt()) if has_res else (None, None)
        x_in = h

        # Conv1dBlock #1: conv3 -> GroupNorm -> Mish
        h = _conv3(x_in, w1, b1, L)
        h = _group_norm(h, g1[...], be1[...], prow, pcol)
        h = _mish(h)

        # FiLM conditioning: Linear(cond) -> split into (scale, bias)
        cout = h.shape[1]
        film = (jnp.dot(mish_t, wct[...], preferred_element_type=jnp.float32)
                + jnp.dot(mish_g, wcg[...], preferred_element_type=jnp.float32)
                + bc[...])                                   # (B*L, 2*cout)
        h = film[:, :cout] * h + film[:, cout:]

        # Conv1dBlock #2: conv3 -> GroupNorm -> Mish
        h = _conv3(h, w2, b2, L)
        h = _group_norm(h, g2[...], be2[...], prow, pcol)
        h = _mish(h)

        # Residual: skip the matmul when residual_conv is nn.Identity()
        if has_res:
            h = h + jnp.dot(x_in, wr[...], preferred_element_type=jnp.float32) + br[...]
        else:
            h = h + x_in

    fw, fb = nxt(), nxt()
    out_ref[...] = jnp.dot(h, fw[...], preferred_element_type=jnp.float32) + fb[...]


# ----------------------------- wrapper ----------------------------------------

def sinusoidal_pos_emb(t, dim):
    half = dim // 2
    freq = jnp.exp(jnp.arange(half, dtype=jnp.float32) * -(jnp.log(10000.0) / (half - 1)))
    arg = t.astype(jnp.float32)[:, None] * freq[None, :]
    return jnp.concatenate([jnp.sin(arg), jnp.cos(arg)], axis=-1)


@functools.partial(jax.jit, static_argnames=("dsed", "n_groups"))
def conditional_unet1d(params, sample, timestep, global_cond, *, dsed, n_groups):
    """sample: (B, horizon, input_dim) ('b h t' as in the PyTorch forward).
    Internally kept channels-last, stacked to (B*L, C) (L = horizon, C = channels),
    which matches the PyTorch 'b h t' -> 'b t h' rearrange. Returns (B, horizon, input_dim)."""
    B, L, in_dim = sample.shape
    BL = B * L
    cs = dsed // n_groups

    t = jnp.full((B,), timestep, dtype=jnp.int32)
    emb = sinusoidal_pos_emb(t, dsed)                       # (B, dsed)   glue (tiny)
    emb_bl = jnp.repeat(emb, L, axis=0)                     # (B*L, dsed) glue (tiny)
    gcond_bl = jnp.repeat(global_cond, L, axis=0)           # (B*L, gcd)  glue (tiny)

    # Exact constant averaging matrices for the segmented GroupNorm (hoisted out of kernel).
    prow = jnp.asarray(np.kron(np.eye(B), np.full((L, L), 1.0 / L)), jnp.float32)
    pcol = jnp.asarray(np.kron(np.eye(n_groups), np.full((cs, cs), 1.0 / cs)), jnp.float32)

    sp = params['step']
    inputs = [sample.reshape(BL, in_dim), emb_bl, gcond_bl, prow, pcol,
              sp['w1'], sp['b1'], sp['w2'], sp['b2']]
    block_has_res = []
    for bp in params['blocks']:
        cin, cout = bp['w1'].shape[1], bp['w1'].shape[2]
        has_res = cin != cout
        block_has_res.append(has_res)
        inputs += [bp['w1'], bp['b1'], bp['g1'], bp['be1'],
                   bp['wc'][:dsed], bp['wc'][dsed:], bp['bc'],   # split FiLM weight
                   bp['w2'], bp['b2'], bp['g2'], bp['be2']]
        if has_res:
            inputs += [bp['wr'], bp['br']]
    inputs += [params['final_w'], params['final_b']]

    kern = functools.partial(_unet_fused_kernel, L=L,
                             block_has_res=tuple(block_has_res))
    out = pl.pallas_call(
        kern,
        out_shape=jax.ShapeDtypeStruct((BL, params['final_w'].shape[1]), jnp.float32),
    )(*inputs)
    return out.reshape(B, L, -1)


# ----------------------------- parameter init ---------------------------------

def init_params(key, input_dim, dsed, global_cond_dim):
    cond_dim = dsed + global_cond_dim
    keys = jax.random.split(key, 64)
    it = iter(keys)

    def nrm(shape, scale=0.05):
        return scale * jax.random.normal(next(it), shape, dtype=jnp.float32)

    step = dict(w1=nrm((dsed, dsed * 4)), b1=nrm((1, dsed * 4)),
                w2=nrm((dsed * 4, dsed)), b2=nrm((1, dsed)))

    def block(cin, cout):
        p = dict(
            w1=nrm((3, cin, cout)), b1=nrm((1, cout)),
            g1=1.0 + nrm((1, cout)), be1=nrm((1, cout)),
            wc=nrm((cond_dim, 2 * cout)), bc=nrm((1, 2 * cout)),
            w2=nrm((3, cout, cout)), b2=nrm((1, cout)),
            g2=1.0 + nrm((1, cout)), be2=nrm((1, cout)),
        )
        if cin != cout:
            p['wr'] = nrm((cin, cout))
            p['br'] = nrm((1, cout))
        else:
            # residual_conv is nn.Identity() when in_channels == out_channels
            # (kept only for the pure-JAX reference; the Pallas path skips it structurally)
            p['wr'] = jnp.eye(cout, dtype=jnp.float32)
            p['br'] = jnp.zeros((1, cout), jnp.float32)
        return p

    blocks = [block(input_dim, dsed), block(dsed, dsed), block(dsed, dsed)]
    final_w = nrm((dsed, input_dim))
    final_b = nrm((1, input_dim))
    return dict(step=step, blocks=blocks, final_w=final_w, final_b=final_b)


# ----------------------------- pure-JAX reference ------------------------------

def _ref_forward(params, sample, timestep, global_cond, dsed, n_groups):
    def mish(v):
        return v * jnp.tanh(jax.nn.softplus(v))

    def conv3(h, w, b):                       # h (B,L,Cin), w (3,Cin,Cout)
        hp = jnp.pad(h, ((0, 0), (1, 1), (0, 0)))
        return hp[:, :-2] @ w[0] + hp[:, 1:-1] @ w[1] + hp[:, 2:] @ w[2] + b

    def gn(h, g, be):
        B, L, C = h.shape
        hg = h.reshape(B, L, n_groups, C // n_groups)
        mean = hg.mean(axis=(1, 3), keepdims=True)
        var = hg.var(axis=(1, 3), keepdims=True)
        hn = ((hg - mean) / jnp.sqrt(var + 1e-5)).reshape(B, L, C)
        return hn * g + be

    B = sample.shape[0]
    t = jnp.full((B,), timestep, jnp.int32)
    emb = sinusoidal_pos_emb(t, dsed)
    sp = params['step']
    tf = mish(emb @ sp['w1'] + sp['b1']) @ sp['w2'] + sp['b2']
    gf = jnp.concatenate([tf, global_cond], -1)
    x = sample
    for p in params['blocks']:
        cout = p['w1'].shape[2]
        h = mish(gn(conv3(x, p['w1'], p['b1']), p['g1'], p['be1']))
        e = mish(gf) @ p['wc'] + p['bc']
        scale = e[:, None, :cout]
        bias = e[:, None, cout:]
        h = scale * h + bias
        h = mish(gn(conv3(h, p['w2'], p['b2']), p['g2'], p['be2']))
        x = h + (x @ p['wr'] + p['br'])
    return x @ params['final_w'] + params['final_b']


# ----------------------------- main --------------------------------------------

if __name__ == "__main__":
    B, horizon, input_dim = 2, 16, 4
    dsed, global_cond_dim, n_groups = 32, 16, 8   # n_groups divides dsed

    key = jax.random.PRNGKey(0)
    kp, ks, kg = jax.random.split(key, 3)
    params = init_params(kp, input_dim, dsed, global_cond_dim)
    sample = jax.random.normal(ks, (B, horizon, input_dim), jnp.float32)
    global_cond = jax.random.normal(kg, (B, global_cond_dim), jnp.float32)
    timestep = 7

    out = conditional_unet1d(params, sample, timestep, global_cond,
                             dsed=dsed, n_groups=n_groups)
    out = jax.block_until_ready(out)

    ref = _ref_forward(params, sample, timestep, global_cond, dsed, n_groups)
    assert out.shape == (B, horizon, input_dim)
    err = float(jnp.max(jnp.abs(out - ref)))
    assert jnp.allclose(out, ref, atol=1e-4, rtol=1e-4), err
    print("KERNEL_OK")
</pallas_src>

<mosaic_0001>
module attributes {stable_mosaic.version = 11 : i64} {
  func.func @_unet_fused_kernel(%arg0: memref<32x4xf32, #tpu.memory_space<vmem>>, %arg1: memref<32x32xf32, #tpu.memory_space<vmem>>, %arg2: memref<32x16xf32, #tpu.memory_space<vmem>>, %arg3: memref<32x32xf32, #tpu.memory_space<vmem>>, %arg4: memref<32x32xf32, #tpu.memory_space<vmem>>, %arg5: memref<32x128xf32, #tpu.memory_space<vmem>>, %arg6: memref<1x128xf32, #tpu.memory_space<vmem>>, %arg7: memref<128x32xf32, #tpu.memory_space<vmem>>, %arg8: memref<1x32xf32, #tpu.memory_space<vmem>>, %arg9: memref<3x4x32xf32, #tpu.memory_space<vmem>>, %arg10: memref<1x32xf32, #tpu.memory_space<vmem>>, %arg11: memref<1x32xf32, #tpu.memory_space<vmem>>, %arg12: memref<1x32xf32, #tpu.memory_space<vmem>>, %arg13: memref<32x64xf32, #tpu.memory_space<vmem>>, %arg14: memref<16x64xf32, #tpu.memory_space<vmem>>, %arg15: memref<1x64xf32, #tpu.memory_space<vmem>>, %arg16: memref<3x32x32xf32, #tpu.memory_space<vmem>>, %arg17: memref<1x32xf32, #tpu.memory_space<vmem>>, %arg18: memref<1x32xf32, #tpu.memory_space<vmem>>, %arg19: memref<1x32xf32, #tpu.memory_space<vmem>>, %arg20: memref<4x32xf32, #tpu.memory_space<vmem>>, %arg21: memref<1x32xf32, #tpu.memory_space<vmem>>, %arg22: memref<3x32x32xf32, #tpu.memory_space<vmem>>, %arg23: memref<1x32xf32, #tpu.memory_space<vmem>>, %arg24: memref<1x32xf32, #tpu.memory_space<vmem>>, %arg25: memref<1x32xf32, #tpu.memory_space<vmem>>, %arg26: memref<32x64xf32, #tpu.memory_space<vmem>>, %arg27: memref<16x64xf32, #tpu.memory_space<vmem>>, %arg28: memref<1x64xf32, #tpu.memory_space<vmem>>, %arg29: memref<3x32x32xf32, #tpu.memory_space<vmem>>, %arg30: memref<1x32xf32, #tpu.memory_space<vmem>>, %arg31: memref<1x32xf32, #tpu.memory_space<vmem>>, %arg32: memref<1x32xf32, #tpu.memory_space<vmem>>, %arg33: memref<3x32x32xf32, #tpu.memory_space<vmem>>, %arg34: memref<1x32xf32, #tpu.memory_space<vmem>>, %arg35: memref<1x32xf32, #tpu.memory_space<vmem>>, %arg36: memref<1x32xf32, #tpu.memory_space<vmem>>, %arg37: memref<32x64xf32, #tpu.memory_space<vmem>>, %arg38: memref<16x64xf32, #tpu.memory_space<vmem>>, %arg39: memref<1x64xf32, #tpu.memory_space<vmem>>, %arg40: memref<3x32x32xf32, #tpu.memory_space<vmem>>, %arg41: memref<1x32xf32, #tpu.memory_space<vmem>>, %arg42: memref<1x32xf32, #tpu.memory_space<vmem>>, %arg43: memref<1x32xf32, #tpu.memory_space<vmem>>, %arg44: memref<32x4xf32, #tpu.memory_space<vmem>>, %arg45: memref<1x4xf32, #tpu.memory_space<vmem>>, %arg46: memref<32x4xf32, #tpu.memory_space<vmem>>) attributes {dimension_semantics = [], scalar_prefetch = 0 : i64, scratch_operands = 0 : i64, tpu.core_type = #tpu.core_type<tc>} {
    %c0 = arith.constant 0 : index
    %c0_0 = arith.constant 0 : index
    %0 = vector.load %arg3[%c0, %c0_0] : memref<32x32xf32, #tpu.memory_space<vmem>>, vector<32x32xf32>
    %c0_1 = arith.constant 0 : index
    %c0_2 = arith.constant 0 : index
    %1 = vector.load %arg4[%c0_1, %c0_2] : memref<32x32xf32, #tpu.memory_space<vmem>>, vector<32x32xf32>
    %c0_3 = arith.constant 0 : index
    %c0_4 = arith.constant 0 : index
    %2 = vector.load %arg1[%c0_3, %c0_4] : memref<32x32xf32, #tpu.memory_space<vmem>>, vector<32x32xf32>
    %c0_5 = arith.constant 0 : index
    %c0_6 = arith.constant 0 : index
    %3 = vector.load %arg5[%c0_5, %c0_6] : memref<32x128xf32, #tpu.memory_space<vmem>>, vector<32x128xf32>
    %cst = arith.constant dense<0.000000e+00> : vector<32x128xf32>
    %4 = tpu.matmul %2, %3, %cst {dimension_numbers = #tpu.dot_dimension_numbers<[1], [0], [0], [1], [0, 0, 1, 1], [], []>} : vector<32x32xf32>, vector<32x128xf32>, vector<32x128xf32> -> vector<32x128xf32>
    %c0_7 = arith.constant 0 : index
    %c0_8 = arith.constant 0 : index
    %5 = vector.load %arg6[%c0_7, %c0_8] : memref<1x128xf32, #tpu.memory_space<vmem>>, vector<1x128xf32>
    %6 = vector.broadcast %5 : vector<1x128xf32> to vector<32x128xf32>
    %7 = arith.addf %4, %6 : vector<32x128xf32>
    %cst_9 = arith.constant 0.000000e+00 : f32
    %8 = vector.broadcast %cst_9 : f32 to vector<32x128xf32>
    %9 = arith.maximumf %7, %8 : vector<32x128xf32>
    %10 = math.absf %7 : vector<32x128xf32>
    %cst_10 = arith.constant 0.000000e+00 : f32
    %11 = vector.broadcast %cst_10 : f32 to vector<32x128xf32>
    %12 = arith.subf %11, %10 : vector<32x128xf32>
    %13 = math.exp %12 : vector<32x128xf32>
    %14 = math.log1p %13 : vector<32x128xf32>
    %15 = arith.addf %9, %14 : vector<32x128xf32>
    %16 = math.tanh %15 : vector<32x128xf32>
    %17 = arith.mulf %7, %16 : vector<32x128xf32>
    %c0_11 = arith.constant 0 : index
    %c0_12 = arith.constant 0 : index
    %18 = vector.load %arg7[%c0_11, %c0_12] : memref<128x32xf32, #tpu.memory_space<vmem>>, vector<128x32xf32>
    %cst_13 = arith.constant dense<0.000000e+00> : vector<32x32xf32>
    %19 = tpu.matmul %17, %18, %cst_13 {dimension_numbers = #tpu.dot_dimension_numbers<[1], [0], [0], [1], [0, 0, 1, 1], [], []>} : vector<32x128xf32>, vector<128x32xf32>, vector<32x32xf32> -> vector<32x32xf32>
    %c0_14 = arith.constant 0 : index
    %c0_15 = arith.constant 0 : index
    %20 = vector.load %arg8[%c0_14, %c0_15] : memref<1x32xf32, #tpu.memory_space<vmem>>, vector<1x32xf32>
    %21 = vector.broadcast %20 : vector<1x32xf32> to vector<32x32xf32>
    %22 = arith.addf %19, %21 : vector<32x32xf32>
    %cst_16 = arith.constant 0.000000e+00 : f32
    %23 = vector.broadcast %cst_16 : f32 to vector<32x32xf32>
    %24 = arith.maximumf %22, %23 : vector<32x32xf32>
    %25 = math.absf %22 : vector<32x32xf32>
    %cst_17 = arith.constant 0.000000e+00 : f32
    %26 = vector.broadcast %cst_17 : f32 to vector<32x32xf32>
    %27 = arith.subf %26, %25 : vector<32x32xf32>
    %28 = math.exp %27 : vector<32x32xf32>
    %29 = math.log1p %28 : vector<32x32xf32>
    %30 = arith.addf %24, %29 : vector<32x32xf32>
    %31 = math.tanh %30 : vector<32x32xf32>
    %32 = arith.mulf %22, %31 : vector<32x32xf32>
    %c0_18 = arith.constant 0 : index
    %c0_19 = arith.constant 0 : index
    %33 = vector.load %arg2[%c0_18, %c0_19] : memref<32x16xf32, #tpu.memory_space<vmem>>, vector<32x16xf32>
    %cst_20 = arith.constant 0.000000e+00 : f32
    %34 = vector.broadcast %cst_20 : f32 to vector<32x16xf32>
    %35 = arith.maximumf %33, %34 : vector<32x16xf32>
    %36 = math.absf %33 : vector<32x16xf32>
    %cst_21 = arith.constant 0.000000e+00 : f32
    %37 = vector.broadcast %cst_21 : f32 to vector<32x16xf32>
    %38 = arith.subf %37, %36 : vector<32x16xf32>
    %39 = math.exp %38 : vector<32x16xf32>
    %40 = math.log1p %39 : vector<32x16xf32>
    %41 = arith.addf %35, %40 : vector<32x16xf32>
    %42 = math.tanh %41 : vector<32x16xf32>
    %43 = arith.mulf %33, %42 : vector<32x16xf32>
    %c0_22 = arith.constant 0 : index
    %c0_23 = arith.constant 0 : index
    %44 = vector.load %arg0[%c0_22, %c0_23] : memref<32x4xf32, #tpu.memory_space<vmem>>, vector<32x4xf32>
    %45 = tpu.iota {dimensions = array<i32: 0>} : vector<32x4xi32>
    %c16_i32 = arith.constant 16 : i32
    %c0_i32 = arith.constant 0 : i32
    %46 = arith.cmpi eq, %c16_i32, %c0_i32 : i32
    %c1_i32 = arith.constant 1 : i32
    %47 = arith.select %46, %c1_i32, %c16_i32 : i32
    %48 = vector.broadcast %47 : i32 to vector<32x4xi32>
    %49 = arith.remsi %45, %48 : vector<32x4xi32>
    %c0_i32_24 = arith.constant 0 : i32
    %50 = vector.broadcast %c0_i32_24 : i32 to vector<32x4xi32>
    %51 = arith.cmpi ne, %49, %50 : vector<32x4xi32>
    %c0_i32_25 = arith.constant 0 : i32
    %52 = vector.broadcast %c0_i32_25 : i32 to vector<32x4xi32>
    %53 = arith.cmpi slt, %49, %52 : vector<32x4xi32>
    %c0_i32_26 = arith.constant 0 : i32
    %54 = arith.cmpi slt, %47, %c0_i32_26 : i32
    %55 = vector.broadcast %54 : i1 to vector<32x4xi1>
    %56 = vector.broadcast %55 : vector<32x4xi1> to vector<32x4xi1>
    %57 = arith.xori %53, %56 : vector<32x4xi1>
    %58 = arith.andi %57, %51 : vector<32x4xi1>
    %59 = vector.broadcast %47 : i32 to vector<32x4xi32>
    %60 = arith.addi %49, %59 : vector<32x4xi32>
    %61 = arith.select %58, %60, %49 : vector<32x4xi1>, vector<32x4xi32>
    %c0_i32_27 = arith.constant 0 : i32
    %62 = vector.broadcast %c0_i32_27 : i32 to vector<32x4xi32>
    %63 = arith.cmpi eq, %61, %62 : vector<32x4xi32>
    %c1_i32_28 = arith.constant 1 : i32
    %64 = tpu.dynamic_rotate %44 by %c1_i32_28 dim 0 : vector<32x4xf32>, i32 -> vector<32x4xf32>
    %cst_29 = arith.constant 0.000000e+00 : f32
    %65 = vector.broadcast %cst_29 : f32 to vector<32x4xf32>
    %66 = arith.select %63, %65, %64 : vector<32x4xi1>, vector<32x4xf32>
    %c15_i32 = arith.constant 15 : i32
    %67 = vector.broadcast %c15_i32 : i32 to vector<32x4xi32>
    %68 = arith.cmpi eq, %61, %67 : vector<32x4xi32>
    %c31_i32 = arith.constant 31 : i32
    %69 = tpu.dynamic_rotate %44 by %c31_i32 dim 0 : vector<32x4xf32>, i32 -> vector<32x4xf32>
    %cst_30 = arith.constant 0.000000e+00 : f32
    %70 = vector.broadcast %cst_30 : f32 to vector<32x4xf32>
    %71 = arith.select %68, %70, %69 : vector<32x4xi1>, vector<32x4xf32>
    %c0_31 = arith.constant 0 : index
    %c0_32 = arith.constant 0 : index
    %c0_33 = arith.constant 0 : index
    %72 = vector.load %arg9[%c0_31, %c0_32, %c0_33] : memref<3x4x32xf32, #tpu.memory_space<vmem>>, vector<1x4x32xf32>
    %73 = vector.shape_cast %72 : vector<1x4x32xf32> to vector<4x32xf32>
    %cst_34 = arith.constant dense<0.000000e+00> : vector<32x32xf32>
    %74 = tpu.matmul %66, %73, %cst_34 {dimension_numbers = #tpu.dot_dimension_numbers<[1], [0], [0], [1], [0, 0, 1, 1], [], []>} : vector<32x4xf32>, vector<4x32xf32>, vector<32x32xf32> -> vector<32x32xf32>
    %c1 = arith.constant 1 : index
    %c0_35 = arith.constant 0 : index
    %c0_36 = arith.constant 0 : index
    %75 = vector.load %arg9[%c1, %c0_35, %c0_36] : memref<3x4x32xf32, #tpu.memory_space<vmem>>, vector<1x4x32xf32>
    %76 = vector.shape_cast %75 : vector<1x4x32xf32> to vector<4x32xf32>
    %cst_37 = arith.constant dense<0.000000e+00> : vector<32x32xf32>
    %77 = tpu.matmul %44, %76, %cst_37 {dimension_numbers = #tpu.dot_dimension_numbers<[1], [0], [0], [1], [0, 0, 1, 1], [], []>} : vector<32x4xf32>, vector<4x32xf32>, vector<32x32xf32> -> vector<32x32xf32>
    %78 = arith.addf %74, %77 : vector<32x32xf32>
    %c2 = arith.constant 2 : index
    %c0_38 = arith.constant 0 : index
    %c0_39 = arith.constant 0 : index
    %79 = vector.load %arg9[%c2, %c0_38, %c0_39] : memref<3x4x32xf32, #tpu.memory_space<vmem>>, vector<1x4x32xf32>
    %80 = vector.shape_cast %79 : vector<1x4x32xf32> to vector<4x32xf32>
    %cst_40 = arith.constant dense<0.000000e+00> : vector<32x32xf32>
    %81 = tpu.matmul %71, %80, %cst_40 {dimension_numbers = #tpu.dot_dimension_numbers<[1], [0], [0], [1], [0, 0, 1, 1], [], []>} : vector<32x4xf32>, vector<4x32xf32>, vector<32x32xf32> -> vector<32x32xf32>
    %82 = arith.addf %78, %81 : vector<32x32xf32>
    %c0_41 = arith.constant 0 : index
    %c0_42 = arith.constant 0 : index
    %83 = vector.load %arg10[%c0_41, %c0_42] : memref<1x32xf32, #tpu.memory_space<vmem>>, vector<1x32xf32>
    %84 = vector.broadcast %83 : vector<1x32xf32> to vector<32x32xf32>
    %85 = arith.addf %82, %84 : vector<32x32xf32>
    %c0_43 = arith.constant 0 : index
    %c0_44 = arith.constant 0 : index
    %86 = vector.load %arg11[%c0_43, %c0_44] : memref<1x32xf32, #tpu.memory_space<vmem>>, vector<1x32xf32>
    %c0_45 = arith.constant 0 : index
    %c0_46 = arith.constant 0 : index
    %87 = vector.load %arg12[%c0_45, %c0_46] : memref<1x32xf32, #tpu.memory_space<vmem>>, vector<1x32xf32>
    %cst_47 = arith.constant dense<0.000000e+00> : vector<32x32xf32>
    %88 = tpu.matmul %0, %85, %cst_47 {dimension_numbers = #tpu.dot_dimension_numbers<[1], [0], [0], [1], [0, 0, 1, 1], [], []>} : vector<32x32xf32>, vector<32x32xf32>, vector<32x32xf32> -> vector<32x32xf32>
    %cst_48 = arith.constant dense<0.000000e+00> : vector<32x32xf32>
    %89 = tpu.matmul %88, %1, %cst_48 {dimension_numbers = #tpu.dot_dimension_numbers<[1], [0], [0], [1], [0, 0, 1, 1], [], []>} : vector<32x32xf32>, vector<32x32xf32>, vector<32x32xf32> -> vector<32x32xf32>
    %90 = arith.subf %85, %89 : vector<32x32xf32>
    %91 = arith.mulf %90, %90 : vector<32x32xf32>
    %cst_49 = arith.constant dense<0.000000e+00> : vector<32x32xf32>
    %92 = tpu.matmul %0, %91, %cst_49 {dimension_numbers = #tpu.dot_dimension_numbers<[1], [0], [0], [1], [0, 0, 1, 1], [], []>} : vector<32x32xf32>, vector<32x32xf32>, vector<32x32xf32> -> vector<32x32xf32>
    %cst_50 = arith.constant dense<0.000000e+00> : vector<32x32xf32>
    %93 = tpu.matmul %92, %1, %cst_50 {dimension_numbers = #tpu.dot_dimension_numbers<[1], [0], [0], [1], [0, 0, 1, 1], [], []>} : vector<32x32xf32>, vector<32x32xf32>, vector<32x32xf32> -> vector<32x32xf32>
    %cst_51 = arith.constant 9.99999974E-6 : f32
    %94 = vector.broadcast %cst_51 : f32 to vector<32x32xf32>
    %95 = arith.addf %93, %94 : vector<32x32xf32>
    %96 = math.rsqrt %95 : vector<32x32xf32>
    %97 = arith.mulf %90, %96 : vector<32x32xf32>
    %98 = vector.broadcast %86 : vector<1x32xf32> to vector<32x32xf32>
    %99 = arith.mulf %97, %98 : vector<32x32xf32>
    %100 = vector.broadcast %87 : vector<1x32xf32> to vector<32x32xf32>
    %101 = arith.addf %99, %100 : vector<32x32xf32>
    %cst_52 = arith.constant 0.000000e+00 : f32
    %102 = vector.broadcast %cst_52 : f32 to vector<32x32xf32>
    %103 = arith.maximumf %101, %102 : vector<32x32xf32>
    %104 = math.absf %101 : vector<32x32xf32>
    %cst_53 = arith.constant 0.000000e+00 : f32
    %105 = vector.broadcast %cst_53 : f32 to vector<32x32xf32>
    %106 = arith.subf %105, %104 : vector<32x32xf32>
    %107 = math.exp %106 : vector<32x32xf32>
    %108 = math.log1p %107 : vector<32x32xf32>
    %109 = arith.addf %103, %108 : vector<32x32xf32>
    %110 = math.tanh %109 : vector<32x32xf32>
    %111 = arith.mulf %101, %110 : vector<32x32xf32>
    %c0_54 = arith.constant 0 : index
    %c0_55 = arith.constant 0 : index
    %112 = vector.load %arg13[%c0_54, %c0_55] : memref<32x64xf32, #tpu.memory_space<vmem>>, vector<32x64xf32>
    %cst_56 = arith.constant dense<0.000000e+00> : vector<32x64xf32>
    %113 = tpu.matmul %32, %112, %cst_56 {dimension_numbers = #tpu.dot_dimension_numbers<[1], [0], [0], [1], [0, 0, 1, 1], [], []>} : vector<32x32xf32>, vector<32x64xf32>, vector<32x64xf32> -> vector<32x64xf32>
    %c0_57 = arith.constant 0 : index
    %c0_58 = arith.constant 0 : index
    %114 = vector.load %arg14[%c0_57, %c0_58] : memref<16x64xf32, #tpu.memory_space<vmem>>, vector<16x64xf32>
    %cst_59 = arith.constant dense<0.000000e+00> : vector<32x64xf32>
    %115 = tpu.matmul %43, %114, %cst_59 {dimension_numbers = #tpu.dot_dimension_numbers<[1], [0], [0], [1], [0, 0, 1, 1], [], []>} : vector<32x16xf32>, vector<16x64xf32>, vector<32x64xf32> -> vector<32x64xf32>
    %116 = arith.addf %113, %115 : vector<32x64xf32>
    %c0_60 = arith.constant 0 : index
    %c0_61 = arith.constant 0 : index
    %117 = vector.load %arg15[%c0_60, %c0_61] : memref<1x64xf32, #tpu.memory_space<vmem>>, vector<1x64xf32>
    %118 = vector.broadcast %117 : vector<1x64xf32> to vector<32x64xf32>
    %119 = arith.addf %116, %118 : vector<32x64xf32>
    %120 = vector.extract_strided_slice %119 {offsets = [0, 0], sizes = [32, 32], strides = [1, 1]} : vector<32x64xf32> to vector<32x32xf32>
    %121 = arith.mulf %120, %111 : vector<32x32xf32>
    %122 = vector.extract_strided_slice %119 {offsets = [0, 32], sizes = [32, 32], strides = [1, 1]} : vector<32x64xf32> to vector<32x32xf32>
    %123 = arith.addf %121, %122 : vector<32x32xf32>
    %124 = tpu.iota {dimensions = array<i32: 0>} : vector<32x32xi32>
    %c16_i32_62 = arith.constant 16 : i32
    %c0_i32_63 = arith.constant 0 : i32
    %125 = arith.cmpi eq, %c16_i32_62, %c0_i32_63 : i32
    %c1_i32_64 = arith.constant 1 : i32
    %126 = arith.select %125, %c1_i32_64, %c16_i32_62 : i32
    %127 = vector.broadcast %126 : i32 to vector<32x32xi32>
    %128 = arith.remsi %124, %127 : vector<32x32xi32>
    %c0_i32_65 = arith.constant 0 : i32
    %129 = vector.broadcast %c0_i32_65 : i32 to vector<32x32xi32>
    %130 = arith.cmpi ne, %128, %129 : vector<32x32xi32>
    %c0_i32_66 = arith.constant 0 : i32
    %131 = vector.broadcast %c0_i32_66 : i32 to vector<32x32xi32>
    %132 = arith.cmpi slt, %128, %131 : vector<32x32xi32>
    %c0_i32_67 = arith.constant 0 : i32
    %133 = arith.cmpi slt, %126, %c0_i32_67 : i32
    %134 = vector.broadcast %133 : i1 to vector<32x32xi1>
    %135 = vector.broadcast %134 : vector<32x32xi1> to vector<32x32xi1>
    %136 = arith.xori %132, %135 : vector<32x32xi1>
    %137 = arith.andi %136, %130 : vector<32x32xi1>
    %138 = vector.broadcast %126 : i32 to vector<32x32xi32>
    %139 = arith.addi %128, %138 : vector<32x32xi32>
    %140 = arith.select %137, %139, %128 : vector<32x32xi1>, vector<32x32xi32>
    %c0_i32_68 = arith.constant 0 : i32
    %141 = vector.broadcast %c0_i32_68 : i32 to vector<32x32xi32>
    %142 = arith.cmpi eq, %140, %141 : vector<32x32xi32>
    %c1_i32_69 = arith.constant 1 : i32
    %143 = tpu.dynamic_rotate %123 by %c1_i32_69 dim 0 : vector<32x32xf32>, i32 -> vector<32x32xf32>
    %cst_70 = arith.constant 0.000000e+00 : f32
    %144 = vector.broadcast %cst_70 : f32 to vector<32x32xf32>
    %145 = arith.select %142, %144, %143 : vector<32x32xi1>, vector<32x32xf32>
    %c15_i32_71 = arith.constant 15 : i32
    %146 = vector.broadcast %c15_i32_71 : i32 to vector<32x32xi32>
    %147 = arith.cmpi eq, %140, %146 : vector<32x32xi32>
    %c31_i32_72 = arith.constant 31 : i32
    %148 = tpu.dynamic_rotate %123 by %c31_i32_72 dim 0 : vector<32x32xf32>, i32 -> vector<32x32xf32>
    %cst_73 = arith.constant 0.000000e+00 : f32
    %149 = vector.broadcast %cst_73 : f32 to vector<32x32xf32>
    %150 = arith.select %147, %149, %148 : vector<32x32xi1>, vector<32x32xf32>
    %c0_74 = arith.constant 0 : index
    %c0_75 = arith.constant 0 : index
    %c0_76 = arith.constant 0 : index
    %151 = vector.load %arg16[%c0_74, %c0_75, %c0_76] : memref<3x32x32xf32, #tpu.memory_space<vmem>>, vector<1x32x32xf32>
    %152 = vector.shape_cast %151 : vector<1x32x32xf32> to vector<32x32xf32>
    %cst_77 = arith.constant dense<0.000000e+00> : vector<32x32xf32>
    %153 = tpu.matmul %145, %152, %cst_77 {dimension_numbers = #tpu.dot_dimension_numbers<[1], [0], [0], [1], [0, 0, 1, 1], [], []>} : vector<32x32xf32>, vector<32x32xf32>, vector<32x32xf32> -> vector<32x32xf32>
    %c1_78 = arith.constant 1 : index
    %c0_79 = arith.constant 0 : index
    %c0_80 = arith.constant 0 : index
    %154 = vector.load %arg16[%c1_78, %c0_79, %c0_80] : memref<3x32x32xf32, #tpu.memory_space<vmem>>, vector<1x32x32xf32>
    %155 = vector.shape_cast %154 : vector<1x32x32xf32> to vector<32x32xf32>
    %cst_81 = arith.constant dense<0.000000e+00> : vector<32x32xf32>
    %156 = tpu.matmul %123, %155, %cst_81 {dimension_numbers = #tpu.dot_dimension_numbers<[1], [0], [0], [1], [0, 0, 1, 1], [], []>} : vector<32x32xf32>, vector<32x32xf32>, vector<32x32xf32> -> vector<32x32xf32>
    %157 = arith.addf %153, %156 : vector<32x32xf32>
    %c2_82 = arith.constant 2 : index
    %c0_83 = arith.constant 0 : index
    %c0_84 = arith.constant 0 : index
    %158 = vector.load %arg16[%c2_82, %c0_83, %c0_84] : memref<3x32x32xf32, #tpu.memory_space<vmem>>, vector<1x32x32xf32>
    %159 = vector.shape_cast %158 : vector<1x32x32xf32> to vector<32x32xf32>
    %cst_85 = arith.constant dense<0.000000e+00> : vector<32x32xf32>
    %160 = tpu.matmul %150, %159, %cst_85 {dimension_numbers = #tpu.dot_dimension_numbers<[1], [0], [0], [1], [0, 0, 1, 1], [], []>} : vector<32x32xf32>, vector<32x32xf32>, vector<32x32xf32> -> vector<32x32xf32>
    %161 = arith.addf %157, %160 : vector<32x32xf32>
    %c0_86 = arith.constant 0 : index
    %c0_87 = arith.constant 0 : index
    %162 = vector.load %arg17[%c0_86, %c0_87] : memref<1x32xf32, #tpu.memory_space<vmem>>, vector<1x32xf32>
    %163 = vector.broadcast %162 : vector<1x32xf32> to vector<32x32xf32>
    %164 = arith.addf %161, %163 : vector<32x32xf32>
    %c0_88 = arith.constant 0 : index
    %c0_89 = arith.constant 0 : index
    %165 = vector.load %arg18[%c0_88, %c0_89] : memref<1x32xf32, #tpu.memory_space<vmem>>, vector<1x32xf32>
    %c0_90 = arith.constant 0 : index
    %c0_91 = arith.constant 0 : index
    %166 = vector.load %arg19[%c0_90, %c0_91] : memref<1x32xf32, #tpu.memory_space<vmem>>, vector<1x32xf32>
    %cst_92 = arith.constant dense<0.000000e+00> : vector<32x32xf32>
    %167 = tpu.matmul %0, %164, %cst_92 {dimension_numbers = #tpu.dot_dimension_numbers<[1], [0], [0], [1], [0, 0, 1, 1], [], []>} : vector<32x32xf32>, vector<32x32xf32>, vector<32x32xf32> -> vector<32x32xf32>
    %cst_93 = arith.constant dense<0.000000e+00> : vector<32x32xf32>
    %168 = tpu.matmul %167, %1, %cst_93 {dimension_numbers = #tpu.dot_dimension_numbers<[1], [0], [0], [1], [0, 0, 1, 1], [], []>} : vector<32x32xf32>, vector<32x32xf32>, vector<32x32xf32> -> vector<32x32xf32>
    %169 = arith.subf %164, %168 : vector<32x32xf32>
    %170 = arith.mulf %169, %169 : vector<32x32xf32>
    %cst_94 = arith.constant dense<0.000000e+00> : vector<32x32xf32>
    %171 = tpu.matmul %0, %170, %cst_94 {dimension_numbers = #tpu.dot_dimension_numbers<[1], [0], [0], [1], [0, 0, 1, 1], [], []>} : vector<32x32xf32>, vector<32x32xf32>, vector<32x32xf32> -> vector<32x32xf32>
    %cst_95 = arith.constant dense<0.000000e+00> : vector<32x32xf32>
    %172 = tpu.matmul %171, %1, %cst_95 {dimension_numbers = #tpu.dot_dimension_numbers<[1], [0], [0], [1], [0, 0, 1, 1], [], []>} : vector<32x32xf32>, vector<32x32xf32>, vector<32x32xf32> -> vector<32x32xf32>
    %cst_96 = arith.constant 9.99999974E-6 : f32
    %173 = vector.broadcast %cst_96 : f32 to vector<32x32xf32>
    %174 = arith.addf %172, %173 : vector<32x32xf32>
    %175 = math.rsqrt %174 : vector<32x32xf32>
    %176 = arith.mulf %169, %175 : vector<32x32xf32>
    %177 = vector.broadcast %165 : vector<1x32xf32> to vector<32x32xf32>
    %178 = arith.mulf %176, %177 : vector<32x32xf32>
    %179 = vector.broadcast %166 : vector<1x32xf32> to vector<32x32xf32>
    %180 = arith.addf %178, %179 : vector<32x32xf32>
    %cst_97 = arith.constant 0.000000e+00 : f32
    %181 = vector.broadcast %cst_97 : f32 to vector<32x32xf32>
    %182 = arith.maximumf %180, %181 : vector<32x32xf32>
    %183 = math.absf %180 : vector<32x32xf32>
    %cst_98 = arith.constant 0.000000e+00 : f32
    %184 = vector.broadcast %cst_98 : f32 to vector<32x32xf32>
    %185 = arith.subf %184, %183 : vector<32x32xf32>
    %186 = math.exp %185 : vector<32x32xf32>
    %187 = math.log1p %186 : vector<32x32xf32>
    %188 = arith.addf %182, %187 : vector<32x32xf32>
    %189 = math.tanh %188 : vector<32x32xf32>
    %190 = arith.mulf %180, %189 : vector<32x32xf32>
    %c0_99 = arith.constant 0 : index
    %c0_100 = arith.constant 0 : index
    %191 = vector.load %arg20[%c0_99, %c0_100] : memref<4x32xf32, #tpu.memory_space<vmem>>, vector<4x32xf32>
    %cst_101 = arith.constant dense<0.000000e+00> : vector<32x32xf32>
    %192 = tpu.matmul %44, %191, %cst_101 {dimension_numbers = #tpu.dot_dimension_numbers<[1], [0], [0], [1], [0, 0, 1, 1], [], []>} : vector<32x4xf32>, vector<4x32xf32>, vector<32x32xf32> -> vector<32x32xf32>
    %193 = arith.addf %190, %192 : vector<32x32xf32>
    %c0_102 = arith.constant 0 : index
    %c0_103 = arith.constant 0 : index
    %194 = vector.load %arg21[%c0_102, %c0_103] : memref<1x32xf32, #tpu.memory_space<vmem>>, vector<1x32xf32>
    %195 = vector.broadcast %194 : vector<1x32xf32> to vector<32x32xf32>
    %196 = arith.addf %193, %195 : vector<32x32xf32>
    %197 = tpu.iota {dimensions = array<i32: 0>} : vector<32x32xi32>
    %c16_i32_104 = arith.constant 16 : i32
    %c0_i32_105 = arith.constant 0 : i32
    %198 = arith.cmpi eq, %c16_i32_104, %c0_i32_105 : i32
    %c1_i32_106 = arith.constant 1 : i32
    %199 = arith.select %198, %c1_i32_106, %c16_i32_104 : i32
    %200 = vector.broadcast %199 : i32 to vector<32x32xi32>
    %201 = arith.remsi %197, %200 : vector<32x32xi32>
    %c0_i32_107 = arith.constant 0 : i32
    %202 = vector.broadcast %c0_i32_107 : i32 to vector<32x32xi32>
    %203 = arith.cmpi ne, %201, %202 : vector<32x32xi32>
    %c0_i32_108 = arith.constant 0 : i32
    %204 = vector.broadcast %c0_i32_108 : i32 to vector<32x32xi32>
    %205 = arith.cmpi slt, %201, %204 : vector<32x32xi32>
    %c0_i32_109 = arith.constant 0 : i32
    %206 = arith.cmpi slt, %199, %c0_i32_109 : i32
    %207 = vector.broadcast %206 : i1 to vector<32x32xi1>
    %208 = vector.broadcast %207 : vector<32x32xi1> to vector<32x32xi1>
    %209 = arith.xori %205, %208 : vector<32x32xi1>
    %210 = arith.andi %209, %203 : vector<32x32xi1>
    %211 = vector.broadcast %199 : i32 to vector<32x32xi32>
    %212 = arith.addi %201, %211 : vector<32x32xi32>
    %213 = arith.select %210, %212, %201 : vector<32x32xi1>, vector<32x32xi32>
    %c0_i32_110 = arith.constant 0 : i32
    %214 = vector.broadcast %c0_i32_110 : i32 to vector<32x32xi32>
    %215 = arith.cmpi eq, %213, %214 : vector<32x32xi32>
    %c1_i32_111 = arith.constant 1 : i32
    %216 = tpu.dynamic_rotate %196 by %c1_i32_111 dim 0 : vector<32x32xf32>, i32 -> vector<32x32xf32>
    %cst_112 = arith.constant 0.000000e+00 : f32
    %217 = vector.broadcast %cst_112 : f32 to vector<32x32xf32>
    %218 = arith.select %215, %217, %216 : vector<32x32xi1>, vector<32x32xf32>
    %c15_i32_113 = arith.constant 15 : i32
    %219 = vector.broadcast %c15_i32_113 : i32 to vector<32x32xi32>
    %220 = arith.cmpi eq, %213, %219 : vector<32x32xi32>
    %c31_i32_114 = arith.constant 31 : i32
    %221 = tpu.dynamic_rotate %196 by %c31_i32_114 dim 0 : vector<32x32xf32>, i32 -> vector<32x32xf32>
    %cst_115 = arith.constant 0.000000e+00 : f32
    %222 = vector.broadcast %cst_115 : f32 to vector<32x32xf32>
    %223 = arith.select %220, %222, %221 : vector<32x32xi1>, vector<32x32xf32>
    %c0_116 = arith.constant 0 : index
    %c0_117 = arith.constant 0 : index
    %c0_118 = arith.constant 0 : index
    %224 = vector.load %arg22[%c0_116, %c0_117, %c0_118] : memref<3x32x32xf32, #tpu.memory_space<vmem>>, vector<1x32x32xf32>
    %225 = vector.shape_cast %224 : vector<1x32x32xf32> to vector<32x32xf32>
    %cst_119 = arith.constant dense<0.000000e+00> : vector<32x32xf32>
    %226 = tpu.matmul %218, %225, %cst_119 {dimension_numbers = #tpu.dot_dimension_numbers<[1], [0], [0], [1], [0, 0, 1, 1], [], []>} : vector<32x32xf32>, vector<32x32xf32>, vector<32x32xf32> -> vector<32x32xf32>
    %c1_120 = arith.constant 1 : index
    %c0_121 = arith.constant 0 : index
    %c0_122 = arith.constant 0 : index
    %227 = vector.load %arg22[%c1_120, %c0_121, %c0_122] : memref<3x32x32xf32, #tpu.memory_space<vmem>>, vector<1x32x32xf32>
    %228 = vector.shape_cast %227 : vector<1x32x32xf32> to vector<32x32xf32>
    %cst_123 = arith.constant dense<0.000000e+00> : vector<32x32xf32>
    %229 = tpu.matmul %196, %228, %cst_123 {dimension_numbers = #tpu.dot_dimension_numbers<[1], [0], [0], [1], [0, 0, 1, 1], [], []>} : vector<32x32xf32>, vector<32x32xf32>, vector<32x32xf32> -> vector<32x32xf32>
    %230 = arith.addf %226, %229 : vector<32x32xf32>
    %c2_124 = arith.constant 2 : index
    %c0_125 = arith.constant 0 : index
    %c0_126 = arith.constant 0 : index
    %231 = vector.load %arg22[%c2_124, %c0_125, %c0_126] : memref<3x32x32xf32, #tpu.memory_space<vmem>>, vector<1x32x32xf32>
    %232 = vector.shape_cast %231 : vector<1x32x32xf32> to vector<32x32xf32>
    %cst_127 = arith.constant dense<0.000000e+00> : vector<32x32xf32>
    %233 = tpu.matmul %223, %232, %cst_127 {dimension_numbers = #tpu.dot_dimension_numbers<[1], [0], [0], [1], [0, 0, 1, 1], [], []>} : vector<32x32xf32>, vector<32x32xf32>, vector<32x32xf32> -> vector<32x32xf32>
    %234 = arith.addf %230, %233 : vector<32x32xf32>
    %c0_128 = arith.constant 0 : index
    %c0_129 = arith.constant 0 : index
    %235 = vector.load %arg23[%c0_128, %c0_129] : memref<1x32xf32, #tpu.memory_space<vmem>>, vector<1x32xf32>
    %236 = vector.broadcast %235 : vector<1x32xf32> to vector<32x32xf32>
    %237 = arith.addf %234, %236 : vector<32x32xf32>
    %c0_130 = arith.constant 0 : index
    %c0_131 = arith.constant 0 : index
    %238 = vector.load %arg24[%c0_130, %c0_131] : memref<1x32xf32, #tpu.memory_space<vmem>>, vector<1x32xf32>
    %c0_132 = arith.constant 0 : index
    %c0_133 = arith.constant 0 : index
    %239 = vector.load %arg25[%c0_132, %c0_133] : memref<1x32xf32, #tpu.memory_space<vmem>>, vector<1x32xf32>
    %cst_134 = arith.constant dense<0.000000e+00> : vector<32x32xf32>
    %240 = tpu.matmul %0, %237, %cst_134 {dimension_numbers = #tpu.dot_dimension_numbers<[1], [0], [0], [1], [0, 0, 1, 1], [], []>} : vector<32x32xf32>, vector<32x32xf32>, vector<32x32xf32> -> vector<32x32xf32>
    %cst_135 = arith.constant dense<0.000000e+00> : vector<32x32xf32>
    %241 = tpu.matmul %240, %1, %cst_135 {dimension_numbers = #tpu.dot_dimension_numbers<[1], [0], [0], [1], [0, 0, 1, 1], [], []>} : vector<32x32xf32>, vector<32x32xf32>, vector<32x32xf32> -> vector<32x32xf32>
    %242 = arith.subf %237, %241 : vector<32x32xf32>
    %243 = arith.mulf %242, %242 : vector<32x32xf32>
    %cst_136 = arith.constant dense<0.000000e+00> : vector<32x32xf32>
    %244 = tpu.matmul %0, %243, %cst_136 {dimension_numbers = #tpu.dot_dimension_numbers<[1], [0], [0], [1], [0, 0, 1, 1], [], []>} : vector<32x32xf32>, vector<32x32xf32>, vector<32x32xf32> -> vector<32x32xf32>
    %cst_137 = arith.constant dense<0.000000e+00> : vector<32x32xf32>
    %245 = tpu.matmul %244, %1, %cst_137 {dimension_numbers = #tpu.dot_dimension_numbers<[1], [0], [0], [1], [0, 0, 1, 1], [], []>} : vector<32x32xf32>, vector<32x32xf32>, vector<32x32xf32> -> vector<32x32xf32>
    %cst_138 = arith.constant 9.99999974E-6 : f32
    %246 = vector.broadcast %cst_138 : f32 to vector<32x32xf32>
    %247 = arith.addf %245, %246 : vector<32x32xf32>
    %248 = math.rsqrt %247 : vector<32x32xf32>
    %249 = arith.mulf %242, %248 : vector<32x32xf32>
    %250 = vector.broadcast %238 : vector<1x32xf32> to vector<32x32xf32>
    %251 = arith.mulf %249, %250 : vector<32x32xf32>
    %252 = vector.broadcast %239 : vector<1x32xf32> to vector<32x32xf32>
    %253 = arith.addf %251, %252 : vector<32x32xf32>
    %cst_139 = arith.constant 0.000000e+00 : f32
    %254 = vector.broadcast %cst_139 : f32 to vector<32x32xf32>
    %255 = arith.maximumf %253, %254 : vector<32x32xf32>
    %256 = math.absf %253 : vector<32x32xf32>
    %cst_140 = arith.constant 0.000000e+00 : f32
    %257 = vector.broadcast %cst_140 : f32 to vector<32x32xf32>
    %258 = arith.subf %257, %256 : vector<32x32xf32>
    %259 = math.exp %258 : vector<32x32xf32>
    %260 = math.log1p %259 : vector<32x32xf32>
    %261 = arith.addf %255, %260 : vector<32x32xf32>
    %262 = math.tanh %261 : vector<32x32xf32>
    %263 = arith.mulf %253, %262 : vector<32x32xf32>
    %c0_141 = arith.constant 0 : index
    %c0_142 = arith.constant 0 : index
    %264 = vector.load %arg26[%c0_141, %c0_142] : memref<32x64xf32, #tpu.memory_space<vmem>>, vector<32x64xf32>
    %cst_143 = arith.constant dense<0.000000e+00> : vector<32x64xf32>
    %265 = tpu.matmul %32, %264, %cst_143 {dimension_numbers = #tpu.dot_dimension_numbers<[1], [0], [0], [1], [0, 0, 1, 1], [], []>} : vector<32x32xf32>, vector<32x64xf32>, vector<32x64xf32> -> vector<32x64xf32>
    %c0_144 = arith.constant 0 : index
    %c0_145 = arith.constant 0 : index
    %266 = vector.load %arg27[%c0_144, %c0_145] : memref<16x64xf32, #tpu.memory_space<vmem>>, vector<16x64xf32>
    %cst_146 = arith.constant dense<0.000000e+00> : vector<32x64xf32>
    %267 = tpu.matmul %43, %266, %cst_146 {dimension_numbers = #tpu.dot_dimension_numbers<[1], [0], [0], [1], [0, 0, 1, 1], [], []>} : vector<32x16xf32>, vector<16x64xf32>, vector<32x64xf32> -> vector<32x64xf32>
    %268 = arith.addf %265, %267 : vector<32x64xf32>
    %c0_147 = arith.constant 0 : index
    %c0_148 = arith.constant 0 : index
    %269 = vector.load %arg28[%c0_147, %c0_148] : memref<1x64xf32, #tpu.memory_space<vmem>>, vector<1x64xf32>
    %270 = vector.broadcast %269 : vector<1x64xf32> to vector<32x64xf32>
    %271 = arith.addf %268, %270 : vector<32x64xf32>
    %272 = vector.extract_strided_slice %271 {offsets = [0, 0], sizes = [32, 32], strides = [1, 1]} : vector<32x64xf32> to vector<32x32xf32>
    %273 = arith.mulf %272, %263 : vector<32x32xf32>
    %274 = vector.extract_strided_slice %271 {offsets = [0, 32], sizes = [32, 32], strides = [1, 1]} : vector<32x64xf32> to vector<32x32xf32>
    %275 = arith.addf %273, %274 : vector<32x32xf32>
    %276 = tpu.iota {dimensions = array<i32: 0>} : vector<32x32xi32>
    %c16_i32_149 = arith.constant 16 : i32
    %c0_i32_150 = arith.constant 0 : i32
    %277 = arith.cmpi eq, %c16_i32_149, %c0_i32_150 : i32
    %c1_i32_151 = arith.constant 1 : i32
    %278 = arith.select %277, %c1_i32_151, %c16_i32_149 : i32
    %279 = vector.broadcast %278 : i32 to vector<32x32xi32>
    %280 = arith.remsi %276, %279 : vector<32x32xi32>
    %c0_i32_152 = arith.constant 0 : i32
    %281 = vector.broadcast %c0_i32_152 : i32 to vector<32x32xi32>
    %282 = arith.cmpi ne, %280, %281 : vector<32x32xi32>
    %c0_i32_153 = arith.constant 0 : i32
    %283 = vector.broadcast %c0_i32_153 : i32 to vector<32x32xi32>
    %284 = arith.cmpi slt, %280, %283 : vector<32x32xi32>
    %c0_i32_154 = arith.constant 0 : i32
    %285 = arith.cmpi slt, %278, %c0_i32_154 : i32
    %286 = vector.broadcast %285 : i1 to vector<32x32xi1>
    %287 = vector.broadcast %286 : vector<32x32xi1> to vector<32x32xi1>
    %288 = arith.xori %284, %287 : vector<32x32xi1>
    %289 = arith.andi %288, %282 : vector<32x32xi1>
    %290 = vector.broadcast %278 : i32 to vector<32x32xi32>
    %291 = arith.addi %280, %290 : vector<32x32xi32>
    %292 = arith.select %289, %291, %280 : vector<32x32xi1>, vector<32x32xi32>
    %c0_i32_155 = arith.constant 0 : i32
    %293 = vector.broadcast %c0_i32_155 : i32 to vector<32x32xi32>
    %294 = arith.cmpi eq, %292, %293 : vector<32x32xi32>
    %c1_i32_156 = arith.constant 1 : i32
    %295 = tpu.dynamic_rotate %275 by %c1_i32_156 dim 0 : vector<32x32xf32>, i32 -> vector<32x32xf32>
    %cst_157 = arith.constant 0.000000e+00 : f32
    %296 = vector.broadcast %cst_157 : f32 to vector<32x32xf32>
    %297 = arith.select %294, %296, %295 : vector<32x32xi1>, vector<32x32xf32>
    %c15_i32_158 = arith.constant 15 : i32
    %298 = vector.broadcast %c15_i32_158 : i32 to vector<32x32xi32>
    %299 = arith.cmpi eq, %292, %298 : vector<32x32xi32>
    %c31_i32_159 = arith.constant 31 : i32
    %300 = tpu.dynamic_rotate %275 by %c31_i32_159 dim 0 : vector<32x32xf32>, i32 -> vector<32x32xf32>
    %cst_160 = arith.constant 0.000000e+00 : f32
    %301 = vector.broadcast %cst_160 : f32 to vector<32x32xf32>
    %302 = arith.select %299, %301, %300 : vector<32x32xi1>, vector<32x32xf32>
    %c0_161 = arith.constant 0 : index
    %c0_162 = arith.constant 0 : index
    %c0_163 = arith.constant 0 : index
    %303 = vector.load %arg29[%c0_161, %c0_162, %c0_163] : memref<3x32x32xf32, #tpu.memory_space<vmem>>, vector<1x32x32xf32>
    %304 = vector.shape_cast %303 : vector<1x32x32xf32> to vector<32x32xf32>
    %cst_164 = arith.constant dense<0.000000e+00> : vector<32x32xf32>
    %305 = tpu.matmul %297, %304, %cst_164 {dimension_numbers = #tpu.dot_dimension_numbers<[1], [0], [0], [1], [0, 0, 1, 1], [], []>} : vector<32x32xf32>, vector<32x32xf32>, vector<32x32xf32> -> vector<32x32xf32>
    %c1_165 = arith.constant 1 : index
    %c0_166 = arith.constant 0 : index
    %c0_167 = arith.constant 0 : index
    %306 = vector.load %arg29[%c1_165, %c0_166, %c0_167] : memref<3x32x32xf32, #tpu.memory_space<vmem>>, vector<1x32x32xf32>
    %307 = vector.shape_cast %306 : vector<1x32x32xf32> to vector<32x32xf32>
    %cst_168 = arith.constant dense<0.000000e+00> : vector<32x32xf32>
    %308 = tpu.matmul %275, %307, %cst_168 {dimension_numbers = #tpu.dot_dimension_numbers<[1], [0], [0], [1], [0, 0, 1, 1], [], []>} : vector<32x32xf32>, vector<32x32xf32>, vector<32x32xf32> -> vector<32x32xf32>
    %309 = arith.addf %305, %308 : vector<32x32xf32>
    %c2_169 = arith.constant 2 : index
    %c0_170 = arith.constant 0 : index
    %c0_171 = arith.constant 0 : index
    %310 = vector.load %arg29[%c2_169, %c0_170, %c0_171] : memref<3x32x32xf32, #tpu.memory_space<vmem>>, vector<1x32x32xf32>
    %311 = vector.shape_cast %310 : vector<1x32x32xf32> to vector<32x32xf32>
    %cst_172 = arith.constant dense<0.000000e+00> : vector<32x32xf32>
    %312 = tpu.matmul %302, %311, %cst_172 {dimension_numbers = #tpu.dot_dimension_numbers<[1], [0], [0], [1], [0, 0, 1, 1], [], []>} : vector<32x32xf32>, vector<32x32xf32>, vector<32x32xf32> -> vector<32x32xf32>
    %313 = arith.addf %309, %312 : vector<32x32xf32>
    %c0_173 = arith.constant 0 : index
    %c0_174 = arith.constant 0 : index
    %314 = vector.load %arg30[%c0_173, %c0_174] : memref<1x32xf32, #tpu.memory_space<vmem>>, vector<1x32xf32>
    %315 = vector.broadcast %314 : vector<1x32xf32> to vector<32x32xf32>
    %316 = arith.addf %313, %315 : vector<32x32xf32>
    %c0_175 = arith.constant 0 : index
    %c0_176 = arith.constant 0 : index
    %317 = vector.load %arg31[%c0_175, %c0_176] : memref<1x32xf32, #tpu.memory_space<vmem>>, vector<1x32xf32>
    %c0_177 = arith.constant 0 : index
    %c0_178 = arith.constant 0 : index
    %318 = vector.load %arg32[%c0_177, %c0_178] : memref<1x32xf32, #tpu.memory_space<vmem>>, vector<1x32xf32>
    %cst_179 = arith.constant dense<0.000000e+00> : vector<32x32xf32>
    %319 = tpu.matmul %0, %316, %cst_179 {dimension_numbers = #tpu.dot_dimension_numbers<[1], [0], [0], [1], [0, 0, 1, 1], [], []>} : vector<32x32xf32>, vector<32x32xf32>, vector<32x32xf32> -> vector<32x32xf32>
    %cst_180 = arith.constant dense<0.000000e+00> : vector<32x32xf32>
    %320 = tpu.matmul %319, %1, %cst_180 {dimension_numbers = #tpu.dot_dimension_numbers<[1], [0], [0], [1], [0, 0, 1, 1], [], []>} : vector<32x32xf32>, vector<32x32xf32>, vector<32x32xf32> -> vector<32x32xf32>
    %321 = arith.subf %316, %320 : vector<32x32xf32>
    %322 = arith.mulf %321, %321 : vector<32x32xf32>
    %cst_181 = arith.constant dense<0.000000e+00> : vector<32x32xf32>
    %323 = tpu.matmul %0, %322, %cst_181 {dimension_numbers = #tpu.dot_dimension_numbers<[1], [0], [0], [1], [0, 0, 1, 1], [], []>} : vector<32x32xf32>, vector<32x32xf32>, vector<32x32xf32> -> vector<32x32xf32>
    %cst_182 = arith.constant dense<0.000000e+00> : vector<32x32xf32>
    %324 = tpu.matmul %323, %1, %cst_182 {dimension_numbers = #tpu.dot_dimension_numbers<[1], [0], [0], [1], [0, 0, 1, 1], [], []>} : vector<32x32xf32>, vector<32x32xf32>, vector<32x32xf32> -> vector<32x32xf32>
    %cst_183 = arith.constant 9.99999974E-6 : f32
    %325 = vector.broadcast %cst_183 : f32 to vector<32x32xf32>
    %326 = arith.addf %324, %325 : vector<32x32xf32>
    %327 = math.rsqrt %326 : vector<32x32xf32>
    %328 = arith.mulf %321, %327 : vector<32x32xf32>
    %329 = vector.broadcast %317 : vector<1x32xf32> to vector<32x32xf32>
    %330 = arith.mulf %328, %329 : vector<32x32xf32>
    %331 = vector.broadcast %318 : vector<1x32xf32> to vector<32x32xf32>
    %332 = arith.addf %330, %331 : vector<32x32xf32>
    %cst_184 = arith.constant 0.000000e+00 : f32
    %333 = vector.broadcast %cst_184 : f32 to vector<32x32xf32>
    %334 = arith.maximumf %332, %333 : vector<32x32xf32>
    %335 = math.absf %332 : vector<32x32xf32>
    %cst_185 = arith.constant 0.000000e+00 : f32
    %336 = vector.broadcast %cst_185 : f32 to vector<32x32xf32>
    %337 = arith.subf %336, %335 : vector<32x32xf32>
    %338 = math.exp %337 : vector<32x32xf32>
    %339 = math.log1p %338 : vector<32x32xf32>
    %340 = arith.addf %334, %339 : vector<32x32xf32>
    %341 = math.tanh %340 : vector<32x32xf32>
    %342 = arith.mulf %332, %341 : vector<32x32xf32>
    %343 = arith.addf %342, %196 : vector<32x32xf32>
    %344 = tpu.iota {dimensions = array<i32: 0>} : vector<32x32xi32>
    %c16_i32_186 = arith.constant 16 : i32
    %c0_i32_187 = arith.constant 0 : i32
    %345 = arith.cmpi eq, %c16_i32_186, %c0_i32_187 : i32
    %c1_i32_188 = arith.constant 1 : i32
    %346 = arith.select %345, %c1_i32_188, %c16_i32_186 : i32
    %347 = vector.broadcast %346 : i32 to vector<32x32xi32>
    %348 = arith.remsi %344, %347 : vector<32x32xi32>
    %c0_i32_189 = arith.constant 0 : i32
    %349 = vector.broadcast %c0_i32_189 : i32 to vector<32x32xi32>
    %350 = arith.cmpi ne, %348, %349 : vector<32x32xi32>
    %c0_i32_190 = arith.constant 0 : i32
    %351 = vector.broadcast %c0_i32_190 : i32 to vector<32x32xi32>
    %352 = arith.cmpi slt, %348, %351 : vector<32x32xi32>
    %c0_i32_191 = arith.constant 0 : i32
    %353 = arith.cmpi slt, %346, %c0_i32_191 : i32
    %354 = vector.broadcast %353 : i1 to vector<32x32xi1>
    %355 = vector.broadcast %354 : vector<32x32xi1> to vector<32x32xi1>
    %356 = arith.xori %352, %355 : vector<32x32xi1>
    %357 = arith.andi %356, %350 : vector<32x32xi1>
    %358 = vector.broadcast %346 : i32 to vector<32x32xi32>
    %359 = arith.addi %348, %358 : vector<32x32xi32>
    %360 = arith.select %357, %359, %348 : vector<32x32xi1>, vector<32x32xi32>
    %c0_i32_192 = arith.constant 0 : i32
    %361 = vector.broadcast %c0_i32_192 : i32 to vector<32x32xi32>
    %362 = arith.cmpi eq, %360, %361 : vector<32x32xi32>
    %c1_i32_193 = arith.constant 1 : i32
    %363 = tpu.dynamic_rotate %343 by %c1_i32_193 dim 0 : vector<32x32xf32>, i32 -> vector<32x32xf32>
    %cst_194 = arith.constant 0.000000e+00 : f32
    %364 = vector.broadcast %cst_194 : f32 to vector<32x32xf32>
    %365 = arith.select %362, %364, %363 : vector<32x32xi1>, vector<32x32xf32>
    %c15_i32_195 = arith.constant 15 : i32
    %366 = vector.broadcast %c15_i32_195 : i32 to vector<32x32xi32>
    %367 = arith.cmpi eq, %360, %366 : vector<32x32xi32>
    %c31_i32_196 = arith.constant 31 : i32
    %368 = tpu.dynamic_rotate %343 by %c31_i32_196 dim 0 : vector<32x32xf32>, i32 -> vector<32x32xf32>
    %cst_197 = arith.constant 0.000000e+00 : f32
    %369 = vector.broadcast %cst_197 : f32 to vector<32x32xf32>
    %370 = arith.select %367, %369, %368 : vector<32x32xi1>, vector<32x32xf32>
    %c0_198 = arith.constant 0 : index
    %c0_199 = arith.constant 0 : index
    %c0_200 = arith.constant 0 : index
    %371 = vector.load %arg33[%c0_198, %c0_199, %c0_200] : memref<3x32x32xf32, #tpu.memory_space<vmem>>, vector<1x32x32xf32>
    %372 = vector.shape_cast %371 : vector<1x32x32xf32> to vector<32x32xf32>
    %cst_201 = arith.constant dense<0.000000e+00> : vector<32x32xf32>
    %373 = tpu.matmul %365, %372, %cst_201 {dimension_numbers = #tpu.dot_dimension_numbers<[1], [0], [0], [1], [0, 0, 1, 1], [], []>} : vector<32x32xf32>, vector<32x32xf32>, vector<32x32xf32> -> vector<32x32xf32>
    %c1_202 = arith.constant 1 : index
    %c0_203 = arith.constant 0 : index
    %c0_204 = arith.constant 0 : index
    %374 = vector.load %arg33[%c1_202, %c0_203, %c0_204] : memref<3x32x32xf32, #tpu.memory_space<vmem>>, vector<1x32x32xf32>
    %375 = vector.shape_cast %374 : vector<1x32x32xf32> to vector<32x32xf32>
    %cst_205 = arith.constant dense<0.000000e+00> : vector<32x32xf32>
    %376 = tpu.matmul %343, %375, %cst_205 {dimension_numbers = #tpu.dot_dimension_numbers<[1], [0], [0], [1], [0, 0, 1, 1], [], []>} : vector<32x32xf32>, vector<32x32xf32>, vector<32x32xf32> -> vector<32x32xf32>
    %377 = arith.addf %373, %376 : vector<32x32xf32>
    %c2_206 = arith.constant 2 : index
    %c0_207 = arith.constant 0 : index
    %c0_208 = arith.constant 0 : index
    %378 = vector.load %arg33[%c2_206, %c0_207, %c0_208] : memref<3x32x32xf32, #tpu.memory_space<vmem>>, vector<1x32x32xf32>
    %379 = vector.shape_cast %378 : vector<1x32x32xf32> to vector<32x32xf32>
    %cst_209 = arith.constant dense<0.000000e+00> : vector<32x32xf32>
    %380 = tpu.matmul %370, %379, %cst_209 {dimension_numbers = #tpu.dot_dimension_numbers<[1], [0], [0], [1], [0, 0, 1, 1], [], []>} : vector<32x32xf32>, vector<32x32xf32>, vector<32x32xf32> -> vector<32x32xf32>
    %381 = arith.addf %377, %380 : vector<32x32xf32>
    %c0_210 = arith.constant 0 : index
    %c0_211 = arith.constant 0 : index
    %382 = vector.load %arg34[%c0_210, %c0_211] : memref<1x32xf32, #tpu.memory_space<vmem>>, vector<1x32xf32>
    %383 = vector.broadcast %382 : vector<1x32xf32> to vector<32x32xf32>
    %384 = arith.addf %381, %383 : vector<32x32xf32>
    %c0_212 = arith.constant 0 : index
    %c0_213 = arith.constant 0 : index
    %385 = vector.load %arg35[%c0_212, %c0_213] : memref<1x32xf32, #tpu.memory_space<vmem>>, vector<1x32xf32>
    %c0_214 = arith.constant 0 : index
    %c0_215 = arith.constant 0 : index
    %386 = vector.load %arg36[%c0_214, %c0_215] : memref<1x32xf32, #tpu.memory_space<vmem>>, vector<1x32xf32>
    %cst_216 = arith.constant dense<0.000000e+00> : vector<32x32xf32>
    %387 = tpu.matmul %0, %384, %cst_216 {dimension_numbers = #tpu.dot_dimension_numbers<[1], [0], [0], [1], [0, 0, 1, 1], [], []>} : vector<32x32xf32>, vector<32x32xf32>, vector<32x32xf32> -> vector<32x32xf32>
    %cst_217 = arith.constant dense<0.000000e+00> : vector<32x32xf32>
    %388 = tpu.matmul %387, %1, %cst_217 {dimension_numbers = #tpu.dot_dimension_numbers<[1], [0], [0], [1], [0, 0, 1, 1], [], []>} : vector<32x32xf32>, vector<32x32xf32>, vector<32x32xf32> -> vector<32x32xf32>
    %389 = arith.subf %384, %388 : vector<32x32xf32>
    %390 = arith.mulf %389, %389 : vector<32x32xf32>
    %cst_218 = arith.constant dense<0.000000e+00> : vector<32x32xf32>
    %391 = tpu.matmul %0, %390, %cst_218 {dimension_numbers = #tpu.dot_dimension_numbers<[1], [0], [0], [1], [0, 0, 1, 1], [], []>} : vector<32x32xf32>, vector<32x32xf32>, vector<32x32xf32> -> vector<32x32xf32>
    %cst_219 = arith.constant dense<0.000000e+00> : vector<32x32xf32>
    %392 = tpu.matmul %391, %1, %cst_219 {dimension_numbers = #tpu.dot_dimension_numbers<[1], [0], [0], [1], [0, 0, 1, 1], [], []>} : vector<32x32xf32>, vector<32x32xf32>, vector<32x32xf32> -> vector<32x32xf32>
    %cst_220 = arith.constant 9.99999974E-6 : f32
    %393 = vector.broadcast %cst_220 : f32 to vector<32x32xf32>
    %394 = arith.addf %392, %393 : vector<32x32xf32>
    %395 = math.rsqrt %394 : vector<32x32xf32>
    %396 = arith.mulf %389, %395 : vector<32x32xf32>
    %397 = vector.broadcast %385 : vector<1x32xf32> to vector<32x32xf32>
    %398 = arith.mulf %396, %397 : vector<32x32xf32>
    %399 = vector.broadcast %386 : vector<1x32xf32> to vector<32x32xf32>
    %400 = arith.addf %398, %399 : vector<32x32xf32>
    %cst_221 = arith.constant 0.000000e+00 : f32
    %401 = vector.broadcast %cst_221 : f32 to vector<32x32xf32>
    %402 = arith.maximumf %400, %401 : vector<32x32xf32>
    %403 = math.absf %400 : vector<32x32xf32>
    %cst_222 = arith.constant 0.000000e+00 : f32
    %404 = vector.broadcast %cst_222 : f32 to vector<32x32xf32>
    %405 = arith.subf %404, %403 : vector<32x32xf32>
    %406 = math.exp %405 : vector<32x32xf32>
    %407 = math.log1p %406 : vector<32x32xf32>
    %408 = arith.addf %402, %407 : vector<32x32xf32>
    %409 = math.tanh %408 : vector<32x32xf32>
    %410 = arith.mulf %400, %409 : vector<32x32xf32>
    %c0_223 = arith.constant 0 : index
    %c0_224 = arith.constant 0 : index
    %411 = vector.load %arg37[%c0_223, %c0_224] : memref<32x64xf32, #tpu.memory_space<vmem>>, vector<32x64xf32>
    %cst_225 = arith.constant dense<0.000000e+00> : vector<32x64xf32>
    %412 = tpu.matmul %32, %411, %cst_225 {dimension_numbers = #tpu.dot_dimension_numbers<[1], [0], [0], [1], [0, 0, 1, 1], [], []>} : vector<32x32xf32>, vector<32x64xf32>, vector<32x64xf32> -> vector<32x64xf32>
    %c0_226 = arith.constant 0 : index
    %c0_227 = arith.constant 0 : index
    %413 = vector.load %arg38[%c0_226, %c0_227] : memref<16x64xf32, #tpu.memory_space<vmem>>, vector<16x64xf32>
    %cst_228 = arith.constant dense<0.000000e+00> : vector<32x64xf32>
    %414 = tpu.matmul %43, %413, %cst_228 {dimension_numbers = #tpu.dot_dimension_numbers<[1], [0], [0], [1], [0, 0, 1, 1], [], []>} : vector<32x16xf32>, vector<16x64xf32>, vector<32x64xf32> -> vector<32x64xf32>
    %415 = arith.addf %412, %414 : vector<32x64xf32>
    %c0_229 = arith.constant 0 : index
    %c0_230 = arith.constant 0 : index
    %416 = vector.load %arg39[%c0_229, %c0_230] : memref<1x64xf32, #tpu.memory_space<vmem>>, vector<1x64xf32>
    %417 = vector.broadcast %416 : vector<1x64xf32> to vector<32x64xf32>
    %418 = arith.addf %415, %417 : vector<32x64xf32>
    %419 = vector.extract_strided_slice %418 {offsets = [0, 0], sizes = [32, 32], strides = [1, 1]} : vector<32x64xf32> to vector<32x32xf32>
    %420 = arith.mulf %419, %410 : vector<32x32xf32>
    %421 = vector.extract_strided_slice %418 {offsets = [0, 32], sizes = [32, 32], strides = [1, 1]} : vector<32x64xf32> to vector<32x32xf32>
    %422 = arith.addf %420, %421 : vector<32x32xf32>
    %423 = tpu.iota {dimensions = array<i32: 0>} : vector<32x32xi32>
    %c16_i32_231 = arith.constant 16 : i32
    %c0_i32_232 = arith.constant 0 : i32
    %424 = arith.cmpi eq, %c16_i32_231, %c0_i32_232 : i32
    %c1_i32_233 = arith.constant 1 : i32
    %425 = arith.select %424, %c1_i32_233, %c16_i32_231 : i32
    %426 = vector.broadcast %425 : i32 to vector<32x32xi32>
    %427 = arith.remsi %423, %426 : vector<32x32xi32>
    %c0_i32_234 = arith.constant 0 : i32
    %428 = vector.broadcast %c0_i32_234 : i32 to vector<32x32xi32>
    %429 = arith.cmpi ne, %427, %428 : vector<32x32xi32>
    %c0_i32_235 = arith.constant 0 : i32
    %430 = vector.broadcast %c0_i32_235 : i32 to vector<32x32xi32>
    %431 = arith.cmpi slt, %427, %430 : vector<32x32xi32>
    %c0_i32_236 = arith.constant 0 : i32
    %432 = arith.cmpi slt, %425, %c0_i32_236 : i32
    %433 = vector.broadcast %432 : i1 to vector<32x32xi1>
    %434 = vector.broadcast %433 : vector<32x32xi1> to vector<32x32xi1>
    %435 = arith.xori %431, %434 : vector<32x32xi1>
    %436 = arith.andi %435, %429 : vector<32x32xi1>
    %437 = vector.broadcast %425 : i32 to vector<32x32xi32>
    %438 = arith.addi %427, %437 : vector<32x32xi32>
    %439 = arith.select %436, %438, %427 : vector<32x32xi1>, vector<32x32xi32>
    %c0_i32_237 = arith.constant 0 : i32
    %440 = vector.broadcast %c0_i32_237 : i32 to vector<32x32xi32>
    %441 = arith.cmpi eq, %439, %440 : vector<32x32xi32>
    %c1_i32_238 = arith.constant 1 : i32
    %442 = tpu.dynamic_rotate %422 by %c1_i32_238 dim 0 : vector<32x32xf32>, i32 -> vector<32x32xf32>
    %cst_239 = arith.constant 0.000000e+00 : f32
    %443 = vector.broadcast %cst_239 : f32 to vector<32x32xf32>
    %444 = arith.select %441, %443, %442 : vector<32x32xi1>, vector<32x32xf32>
    %c15_i32_240 = arith.constant 15 : i32
    %445 = vector.broadcast %c15_i32_240 : i32 to vector<32x32xi32>
    %446 = arith.cmpi eq, %439, %445 : vector<32x32xi32>
    %c31_i32_241 = arith.constant 31 : i32
    %447 = tpu.dynamic_rotate %422 by %c31_i32_241 dim 0 : vector<32x32xf32>, i32 -> vector<32x32xf32>
    %cst_242 = arith.constant 0.000000e+00 : f32
    %448 = vector.broadcast %cst_242 : f32 to vector<32x32xf32>
    %449 = arith.select %446, %448, %447 : vector<32x32xi1>, vector<32x32xf32>
    %c0_243 = arith.constant 0 : index
    %c0_244 = arith.constant 0 : index
    %c0_245 = arith.constant 0 : index
    %450 = vector.load %arg40[%c0_243, %c0_244, %c0_245] : memref<3x32x32xf32, #tpu.memory_space<vmem>>, vector<1x32x32xf32>
    %451 = vector.shape_cast %450 : vector<1x32x32xf32> to vector<32x32xf32>
    %cst_246 = arith.constant dense<0.000000e+00> : vector<32x32xf32>
    %452 = tpu.matmul %444, %451, %cst_246 {dimension_numbers = #tpu.dot_dimension_numbers<[1], [0], [0], [1], [0, 0, 1, 1], [], []>} : vector<32x32xf32>, vector<32x32xf32>, vector<32x32xf32> -> vector<32x32xf32>
    %c1_247 = arith.constant 1 : index
    %c0_248 = arith.constant 0 : index
    %c0_249 = arith.constant 0 : index
    %453 = vector.load %arg40[%c1_247, %c0_248, %c0_249] : memref<3x32x32xf32, #tpu.memory_space<vmem>>, vector<1x32x32xf32>
    %454 = vector.shape_cast %453 : vector<1x32x32xf32> to vector<32x32xf32>
    %cst_250 = arith.constant dense<0.000000e+00> : vector<32x32xf32>
    %455 = tpu.matmul %422, %454, %cst_250 {dimension_numbers = #tpu.dot_dimension_numbers<[1], [0], [0], [1], [0, 0, 1, 1], [], []>} : vector<32x32xf32>, vector<32x32xf32>, vector<32x32xf32> -> vector<32x32xf32>
    %456 = arith.addf %452, %455 : vector<32x32xf32>
    %c2_251 = arith.constant 2 : index
    %c0_252 = arith.constant 0 : index
    %c0_253 = arith.constant 0 : index
    %457 = vector.load %arg40[%c2_251, %c0_252, %c0_253] : memref<3x32x32xf32, #tpu.memory_space<vmem>>, vector<1x32x32xf32>
    %458 = vector.shape_cast %457 : vector<1x32x32xf32> to vector<32x32xf32>
    %cst_254 = arith.constant dense<0.000000e+00> : vector<32x32xf32>
    %459 = tpu.matmul %449, %458, %cst_254 {dimension_numbers = #tpu.dot_dimension_numbers<[1], [0], [0], [1], [0, 0, 1, 1], [], []>} : vector<32x32xf32>, vector<32x32xf32>, vector<32x32xf32> -> vector<32x32xf32>
    %460 = arith.addf %456, %459 : vector<32x32xf32>
    %c0_255 = arith.constant 0 : index
    %c0_256 = arith.constant 0 : index
    %461 = vector.load %arg41[%c0_255, %c0_256] : memref<1x32xf32, #tpu.memory_space<vmem>>, vector<1x32xf32>
    %462 = vector.broadcast %461 : vector<1x32xf32> to vector<32x32xf32>
    %463 = arith.addf %460, %462 : vector<32x32xf32>
    %c0_257 = arith.constant 0 : index
    %c0_258 = arith.constant 0 : index
    %464 = vector.load %arg42[%c0_257, %c0_258] : memref<1x32xf32, #tpu.memory_space<vmem>>, vector<1x32xf32>
    %c0_259 = arith.constant 0 : index
    %c0_260 = arith.constant 0 : index
    %465 = vector.load %arg43[%c0_259, %c0_260] : memref<1x32xf32, #tpu.memory_space<vmem>>, vector<1x32xf32>
    %cst_261 = arith.constant dense<0.000000e+00> : vector<32x32xf32>
    %466 = tpu.matmul %0, %463, %cst_261 {dimension_numbers = #tpu.dot_dimension_numbers<[1], [0], [0], [1], [0, 0, 1, 1], [], []>} : vector<32x32xf32>, vector<32x32xf32>, vector<32x32xf32> -> vector<32x32xf32>
    %cst_262 = arith.constant dense<0.000000e+00> : vector<32x32xf32>
    %467 = tpu.matmul %466, %1, %cst_262 {dimension_numbers = #tpu.dot_dimension_numbers<[1], [0], [0], [1], [0, 0, 1, 1], [], []>} : vector<32x32xf32>, vector<32x32xf32>, vector<32x32xf32> -> vector<32x32xf32>
    %468 = arith.subf %463, %467 : vector<32x32xf32>
    %469 = arith.mulf %468, %468 : vector<32x32xf32>
    %cst_263 = arith.constant dense<0.000000e+00> : vector<32x32xf32>
    %470 = tpu.matmul %0, %469, %cst_263 {dimension_numbers = #tpu.dot_dimension_numbers<[1], [0], [0], [1], [0, 0, 1, 1], [], []>} : vector<32x32xf32>, vector<32x32xf32>, vector<32x32xf32> -> vector<32x32xf32>
    %cst_264 = arith.constant dense<0.000000e+00> : vector<32x32xf32>
    %471 = tpu.matmul %470, %1, %cst_264 {dimension_numbers = #tpu.dot_dimension_numbers<[1], [0], [0], [1], [0, 0, 1, 1], [], []>} : vector<32x32xf32>, vector<32x32xf32>, vector<32x32xf32> -> vector<32x32xf32>
    %cst_265 = arith.constant 9.99999974E-6 : f32
    %472 = vector.broadcast %cst_265 : f32 to vector<32x32xf32>
    %473 = arith.addf %471, %472 : vector<32x32xf32>
    %474 = math.rsqrt %473 : vector<32x32xf32>
    %475 = arith.mulf %468, %474 : vector<32x32xf32>
    %476 = vector.broadcast %464 : vector<1x32xf32> to vector<32x32xf32>
    %477 = arith.mulf %475, %476 : vector<32x32xf32>
    %478 = vector.broadcast %465 : vector<1x32xf32> to vector<32x32xf32>
    %479 = arith.addf %477, %478 : vector<32x32xf32>
    %cst_266 = arith.constant 0.000000e+00 : f32
    %480 = vector.broadcast %cst_266 : f32 to vector<32x32xf32>
    %481 = arith.maximumf %479, %480 : vector<32x32xf32>
    %482 = math.absf %479 : vector<32x32xf32>
    %cst_267 = arith.constant 0.000000e+00 : f32
    %483 = vector.broadcast %cst_267 : f32 to vector<32x32xf32>
    %484 = arith.subf %483, %482 : vector<32x32xf32>
    %485 = math.exp %484 : vector<32x32xf32>
    %486 = math.log1p %485 : vector<32x32xf32>
    %487 = arith.addf %481, %486 : vector<32x32xf32>
    %488 = math.tanh %487 : vector<32x32xf32>
    %489 = arith.mulf %479, %488 : vector<32x32xf32>
    %490 = arith.addf %489, %343 : vector<32x32xf32>
    %c0_268 = arith.constant 0 : index
    %c0_269 = arith.constant 0 : index
    %491 = vector.load %arg44[%c0_268, %c0_269] : memref<32x4xf32, #tpu.memory_space<vmem>>, vector<32x4xf32>
    %cst_270 = arith.constant dense<0.000000e+00> : vector<32x4xf32>
    %492 = tpu.matmul %490, %491, %cst_270 {dimension_numbers = #tpu.dot_dimension_numbers<[1], [0], [0], [1], [0, 0, 1, 1], [], []>} : vector<32x32xf32>, vector<32x4xf32>, vector<32x4xf32> -> vector<32x4xf32>
    %c0_271 = arith.constant 0 : index
    %c0_272 = arith.constant 0 : index
    %493 = vector.load %arg45[%c0_271, %c0_272] : memref<1x4xf32, #tpu.memory_space<vmem>>, vector<1x4xf32>
    %494 = vector.broadcast %493 : vector<1x4xf32> to vector<32x4xf32>
    %495 = arith.addf %492, %494 : vector<32x4xf32>
    %c0_273 = arith.constant 0 : index
    %c0_274 = arith.constant 0 : index
    %496 = vector.load %arg46[%c0_273, %c0_274] : memref<32x4xf32, #tpu.memory_space<vmem>>, vector<32x4xf32>
    tpu.vector_store %arg46[%c0_273, %c0_274], %495 {strides = array<i32>} : memref<32x4xf32, #tpu.memory_space<vmem>>, vector<32x4xf32>,
    return
  }
}

</mosaic_0001>

<bundles_post_ra>
// kernel: conditional_unet1d.1
= control target key start
LH: loop header
LB: loop body
LE: loop exit
PB: predicated region body
PF: predicated region fallthrough
CT: control target
= control target key end

     0   :  { %s9654_s6 = smov 1   ;;  %s9655_s10 = smov 2   ;;  %s11255_s0 = inlined_call_operand.smem [shape: u32[47], index: -1, kind: input, shape index: {}] }
   0x1   :  { %s9737_s5 = sld [smem:[%s11255_s0]]   ;;  %s9656_s14 = smov 3  }
   0x2   :  { %s9742_s9 = sld [smem:[%s11255_s0 + %s9654_s6]]   ;;  %s9657_s18 = smov 4  }
   0x3   :  { %s9747_s13 = sld [smem:[%s11255_s0 + %s9655_s10]]   ;;  %s9658_s22 = smov 5  }
   0x4   :  { %s9752_s17 = sld [smem:[%s11255_s0 + %s9656_s14]]   ;;  %s9659_s26 = smov 6  }
   0x5   :  { %s9757_s21 = sld [smem:[%s11255_s0 + %s9657_s18]]   ;;  %s9660_s30 = smov 7  }
   0x6   :  { %s9762_s25 = sld [smem:[%s11255_s0 + %s9658_s22]]   ;;  %s9661_s4 = smov 8  }
   0x7   :  { %11284 = sst [smem:[#allocation56_spill]] %s9737_s5  ;;  %s9662_s10 = smov 9  }
   0x8   :  { %11285 = sst [smem:[#allocation57_spill]] %s9742_s9  ;;  %s9663_s15 = smov 10  }
   0x9   :  { %11286 = sst [smem:[#allocation58_spill]] %s9747_s13  ;;  %s9664_s20 = smov 11  }
   0xa   :  { %11287 = sst [smem:[#allocation59_spill]] %s9752_s17  ;;  %s9666_s1 = smov 13  }
   0xb   :  { %11288 = sst [smem:[#allocation60_spill]] %s9757_s21  ;;  %s9667_s7 = smov 14  }
   0xc   :  { %11289 = sst [smem:[#allocation61_spill]] %s9762_s25  ;;  %s9669_s22 = smov 16  }
   0xd   :  { %s9767_s29 = sld [smem:[%s11255_s0 + %s9659_s26]]   ;;  %s9665_s26 = smov 12  }
   0xe   :  { %s9772_s3 = sld [smem:[%s11255_s0 + %s9660_s30]]   ;;  %s9670_s28 = smov 17  }
   0xf   :  { %s9777_s8 = sld [smem:[%s11255_s0 + %s9661_s4]]  }
  0x10   :  { %s9782_s14 = sld [smem:[%s11255_s0 + %s9662_s10]]  }
  0x11   :  { %s9787_s19 = sld [smem:[%s11255_s0 + %s9663_s15]]   ;;  %s9668_s15 = smov 15  }
  0x12   :  { %s9792_s24 = sld [smem:[%s11255_s0 + %s9664_s20]]  }
  0x13   :  { %11290 = sst [smem:[#allocation62_spill]] %s9767_s29 }
  0x14   :  { %11291 = sst [smem:[#allocation63_spill]] %s9772_s3 }
  0x15   :  { %s9797_s30 = sld [smem:[%s11255_s0 + %s9665_s26]]  }
  0x16   :  { %s9802_s6 = sld [smem:[%s11255_s0 + %s9666_s1]]  }
  0x17   :  { %s9807_s12 = sld [smem:[%s11255_s0 + %s9667_s7]]   ;;  %s9671_s7 = smov 18  }
  0x18   :  { %s9812_s20 = sld [smem:[%s11255_s0 + %s9668_s15]]   ;;  %s9672_s15 = smov 19  }
  0x19   :  { %s9817_s27 = sld [smem:[%s11255_s0 + %s9669_s22]]   ;;  %s9673_s22 = smov 20  }
  0x1a   :  { %s9822_s4 = sld [smem:[%s11255_s0 + %s9670_s28]]   ;;  %s9674_s28 = smov 21  }
  0x1b   :  { %11292 = sst [smem:[#allocation64_spill]] %s9797_s30 }
  0x1c   :  { %11293 = sst [smem:[#allocation65_spill]] %s9802_s6 }
  0x1d   :  { %11294 = sst [smem:[#allocation66_spill]] %s9807_s12 }
  0x1e   :  { %s9827_s6 = sld [smem:[%s11255_s0 + %s9671_s7]]   ;;  %s9675_s7 = smov 22  }
  0x1f   :  { %11295 = sst [smem:[#allocation67_spill]] %s9817_s27 }
  0x20   :  { %11296 = sst [smem:[#allocation68_spill]] %s9822_s4 }
  0x21   :  { %s9832_s12 = sld [smem:[%s11255_s0 + %s9672_s15]]   ;;  %s9676_s15 = smov 23  }
  0x22   :  { %s9837_s27 = sld [smem:[%s11255_s0 + %s9673_s22]]   ;;  %s9677_s22 = smov 24  }
  0x23   :  { %s9842_s13 = sld [smem:[%s11255_s0 + %s9674_s28]]   ;;  %s9678_s28 = smov 25  }
  0x24   :  { %s9847_s29 = sld [smem:[%s11255_s0 + %s9675_s7]]   ;;  %s9679_s7 = smov 26  }
  0x25   :  { %s9852_s21 = sld [smem:[%s11255_s0 + %s9676_s15]]   ;;  %s9680_s15 = smov 27  }
  0x26   :  { %s9857_s17 = sld [smem:[%s11255_s0 + %s9677_s22]]   ;;  %s9681_s22 = smov 28  }
  0x27   :  { %11297 = sst [smem:[#allocation69_spill]] %s9832_s12 }
  0x28   :  { %s9862_s3 = sld [smem:[%s11255_s0 + %s9678_s28]]   ;;  %s9682_s28 = smov 29  }
  0x29   :  { %11298 = sst [smem:[#allocation70_spill]] %s9842_s13 }
  0x2a   :  { %11299 = sst [smem:[#allocation71_spill]] %s9847_s29 }
  0x2b   :  { %s9867_s29 = sld [smem:[%s11255_s0 + %s9679_s7]]   ;;  %s9683_s7 = smov 30  }
  0x2c   :  { %11300 = sst [smem:[#allocation72_spill]] %s9857_s17 }
  0x2d   :  { %s9872_s5 = sld [smem:[%s11255_s0 + %s9680_s15]]   ;;  %s9684_s15 = smov 31  }
  0x2e   :  { %s9877_s9 = sld [smem:[%s11255_s0 + %s9681_s22]]   ;;  %s9685_s22 = smov 32  }
  0x2f   :  { %s9882_s25 = sld [smem:[%s11255_s0 + %s9682_s28]]   ;;  %s9686_s28 = smov 33  }
  0x31   :  { %11301 = sst [smem:[#allocation73_spill]] %s9867_s29 }
  0x32   :  { %s9887_s29 = sld [smem:[%s11255_s0 + %s9683_s7]]   ;;  %s9687_s7 = smov 34  }
  0x33   :  { %11302 = sst [smem:[#allocation74_spill]] %s9872_s5 }
  0x34   :  { %11303 = sst [smem:[#allocation75_spill]] %s9877_s9 }
  0x35   :  { %11304 = sst [smem:[#allocation76_spill]] %s9882_s25 }
  0x36   :  { %s9892_s5 = sld [smem:[%s11255_s0 + %s9684_s15]]   ;;  %s9688_s15 = smov 35  }
  0x37   :  { %s9897_s9 = sld [smem:[%s11255_s0 + %s9685_s22]]   ;;  %s9689_s22 = smov 36  }
  0x38   :  { %s9902_s25 = sld [smem:[%s11255_s0 + %s9686_s28]]   ;;  %s9690_s28 = smov 37  }
  0x39   :  { %s9907_s17 = sld [smem:[%s11255_s0 + %s9687_s7]]   ;;  %s9691_s7 = smov 38  }
  0x3a   :  { %s9917_s13 = sld [smem:[%s11255_s0 + %s9689_s22]]   ;;  %s9693_s22 = smov 40  }
  0x3c   :  { %11305 = sst [smem:[#allocation77_spill]] %s9892_s5 }
  0x3d   :  { %s9912_s5 = sld [smem:[%s11255_s0 + %s9688_s15]]   ;;  %s9692_s15 = smov 39  }
  0x3e   :  { %11306 = sst [smem:[#allocation78_spill]] %s9902_s25 }
  0x3f   :  { %11307 = sst [smem:[#allocation79_spill]] %s9907_s17 }
  0x40   :  { %11308 = sst [smem:[#allocation80_spill]] %s9917_s13 }
  0x41   :  { %s9922_s25 = sld [smem:[%s11255_s0 + %s9690_s28]]   ;;  %s9694_s28 = smov 41  }
  0x42   :  { %s9927_s17 = sld [smem:[%s11255_s0 + %s9691_s7]]   ;;  %s9695_s7 = smov 42  }
  0x43   :  { %s9932_s12 = sld [smem:[%s11255_s0 + %s9692_s15]]   ;;  %s9696_s15 = smov 43  }
  0x44   :  { %s9937_s13 = sld [smem:[%s11255_s0 + %s9693_s22]]   ;;  %s9697_s22 = smov 44  }
  0x45   :  { %s9952_s4 = sld [smem:[%s11255_s0 + %s9696_s15]]  }
  0x47   :  { %11309 = sst [smem:[#allocation81_spill]] %s9922_s25 }
  0x48   :  { %11310 = sst [smem:[#allocation82_spill]] %s9927_s17 }
  0x49   :  { %s9942_s25 = sld [smem:[%s11255_s0 + %s9694_s28]]   ;;  %s9698_s28 = smov 45  }
  0x4a   :  { %11311 = sst [smem:[#allocation83_spill]] %s9937_s13 }
  0x4b   :  { %s9947_s17 = sld [smem:[%s11255_s0 + %s9695_s7]]   ;;  %s9699_s7 = smov 46  }
  0x4c   :  { %s9957_s13 = sld [smem:[%s11255_s0 + %s9697_s22]]  }
  0x4d   :  { %s9967_s30 = sld [smem:[%s11255_s0 + %s9699_s7]]  }
  0x4f   :  { %11312 = sst [smem:[#allocation84_spill]] %s9942_s25 }
  0x50   :  { %s9962_s25 = sld [smem:[%s11255_s0 + %s9698_s28]]  }
  0x51   :  { %98 = vsyncpa [#allocation3], 0 }
  0x52   :  { %99 = vsyncpa [#allocation5], 0 }
  0x53   :  { %100 = vsyncpa [#allocation8], 0 }
  0x54   :  { %101 = vsyncpa [#allocation11], 0 }
  0x55   :  { %102 = vsyncpa [#allocation14], 0 }
  0x56   :  { %103 = vsyncpa [#allocation17], 0 }
  0x57   :  { %104 = vsyncpa [#allocation20], 0 }
  0x58   :  { %105 = vsyncpa [#allocation23], 0 }
  0x59   :  { %106 = vsyncpa [#allocation26], 0 }
  0x5a   :  { %107 = vsyncpa [#allocation29], 0 }
  0x5b   :  { %108 = vsyncpa [#allocation32], 0 }
  0x5c   :  { %109 = vsyncpa [#allocation35], 0 }
  0x5d   :  { %110 = vsyncpa [#allocation38], 0 }
  0x5e   :  { %111 = vsyncpa [#allocation41], 0  ;;  %s9700_s15 = smov [#allocation4]   ;;  %s9054_s16 = scalar_lea.hbm %s9782_s14, 192 }
  0x5f   :  { %s143_s0 = sshll.u32 %s9700_s15, 4  ;;  %p9055_p0 = scmp.ne.s32.totalorder %s9782_s14, %s9054_s16  ;;  %s144_s0 = int_to_ptr.vmem [resolvable:$true] %s143_s0 }
  0x60   :  { %p9058_p1 = scmp.lt.u32.totalorder %s9054_s16, %s9782_s14 }
  0x62   :  { %p9060_p2 = pnand %p9058_p1, %p9055_p0 }
  0x64   :  { %9063 = shalt.err (!%p9060_p2)
}
  0x65   :  { %s9064_s18 = scalar_lea.vmem %s144_s0, 192  ;;  %p9069_p4 = scmp.lt.s32.totalorder %s144_s0, %s144_s0 }
  0x66   :  { %p9065_p3 = scmp.ne.s32.totalorder %s144_s0, %s9064_s18  ;;  %p9070_p5 = scmp.lt.s32.totalorder %s9064_s18, %s9064_s18 }
  0x68   :  { %p9071_p6 = por %p9070_p5, %p9069_p4 }
  0x6a   :  { %p9072_p7 = pnand %p9071_p6, %p9065_p3 }
  0x6c   :  { %9075 = shalt.err (!%p9072_p7)
}
  0x6d   :  { %s9701_s22 = smov 64   ;;  %s9702_s23 = smov 4  }
  0x6e   :  { %149 = dma.hbm_to_vmem [thread:$0]  %s9782_s14, 192, %s144_s0, [#allocation5], %s9701_s22, %s9701_s22, %s9702_s23  }
  0x6f   :  { %s9703_s26 = smov [#allocation7]   ;;  %s9704_s1 = smov [#allocation10]  }
  0x70   :  { %s166_s28 = sshll.u32 %s9703_s26, 4  ;;  %s190_s2 = sshll.u32 %s9704_s1, 4  ;;  %s167_s28 = int_to_ptr.vmem [resolvable:$true] %s166_s28  ;;  %s191_s2 = int_to_ptr.vmem [resolvable:$true] %s190_s2 }
  0x71   :  { %s9076_s7 = scalar_lea.hbm %s9792_s24, 16 }
  0x72   :  { %p9077_p8 = scmp.ne.s32.totalorder %s9792_s24, %s9076_s7  ;;  %p9080_p9 = scmp.lt.u32.totalorder %s9076_s7, %s9792_s24 }
  0x74   :  { %p9082_p10 = pnand %p9080_p9, %p9077_p8 }
  0x76   :  { %9085 = shalt.err (!%p9082_p10)
}
  0x77   :  { %s9086_s10 = scalar_lea.vmem %s167_s28, 16  ;;  %s9090_s11 = scalar_lea.vmem %s167_s28, 32 }
  0x78   :  { %p9087_p11 = scmp.ne.s32.totalorder %s167_s28, %s9086_s10  ;;  %p9091_p12 = scmp.lt.s32.totalorder %s167_s28, %s167_s28 }
  0x79   :  { %p9092_p13 = scmp.lt.s32.totalorder %s9090_s11, %s9086_s10 }
  0x7b   :  { %p9093_p0 = por %p9092_p13, %p9091_p12 }
  0x7d   :  { %p9094_p1 = pnand %p9093_p0, %p9087_p11 }
  0x7f   :  { %9097 = shalt.err (!%p9094_p1)
}
  0x80   :  { %169 = dma.hbm_to_vmem [thread:$0]  %s9792_s24, 16, %s167_s28, [#allocation8]  }
  0x81   :  { %s9098_s14 = scalar_lea.hbm %s9812_s20, 16 }
  0x82   :  { %p9099_p2 = scmp.ne.s32.totalorder %s9812_s20, %s9098_s14  ;;  %p9102_p3 = scmp.lt.u32.totalorder %s9098_s14, %s9812_s20 }
  0x84   :  { %p9104_p4 = pnand %p9102_p3, %p9099_p2 }
  0x86   :  { %9107 = shalt.err (!%p9104_p4)
}
  0x87   :  { %s9108_s15 = scalar_lea.vmem %s191_s2, 16  ;;  %s9112_s0 = scalar_lea.vmem %s191_s2, 32 }
  0x88   :  { %p9109_p5 = scmp.ne.s32.totalorder %s191_s2, %s9108_s15  ;;  %p9113_p6 = scmp.lt.s32.totalorder %s191_s2, %s191_s2 }
  0x89   :  { %p9114_p7 = scmp.lt.s32.totalorder %s9112_s0, %s9108_s15 }
  0x8b   :  { %p9115_p8 = por %p9114_p7, %p9113_p6 }
  0x8d   :  { %p9116_p9 = pnand %p9115_p8, %p9109_p5 }
  0x8f   :  { %9119 = shalt.err (!%p9116_p9)
}
  0x90   :  { %193 = dma.hbm_to_vmem [thread:$0]  %s9812_s20, 16, %s191_s2, [#allocation11]  }
  0x91   :  { %s9705_s24 = smov [#allocation13]   ;;  %s9706_s18 = smov [#allocation16]  }
  0x92   :  { %s212_s16 = sshll.u32 %s9705_s24, 4  ;;  %s232_s22 = sshll.u32 %s9706_s18, 4  ;;  %s213_s16 = int_to_ptr.vmem [resolvable:$true] %s212_s16  ;;  %s233_s22 = int_to_ptr.vmem [resolvable:$true] %s232_s22 }
  0x93   :  { %s9120_s23 = scalar_lea.hbm %s9827_s6, 16 }
  0x94   :  { %p9121_p10 = scmp.ne.s32.totalorder %s9827_s6, %s9120_s23  ;;  %p9124_p11 = scmp.lt.u32.totalorder %s9120_s23, %s9827_s6 }
  0x96   :  { %p9126_p12 = pnand %p9124_p11, %p9121_p10 }
  0x98   :  { %9129 = shalt.err (!%p9126_p12)
}
  0x99   :  { %s9130_s26 = scalar_lea.vmem %s213_s16, 16  ;;  %s9134_s28 = scalar_lea.vmem %s213_s16, 32 }
  0x9a   :  { %p9131_p13 = scmp.ne.s32.totalorder %s213_s16, %s9130_s26  ;;  %p9135_p0 = scmp.lt.s32.totalorder %s213_s16, %s213_s16 }
  0x9b   :  { %p9136_p1 = scmp.lt.s32.totalorder %s9134_s28, %s9130_s26 }
  0x9d   :  { %p9137_p2 = por %p9136_p1, %p9135_p0 }
  0x9f   :  { %p9138_p3 = pnand %p9137_p2, %p9131_p13 }
  0xa1   :  { %9141 = shalt.err (!%p9138_p3)
}
  0xa2   :  { %215 = dma.hbm_to_vmem [thread:$0]  %s9827_s6, 16, %s213_s16, [#allocation14]  }
  0xa3   :  { %s9142_s20 = scalar_lea.hbm %s9837_s27, 64 }
  0xa4   :  { %p9143_p4 = scmp.ne.s32.totalorder %s9837_s27, %s9142_s20  ;;  %p9146_p5 = scmp.lt.u32.totalorder %s9142_s20, %s9837_s27 }
  0xa6   :  { %p9148_p6 = pnand %p9146_p5, %p9143_p4 }
  0xa8   :  { %9151 = shalt.err (!%p9148_p6)
}
  0xa9   :  { %s9152_s1 = scalar_lea.vmem %s233_s22, 64  ;;  %p9157_p8 = scmp.lt.s32.totalorder %s233_s22, %s233_s22 }
  0xaa   :  { %p9153_p7 = scmp.ne.s32.totalorder %s233_s22, %s9152_s1  ;;  %p9158_p9 = scmp.lt.s32.totalorder %s9152_s1, %s9152_s1 }
  0xac   :  { %p9159_p10 = por %p9158_p9, %p9157_p8 }
  0xae   :  { %p9160_p11 = pnand %p9159_p10, %p9153_p7 }
  0xb0   :  { %9163 = shalt.err (!%p9160_p11)
}
  0xb1   :  { %235 = dma.hbm_to_vmem [thread:$0]  %s9837_s27, 64, %s233_s22, [#allocation17]  }
  0xb2   :  { %s9707_s2 = smov [#allocation19]   ;;  %s9708_s7 = smov [#allocation22]  }
  0xb3   :  { %s254_s6 = sshll.u32 %s9707_s2, 4  ;;  %s274_s10 = sshll.u32 %s9708_s7, 4  ;;  %s255_s6 = int_to_ptr.vmem [resolvable:$true] %s254_s6  ;;  %s275_s10 = int_to_ptr.vmem [resolvable:$true] %s274_s10 }
  0xb4   :  { %s9164_s11 = scalar_lea.hbm %s9852_s21, 16 }
  0xb5   :  { %p9165_p12 = scmp.ne.s32.totalorder %s9852_s21, %s9164_s11  ;;  %p9168_p13 = scmp.lt.u32.totalorder %s9164_s11, %s9852_s21 }
  0xb7   :  { %p9170_p0 = pnand %p9168_p13, %p9165_p12 }
  0xb9   :  { %9173 = shalt.err (!%p9170_p0)
}
  0xba   :  { %s9174_s14 = scalar_lea.vmem %s255_s6, 16  ;;  %s9178_s15 = scalar_lea.vmem %s255_s6, 32 }
  0xbb   :  { %p9175_p1 = scmp.ne.s32.totalorder %s255_s6, %s9174_s14  ;;  %p9179_p2 = scmp.lt.s32.totalorder %s255_s6, %s255_s6 }
  0xbc   :  { %p9180_p3 = scmp.lt.s32.totalorder %s9178_s15, %s9174_s14 }
  0xbe   :  { %p9181_p4 = por %p9180_p3, %p9179_p2 }
  0xc0   :  { %p9182_p5 = pnand %p9181_p4, %p9175_p1 }
  0xc2   :  { %9185 = shalt.err (!%p9182_p5)
}
  0xc3   :  { %257 = dma.hbm_to_vmem [thread:$0]  %s9852_s21, 16, %s255_s6, [#allocation20]  }
  0xc4   :  { %s9186_s27 = scalar_lea.hbm %s9862_s3, 16 }
  0xc5   :  { %p9187_p6 = scmp.ne.s32.totalorder %s9862_s3, %s9186_s27  ;;  %p9190_p7 = scmp.lt.u32.totalorder %s9186_s27, %s9862_s3 }
  0xc7   :  { %p9192_p8 = pnand %p9190_p7, %p9187_p6 }
  0xc9   :  { %9195 = shalt.err (!%p9192_p8)
}
  0xca   :  { %s9196_s0 = scalar_lea.vmem %s275_s10, 16  ;;  %s9200_s24 = scalar_lea.vmem %s275_s10, 32 }
  0xcb   :  { %p9197_p9 = scmp.ne.s32.totalorder %s275_s10, %s9196_s0  ;;  %p9201_p10 = scmp.lt.s32.totalorder %s275_s10, %s275_s10 }
  0xcc   :  { %p9202_p11 = scmp.lt.s32.totalorder %s9200_s24, %s9196_s0 }
  0xce   :  { %p9203_p12 = por %p9202_p11, %p9201_p10 }
  0xd0   :  { %p9204_p13 = pnand %p9203_p12, %p9197_p9 }
  0xd2   :  { %9207 = shalt.err (!%p9204_p13)
}
  0xd3   :  { %277 = dma.hbm_to_vmem [thread:$0]  %s9862_s3, 16, %s275_s10, [#allocation23]  }
  0xd4   :  { %s9709_s21 = smov [#allocation25]   ;;  %s9710_s18 = smov [#allocation28]  }
  0xd5   :  { %s300_s16 = sshll.u32 %s9709_s21, 4  ;;  %s320_s22 = sshll.u32 %s9710_s18, 4  ;;  %s301_s16 = int_to_ptr.vmem [resolvable:$true] %s300_s16  ;;  %s321_s22 = int_to_ptr.vmem [resolvable:$true] %s320_s22 }
  0xd6   :  { %s9208_s23 = scalar_lea.hbm %s9887_s29, 16 }
  0xd7   :  { %p9209_p0 = scmp.ne.s32.totalorder %s9887_s29, %s9208_s23  ;;  %p9212_p1 = scmp.lt.u32.totalorder %s9208_s23, %s9887_s29 }
  0xd9   :  { %p9214_p2 = pnand %p9212_p1, %p9209_p0 }
  0xdb   :  { %9217 = shalt.err (!%p9214_p2)
}
  0xdc   :  { %s9218_s26 = scalar_lea.vmem %s301_s16, 16  ;;  %s9222_s28 = scalar_lea.vmem %s301_s16, 32 }
  0xdd   :  { %p9219_p3 = scmp.ne.s32.totalorder %s301_s16, %s9218_s26  ;;  %p9223_p4 = scmp.lt.s32.totalorder %s301_s16, %s301_s16 }
  0xde   :  { %p9224_p5 = scmp.lt.s32.totalorder %s9222_s28, %s9218_s26 }
  0xe0   :  { %p9225_p6 = por %p9224_p5, %p9223_p4 }
  0xe2   :  { %p9226_p7 = pnand %p9225_p6, %p9219_p3 }
  0xe4   :  { %9229 = shalt.err (!%p9226_p7)
}
  0xe5   :  { %303 = dma.hbm_to_vmem [thread:$0]  %s9887_s29, 16, %s301_s16, [#allocation26]  }
  0xe6   :  { %s9230_s3 = scalar_lea.hbm %s9897_s9, 16 }
  0xe7   :  { %p9231_p8 = scmp.ne.s32.totalorder %s9897_s9, %s9230_s3  ;;  %p9234_p9 = scmp.lt.u32.totalorder %s9230_s3, %s9897_s9 }
  0xe9   :  { %p9236_p10 = pnand %p9234_p9, %p9231_p8 }
  0xeb   :  { %9239 = shalt.err (!%p9236_p10)
}
  0xec   :  { %s9240_s20 = scalar_lea.vmem %s321_s22, 16  ;;  %s9244_s1 = scalar_lea.vmem %s321_s22, 32 }
  0xed   :  { %p9241_p11 = scmp.ne.s32.totalorder %s321_s22, %s9240_s20  ;;  %p9245_p12 = scmp.lt.s32.totalorder %s321_s22, %s321_s22 }
  0xee   :  { %p9246_p13 = scmp.lt.s32.totalorder %s9244_s1, %s9240_s20 }
  0xf0   :  { %p9247_p0 = por %p9246_p13, %p9245_p12 }
  0xf2   :  { %p9248_p1 = pnand %p9247_p0, %p9241_p11 }
  0xf4   :  { %9251 = shalt.err (!%p9248_p1)
}
  0xf5   :  { %323 = dma.hbm_to_vmem [thread:$0]  %s9897_s9, 16, %s321_s22, [#allocation29]  }
  0xf6   :  { %s9711_s29 = smov [#allocation31]   ;;  %s9712_s6 = smov [#allocation34]  }
  0xf7   :  { %s342_s2 = sshll.u32 %s9711_s29, 4  ;;  %s366_s7 = sshll.u32 %s9712_s6, 4  ;;  %s343_s2 = int_to_ptr.vmem [resolvable:$true] %s342_s2  ;;  %s367_s7 = int_to_ptr.vmem [resolvable:$true] %s366_s7 }
  0xf8   :  { %s9252_s10 = scalar_lea.hbm %s9912_s5, 16 }
  0xf9   :  { %p9253_p2 = scmp.ne.s32.totalorder %s9912_s5, %s9252_s10  ;;  %p9256_p3 = scmp.lt.u32.totalorder %s9252_s10, %s9912_s5 }
  0xfb   :  { %p9258_p4 = pnand %p9256_p3, %p9253_p2 }
  0xfd   :  { %9261 = shalt.err (!%p9258_p4)
}
  0xfe   :  { %s9262_s11 = scalar_lea.vmem %s343_s2, 16  ;;  %s9266_s14 = scalar_lea.vmem %s343_s2, 32 }
  0xff   :  { %p9263_p5 = scmp.ne.s32.totalorder %s343_s2, %s9262_s11  ;;  %p9267_p6 = scmp.lt.s32.totalorder %s343_s2, %s343_s2 }
 0x100   :  { %p9268_p7 = scmp.lt.s32.totalorder %s9266_s14, %s9262_s11 }
 0x102   :  { %p9269_p8 = por %p9268_p7, %p9267_p6 }
 0x104   :  { %p9270_p9 = pnand %p9269_p8, %p9263_p5 }
 0x106   :  { %9273 = shalt.err (!%p9270_p9)
}
 0x107   :  { %345 = dma.hbm_to_vmem [thread:$0]  %s9912_s5, 16, %s343_s2, [#allocation32]  }
 0x108   :  { %s9274_s9 = scalar_lea.hbm %s9932_s12, 16 }
 0x109   :  { %p9275_p10 = scmp.ne.s32.totalorder %s9932_s12, %s9274_s9  ;;  %p9278_p11 = scmp.lt.u32.totalorder %s9274_s9, %s9932_s12 }
 0x10b   :  { %p9280_p12 = pnand %p9278_p11, %p9275_p10 }
 0x10d   :  { %9283 = shalt.err (!%p9280_p12)
}
 0x10e   :  { %s9284_s15 = scalar_lea.vmem %s367_s7, 16  ;;  %s9288_s27 = scalar_lea.vmem %s367_s7, 32 }
 0x10f   :  { %p9285_p13 = scmp.ne.s32.totalorder %s367_s7, %s9284_s15  ;;  %p9289_p0 = scmp.lt.s32.totalorder %s367_s7, %s367_s7 }
 0x110   :  { %p9290_p1 = scmp.lt.s32.totalorder %s9288_s27, %s9284_s15 }
 0x112   :  { %p9291_p2 = por %p9290_p1, %p9289_p0 }
 0x114   :  { %p9292_p3 = pnand %p9291_p2, %p9285_p13 }
 0x116   :  { %9295 = shalt.err (!%p9292_p3)
}
 0x117   :  { %369 = dma.hbm_to_vmem [thread:$0]  %s9932_s12, 16, %s367_s7, [#allocation35]  }
 0x118   :  { %s9713_s5 = smov [#allocation37]   ;;  %s9714_s24 = smov [#allocation2]  }
 0x119   :  { %s388_s0 = sshll.u32 %s9713_s5, 4  ;;  %s134_s21 = sshll.u32 %s9714_s24, 4  ;;  %s389_s0 = int_to_ptr.vmem [resolvable:$true] %s388_s0  ;;  %s135_s21 = int_to_ptr.vmem [resolvable:$true] %s134_s21 }
 0x11a   :  { %s9296_s16 = scalar_lea.hbm %s9947_s17, 16 }
 0x11b   :  { %p9297_p4 = scmp.ne.s32.totalorder %s9947_s17, %s9296_s16  ;;  %p9300_p5 = scmp.lt.u32.totalorder %s9296_s16, %s9947_s17 }
 0x11d   :  { %p9302_p6 = pnand %p9300_p5, %p9297_p4 }
 0x11f   :  { %9305 = shalt.err (!%p9302_p6)
}
 0x120   :  { %s9306_s18 = scalar_lea.vmem %s389_s0, 16  ;;  %s9310_s22 = scalar_lea.vmem %s389_s0, 32 }
 0x121   :  { %p9307_p7 = scmp.ne.s32.totalorder %s389_s0, %s9306_s18  ;;  %p9311_p8 = scmp.lt.s32.totalorder %s389_s0, %s389_s0 }
 0x122   :  { %p9312_p9 = scmp.lt.s32.totalorder %s9310_s22, %s9306_s18 }
 0x124   :  { %p9313_p10 = por %p9312_p9, %p9311_p8 }
 0x126   :  { %p9314_p11 = pnand %p9313_p10, %p9307_p7 }
 0x128   :  { %9317 = shalt.err (!%p9314_p11)
}
 0x129   :  { %391 = dma.hbm_to_vmem [thread:$0]  %s9947_s17, 16, %s389_s0, [#allocation38]  }
 0x12a   :  { %s9318_s12 = scalar_lea.hbm %s9777_s8, 16 }
 0x12b   :  { %p9319_p12 = scmp.ne.s32.totalorder %s9777_s8, %s9318_s12  ;;  %p9322_p13 = scmp.lt.u32.totalorder %s9318_s12, %s9777_s8 }
 0x12d   :  { %p9324_p0 = pnand %p9322_p13, %p9319_p12 }
 0x12f   :  { %9327 = shalt.err (!%p9324_p0)
}
 0x130   :  { %s9328_s23 = scalar_lea.vmem %s135_s21, 16  ;;  %s9332_s26 = scalar_lea.vmem %s135_s21, 32 }
 0x131   :  { %p9329_p1 = scmp.ne.s32.totalorder %s135_s21, %s9328_s23  ;;  %p9333_p2 = scmp.lt.s32.totalorder %s135_s21, %s135_s21 }
 0x132   :  { %p9334_p3 = scmp.lt.s32.totalorder %s9332_s26, %s9328_s23 }
 0x134   :  { %p9335_p4 = por %p9334_p3, %p9333_p2 }
 0x136   :  { %p9336_p5 = pnand %p9335_p4, %p9329_p1 }
 0x138   :  { %9339 = shalt.err (!%p9336_p5)
}
 0x139   :  { %137 = dma.hbm_to_vmem [thread:$0]  %s9777_s8, 16, %s135_s21, [#allocation3]  }
 0x13a   :  { %s9715_s17 = smov [#allocation6]   ;;  %s9716_s3 = smov [#allocation9]  }
 0x13b   :  { %s156_s28 = sshll.u32 %s9715_s17, 4  ;;  %s176_s20 = sshll.u32 %s9716_s3, 4  ;;  %s157_s28 = int_to_ptr.vmem [resolvable:$true] %s156_s28  ;;  %s177_s20 = int_to_ptr.vmem [resolvable:$true] %s176_s20 }
 0x13c   :  { %s9340_s1 = scalar_lea.hbm %s9787_s19, 16 }
 0x13d   :  { %p9341_p6 = scmp.ne.s32.totalorder %s9787_s19, %s9340_s1  ;;  %p9344_p7 = scmp.lt.u32.totalorder %s9340_s1, %s9787_s19 }
 0x13f   :  { %p9346_p8 = pnand %p9344_p7, %p9341_p6 }
 0x141   :  { %9349 = shalt.err (!%p9346_p8)
}
 0x142   :  { %s9350_s29 = scalar_lea.vmem %s157_s28, 16  ;;  %s9354_s2 = scalar_lea.vmem %s157_s28, 32 }
 0x143   :  { %p9351_p9 = scmp.ne.s32.totalorder %s157_s28, %s9350_s29  ;;  %p9355_p10 = scmp.lt.s32.totalorder %s157_s28, %s157_s28 }
 0x144   :  { %p9356_p11 = scmp.lt.s32.totalorder %s9354_s2, %s9350_s29 }
 0x146   :  { %p9357_p12 = por %p9356_p11, %p9355_p10 }
 0x148   :  { %p9358_p13 = pnand %p9357_p12, %p9351_p9 }
 0x14a   :  { %9361 = shalt.err (!%p9358_p13)
}
 0x14b   :  { %s11313_s8 = sld [smem:[#allocation64_spill]] }
 0x14c   :  { %159 = dma.hbm_to_vmem [thread:$0]  %s9787_s19, 16, %s157_s28, [#allocation5]  }
 0x151   :  { %s9362_s6 = scalar_lea.hbm %s11313_s8, 16 }
 0x152   :  { %p9363_p0 = scmp.ne.s32.totalorder %s11313_s8, %s9362_s6  ;;  %p9366_p1 = scmp.lt.u32.totalorder %s9362_s6, %s11313_s8 }
 0x154   :  { %p9368_p2 = pnand %p9366_p1, %p9363_p0 }
 0x156   :  { %9371 = shalt.err (!%p9368_p2)
}
 0x157   :  { %s9372_s7 = scalar_lea.vmem %s177_s20, 16  ;;  %s9376_s10 = scalar_lea.vmem %s177_s20, 32 }
 0x158   :  { %p9373_p3 = scmp.ne.s32.totalorder %s177_s20, %s9372_s7  ;;  %p9377_p4 = scmp.lt.s32.totalorder %s177_s20, %s177_s20 }
 0x159   :  { %p9378_p5 = scmp.lt.s32.totalorder %s9376_s10, %s9372_s7 }
 0x15b   :  { %p9379_p6 = por %p9378_p5, %p9377_p4 }
 0x15d   :  { %p9380_p7 = pnand %p9379_p6, %p9373_p3 }
 0x15f   :  { %9383 = shalt.err (!%p9380_p7)
}
 0x160   :  { %s11314_s11 = sld [smem:[#allocation68_spill]]  ;;  %s9717_s19 = smov [#allocation12]  }
 0x161   :  { %179 = dma.hbm_to_vmem [thread:$0]  %s11313_s8, 16, %s177_s20, [#allocation8]  }
 0x162   :  { %s202_s14 = sshll.u32 %s9717_s19, 4  ;;  %s9718_s9 = smov [#allocation15]   ;;  %s203_s14 = int_to_ptr.vmem [resolvable:$true] %s202_s14 }
 0x163   :  { %s222_s15 = sshll.u32 %s9718_s9, 4  ;;  %s223_s15 = int_to_ptr.vmem [resolvable:$true] %s222_s15 }
 0x166   :  { %s9384_s27 = scalar_lea.hbm %s11314_s11, 16 }
 0x167   :  { %p9385_p8 = scmp.ne.s32.totalorder %s11314_s11, %s9384_s27  ;;  %p9388_p9 = scmp.lt.u32.totalorder %s9384_s27, %s11314_s11 }
 0x169   :  { %p9390_p10 = pnand %p9388_p9, %p9385_p8 }
 0x16b   :  { %9393 = shalt.err (!%p9390_p10)
}
 0x16c   :  { %s9394_s5 = scalar_lea.vmem %s203_s14, 16  ;;  %s9398_s0 = scalar_lea.vmem %s203_s14, 32 }
 0x16d   :  { %p9395_p11 = scmp.ne.s32.totalorder %s203_s14, %s9394_s5  ;;  %p9399_p12 = scmp.lt.s32.totalorder %s203_s14, %s203_s14 }
 0x16e   :  { %p9400_p13 = scmp.lt.s32.totalorder %s9398_s0, %s9394_s5 }
 0x170   :  { %p9401_p0 = por %p9400_p13, %p9399_p12 }
 0x172   :  { %p9402_p1 = pnand %p9401_p0, %p9395_p11 }
 0x174   :  { %9405 = shalt.err (!%p9402_p1)
}
 0x175   :  { %s11315_s24 = sld [smem:[#allocation69_spill]] }
 0x176   :  { %205 = dma.hbm_to_vmem [thread:$0]  %s11314_s11, 16, %s203_s14, [#allocation11]  }
 0x17b   :  { %s9406_s21 = scalar_lea.hbm %s11315_s24, 16 }
 0x17c   :  { %p9407_p2 = scmp.ne.s32.totalorder %s11315_s24, %s9406_s21  ;;  %p9410_p3 = scmp.lt.u32.totalorder %s9406_s21, %s11315_s24 }
 0x17e   :  { %p9412_p4 = pnand %p9410_p3, %p9407_p2 }
 0x180   :  { %9415 = shalt.err (!%p9412_p4)
}
 0x181   :  { %s9416_s16 = scalar_lea.vmem %s223_s15, 16  ;;  %s9420_s18 = scalar_lea.vmem %s223_s15, 32 }
 0x182   :  { %p9417_p5 = scmp.ne.s32.totalorder %s223_s15, %s9416_s16  ;;  %p9421_p6 = scmp.lt.s32.totalorder %s223_s15, %s223_s15 }
 0x183   :  { %p9422_p7 = scmp.lt.s32.totalorder %s9420_s18, %s9416_s16 }
 0x185   :  { %p9423_p8 = por %p9422_p7, %p9421_p6 }
 0x187   :  { %p9424_p9 = pnand %p9423_p8, %p9417_p5 }
 0x189   :  { %9427 = shalt.err (!%p9424_p9)
}
 0x18a   :  { %s11316_s22 = sld [smem:[#allocation70_spill]]  ;;  %s9719_s12 = smov [#allocation18]  }
 0x18b   :  { %225 = dma.hbm_to_vmem [thread:$0]  %s11315_s24, 16, %s223_s15, [#allocation14]  }
 0x18c   :  { %s242_s23 = sshll.u32 %s9719_s12, 4  ;;  %s9720_s26 = smov [#allocation21]   ;;  %s243_s23 = int_to_ptr.vmem [resolvable:$true] %s242_s23 }
 0x18d   :  { %s264_s17 = sshll.u32 %s9720_s26, 4  ;;  %s265_s17 = int_to_ptr.vmem [resolvable:$true] %s264_s17 }
 0x190   :  { %s9428_s28 = scalar_lea.hbm %s11316_s22, 16 }
 0x191   :  { %p9429_p10 = scmp.ne.s32.totalorder %s11316_s22, %s9428_s28  ;;  %p9432_p11 = scmp.lt.u32.totalorder %s9428_s28, %s11316_s22 }
 0x193   :  { %p9434_p12 = pnand %p9432_p11, %p9429_p10 }
 0x195   :  { %9437 = shalt.err (!%p9434_p12)
}
 0x196   :  { %s9438_s3 = scalar_lea.vmem %s243_s23, 16  ;;  %s9442_s20 = scalar_lea.vmem %s243_s23, 32 }
 0x197   :  { %p9439_p13 = scmp.ne.s32.totalorder %s243_s23, %s9438_s3  ;;  %p9443_p0 = scmp.lt.s32.totalorder %s243_s23, %s243_s23 }
 0x198   :  { %p9444_p1 = scmp.lt.s32.totalorder %s9442_s20, %s9438_s3 }
 0x19a   :  { %p9445_p2 = por %p9444_p1, %p9443_p0 }
 0x19c   :  { %p9446_p3 = pnand %p9445_p2, %p9439_p13 }
 0x19e   :  { %9449 = shalt.err (!%p9446_p3)
}
 0x19f   :  { %s11317_s1 = sld [smem:[#allocation72_spill]] }
 0x1a0   :  { %245 = dma.hbm_to_vmem [thread:$0]  %s11316_s22, 16, %s243_s23, [#allocation17]  }
 0x1a5   :  { %s9450_s29 = scalar_lea.hbm %s11317_s1, 16 }
 0x1a6   :  { %p9451_p4 = scmp.ne.s32.totalorder %s11317_s1, %s9450_s29  ;;  %p9454_p5 = scmp.lt.u32.totalorder %s9450_s29, %s11317_s1 }
 0x1a8   :  { %p9456_p6 = pnand %p9454_p5, %p9451_p4 }
 0x1aa   :  { %9459 = shalt.err (!%p9456_p6)
}
 0x1ab   :  { %s9460_s2 = scalar_lea.vmem %s265_s17, 16  ;;  %s9464_s8 = scalar_lea.vmem %s265_s17, 32 }
 0x1ac   :  { %p9461_p7 = scmp.ne.s32.totalorder %s265_s17, %s9460_s2  ;;  %p9465_p8 = scmp.lt.s32.totalorder %s265_s17, %s265_s17 }
 0x1ad   :  { %p9466_p9 = scmp.lt.s32.totalorder %s9464_s8, %s9460_s2 }
 0x1af   :  { %p9467_p10 = por %p9466_p9, %p9465_p8 }
 0x1b1   :  { %p9468_p11 = pnand %p9467_p10, %p9461_p7 }
 0x1b3   :  { %9471 = shalt.err (!%p9468_p11)
}
 0x1b4   :  { %s11318_s6 = sld [smem:[#allocation75_spill]]  ;;  %s9721_s7 = smov [#allocation24]  }
 0x1b5   :  { %267 = dma.hbm_to_vmem [thread:$0]  %s11317_s1, 16, %s265_s17, [#allocation20]  }
 0x1b6   :  { %s288_s10 = sshll.u32 %s9721_s7, 4  ;;  %s9722_s11 = smov [#allocation27]   ;;  %s289_s10 = int_to_ptr.vmem [resolvable:$true] %s288_s10 }
 0x1b7   :  { %s310_s19 = sshll.u32 %s9722_s11, 4  ;;  %s311_s19 = int_to_ptr.vmem [resolvable:$true] %s310_s19 }
 0x1ba   :  { %s9472_s14 = scalar_lea.hbm %s11318_s6, 16 }
 0x1bb   :  { %p9473_p12 = scmp.ne.s32.totalorder %s11318_s6, %s9472_s14  ;;  %p9476_p13 = scmp.lt.u32.totalorder %s9472_s14, %s11318_s6 }
 0x1bd   :  { %p9478_p0 = pnand %p9476_p13, %p9473_p12 }
 0x1bf   :  { %9481 = shalt.err (!%p9478_p0)
}
 0x1c0   :  { %s9482_s9 = scalar_lea.vmem %s289_s10, 16  ;;  %s9486_s15 = scalar_lea.vmem %s289_s10, 32 }
 0x1c1   :  { %p9483_p1 = scmp.ne.s32.totalorder %s289_s10, %s9482_s9  ;;  %p9487_p2 = scmp.lt.s32.totalorder %s289_s10, %s289_s10 }
 0x1c2   :  { %p9488_p3 = scmp.lt.s32.totalorder %s9486_s15, %s9482_s9 }
 0x1c4   :  { %p9489_p4 = por %p9488_p3, %p9487_p2 }
 0x1c6   :  { %p9490_p5 = pnand %p9489_p4, %p9483_p1 }
 0x1c8   :  { %9493 = shalt.err (!%p9490_p5)
}
 0x1c9   :  { %s11319_s27 = sld [smem:[#allocation77_spill]] }
 0x1ca   :  { %291 = dma.hbm_to_vmem [thread:$0]  %s11318_s6, 16, %s289_s10, [#allocation23]  }
 0x1cf   :  { %s9494_s5 = scalar_lea.hbm %s11319_s27, 16 }
 0x1d0   :  { %p9495_p6 = scmp.ne.s32.totalorder %s11319_s27, %s9494_s5  ;;  %p9498_p7 = scmp.lt.u32.totalorder %s9494_s5, %s11319_s27 }
 0x1d2   :  { %p9500_p8 = pnand %p9498_p7, %p9495_p6 }
 0x1d4   :  { %9503 = shalt.err (!%p9500_p8)
}
 0x1d5   :  { %s9504_s0 = scalar_lea.vmem %s311_s19, 16  ;;  %s9508_s24 = scalar_lea.vmem %s311_s19, 32 }
 0x1d6   :  { %p9505_p9 = scmp.ne.s32.totalorder %s311_s19, %s9504_s0  ;;  %p9509_p10 = scmp.lt.s32.totalorder %s311_s19, %s311_s19 }
 0x1d7   :  { %p9510_p11 = scmp.lt.s32.totalorder %s9508_s24, %s9504_s0 }
 0x1d9   :  { %p9511_p12 = por %p9510_p11, %p9509_p10 }
 0x1db   :  { %p9512_p13 = pnand %p9511_p12, %p9505_p9 }
 0x1dd   :  { %9515 = shalt.err (!%p9512_p13)
}
 0x1de   :  { %s11320_s21 = sld [smem:[#allocation79_spill]]  ;;  %s9723_s16 = smov [#allocation30]  }
 0x1df   :  { %313 = dma.hbm_to_vmem [thread:$0]  %s11319_s27, 16, %s311_s19, [#allocation26]  }
 0x1e0   :  { %s332_s18 = sshll.u32 %s9723_s16, 4  ;;  %s9724_s22 = smov [#allocation33]   ;;  %s333_s18 = int_to_ptr.vmem [resolvable:$true] %s332_s18 }
 0x1e1   :  { %s352_s12 = sshll.u32 %s9724_s22, 4  ;;  %s353_s12 = int_to_ptr.vmem [resolvable:$true] %s352_s12 }
 0x1e4   :  { %s9516_s23 = scalar_lea.hbm %s11320_s21, 16 }
 0x1e5   :  { %p9517_p0 = scmp.ne.s32.totalorder %s11320_s21, %s9516_s23  ;;  %p9520_p1 = scmp.lt.u32.totalorder %s9516_s23, %s11320_s21 }
 0x1e7   :  { %p9522_p2 = pnand %p9520_p1, %p9517_p0 }
 0x1e9   :  { %9525 = shalt.err (!%p9522_p2)
}
 0x1ea   :  { %s9526_s26 = scalar_lea.vmem %s333_s18, 16  ;;  %s9530_s17 = scalar_lea.vmem %s333_s18, 32 }
 0x1eb   :  { %p9527_p3 = scmp.ne.s32.totalorder %s333_s18, %s9526_s26  ;;  %p9531_p4 = scmp.lt.s32.totalorder %s333_s18, %s333_s18 }
 0x1ec   :  { %p9532_p5 = scmp.lt.s32.totalorder %s9530_s17, %s9526_s26 }
 0x1ee   :  { %p9533_p6 = por %p9532_p5, %p9531_p4 }
 0x1f0   :  { %p9534_p7 = pnand %p9533_p6, %p9527_p3 }
 0x1f2   :  { %9537 = shalt.err (!%p9534_p7)
}
 0x1f3   :  { %s11321_s28 = sld [smem:[#allocation80_spill]] }
 0x1f4   :  { %335 = dma.hbm_to_vmem [thread:$0]  %s11320_s21, 16, %s333_s18, [#allocation29]  }
 0x1f9   :  { %s9538_s3 = scalar_lea.hbm %s11321_s28, 16 }
 0x1fa   :  { %p9539_p8 = scmp.ne.s32.totalorder %s11321_s28, %s9538_s3  ;;  %p9542_p9 = scmp.lt.u32.totalorder %s9538_s3, %s11321_s28 }
 0x1fc   :  { %p9544_p10 = pnand %p9542_p9, %p9539_p8 }
 0x1fe   :  { %9547 = shalt.err (!%p9544_p10)
}
 0x1ff   :  { %s9548_s20 = scalar_lea.vmem %s353_s12, 16  ;;  %s9552_s1 = scalar_lea.vmem %s353_s12, 32 }
 0x200   :  { %p9549_p11 = scmp.ne.s32.totalorder %s353_s12, %s9548_s20  ;;  %p9553_p12 = scmp.lt.s32.totalorder %s353_s12, %s353_s12 }
 0x201   :  { %p9554_p13 = scmp.lt.s32.totalorder %s9552_s1, %s9548_s20 }
 0x203   :  { %p9555_p0 = por %p9554_p13, %p9553_p12 }
 0x205   :  { %p9556_p1 = pnand %p9555_p0, %p9549_p11 }
 0x207   :  { %9559 = shalt.err (!%p9556_p1)
}
 0x208   :  { %s11322_s29 = sld [smem:[#allocation84_spill]]  ;;  %s9725_s2 = smov [#allocation36]  }
 0x209   :  { %355 = dma.hbm_to_vmem [thread:$0]  %s11321_s28, 16, %s353_s12, [#allocation32]  }
 0x20a   :  { %s378_s8 = sshll.u32 %s9725_s2, 4  ;;  %s9726_s6 = smov [#allocation39]   ;;  %s379_s8 = int_to_ptr.vmem [resolvable:$true] %s378_s8 }
 0x20b   :  { %s398_s7 = sshll.u32 %s9726_s6, 4  ;;  %s399_s7 = int_to_ptr.vmem [resolvable:$true] %s398_s7 }
 0x20e   :  { %s9560_s10 = scalar_lea.hbm %s11322_s29, 16 }
 0x20f   :  { %p9561_p2 = scmp.ne.s32.totalorder %s11322_s29, %s9560_s10  ;;  %p9564_p3 = scmp.lt.u32.totalorder %s9560_s10, %s11322_s29 }
 0x211   :  { %p9566_p4 = pnand %p9564_p3, %p9561_p2 }
 0x213   :  { %9569 = shalt.err (!%p9566_p4)
}
 0x214   :  { %s9570_s11 = scalar_lea.vmem %s379_s8, 16  ;;  %s9574_s19 = scalar_lea.vmem %s379_s8, 32 }
 0x215   :  { %p9571_p5 = scmp.ne.s32.totalorder %s379_s8, %s9570_s11  ;;  %p9575_p6 = scmp.lt.s32.totalorder %s379_s8, %s379_s8 }
 0x216   :  { %p9576_p7 = scmp.lt.s32.totalorder %s9574_s19, %s9570_s11 }
 0x218   :  { %p9577_p8 = por %p9576_p7, %p9575_p6 }
 0x21a   :  { %p9578_p9 = pnand %p9577_p8, %p9571_p5 }
 0x21c   :  { %9581 = shalt.err (!%p9578_p9)
}
 0x21d   :  { %381 = dma.hbm_to_vmem [thread:$0]  %s11322_s29, 16, %s379_s8, [#allocation35]  }
 0x21e   :  { %s9582_s14 = scalar_lea.hbm %s9952_s4, 16 }
 0x21f   :  { %p9583_p10 = scmp.ne.s32.totalorder %s9952_s4, %s9582_s14  ;;  %p9586_p11 = scmp.lt.u32.totalorder %s9582_s14, %s9952_s4 }
 0x221   :  { %p9588_p12 = pnand %p9586_p11, %p9583_p10 }
 0x223   :  { %9591 = shalt.err (!%p9588_p12)
}
 0x224   :  { %s9592_s9 = scalar_lea.vmem %s399_s7, 16  ;;  %s9596_s15 = scalar_lea.vmem %s399_s7, 32 }
 0x225   :  { %p9593_p13 = scmp.ne.s32.totalorder %s399_s7, %s9592_s9  ;;  %p9597_p0 = scmp.lt.s32.totalorder %s399_s7, %s399_s7 }
 0x226   :  { %p9598_p1 = scmp.lt.s32.totalorder %s9596_s15, %s9592_s9 }
 0x228   :  { %p9599_p2 = por %p9598_p1, %p9597_p0 }
 0x22a   :  { %p9600_p3 = pnand %p9599_p2, %p9593_p13 }
 0x22c   :  { %9603 = shalt.err (!%p9600_p3)
}
 0x22d   :  { %401 = dma.hbm_to_vmem [thread:$0]  %s9952_s4, 16, %s399_s7, [#allocation38]  }
 0x22e   :  { %s9727_s27 = smov [#allocation40]   ;;  %s9604_s0 = scalar_lea.hbm %s9962_s25, 16 }
 0x22f   :  { %s410_s5 = sshll.u32 %s9727_s27, 4  ;;  %p9605_p4 = scmp.ne.s32.totalorder %s9962_s25, %s9604_s0  ;;  %s411_s5 = int_to_ptr.vmem [resolvable:$true] %s410_s5 }
 0x230   :  { %p9608_p5 = scmp.lt.u32.totalorder %s9604_s0, %s9962_s25 }
 0x232   :  { %p9610_p6 = pnand %p9608_p5, %p9605_p4 }
 0x234   :  { %9613 = shalt.err (!%p9610_p6)
}
 0x235   :  { %s9614_s24 = scalar_lea.vmem %s411_s5, 16  ;;  %s9618_s21 = scalar_lea.vmem %s411_s5, 32 }
 0x236   :  { %p9615_p7 = scmp.ne.s32.totalorder %s411_s5, %s9614_s24  ;;  %p9619_p8 = scmp.lt.s32.totalorder %s411_s5, %s411_s5 }
 0x237   :  { %p9620_p9 = scmp.lt.s32.totalorder %s9618_s21, %s9614_s24 }
 0x239   :  { %p9621_p10 = por %p9620_p9, %p9619_p8 }
 0x23b   :  { %p9622_p11 = pnand %p9621_p10, %p9615_p7 }
 0x23d   :  { %9625 = shalt.err (!%p9622_p11)
}
 0x23e   :  { %413 = dma.hbm_to_vmem [thread:$0]  %s9962_s25, 16, %s411_s5, [#allocation41]  }
 0x23f   :  { %9626 = dma.done.wait [#allocation3], 16  }
 0x240   :  { %9627 = vsyncadd [#allocation3], 4294967280 }
 0x241   :  { %9628 = dma.done.wait [#allocation5], 208  }
 0x242   :  { %9629 = vsyncadd [#allocation5], 4294967088 }
 0x243   :  { %9630 = dma.done.wait [#allocation8], 32  }
 0x244   :  { %9631 = vsyncadd [#allocation8], 4294967264 }
 0x245   :  { %9632 = dma.done.wait [#allocation11], 32  }
 0x246   :  { %9633 = vsyncadd [#allocation11], 4294967264 }
 0x247   :  { %9634 = dma.done.wait [#allocation14], 32  }
 0x248   :  { %9635 = vsyncadd [#allocation14], 4294967264 }
 0x249   :  { %9636 = dma.done.wait [#allocation17], 80  }
 0x24a   :  { %9637 = vsyncadd [#allocation17], 4294967216 }
 0x24b   :  { %9638 = dma.done.wait [#allocation20], 32  }
 0x24c   :  { %9639 = vsyncadd [#allocation20], 4294967264 }
 0x24d   :  { %9640 = dma.done.wait [#allocation23], 32  }
 0x24e   :  { %9641 = vsyncadd [#allocation23], 4294967264 }
 0x24f   :  { %9642 = dma.done.wait [#allocation26], 32  }
 0x250   :  { %9643 = vsyncadd [#allocation26], 4294967264 }
 0x251   :  { %9644 = dma.done.wait [#allocation29], 32  }
 0x252   :  { %9645 = vsyncadd [#allocation29], 4294967264 }
 0x253   :  { %9646 = dma.done.wait [#allocation32], 32  }
 0x254   :  { %9647 = vsyncadd [#allocation32], 4294967264 }
 0x255   :  { %9648 = dma.done.wait [#allocation35], 32  }
 0x256   :  { %9649 = vsyncadd [#allocation35], 4294967264 }
 0x257   :  { %9650 = dma.done.wait [#allocation38], 32  }
 0x258   :  { %9651 = vsyncadd [#allocation38], 4294967264 }
 0x259   :  { %9652 = dma.done.wait [#allocation41], 16  }
 0x25a   :  { %9653 = vsyncadd [#allocation41], 4294967280  ;;  %s11323_s25 = sld [smem:[#allocation61_spill]]  ;;  %s11324_s4 = sld [smem:[#allocation57_spill]]  ;;  %vm515_vm0 = vcmask 261120   ;;  %vm1036_vm1 = vcmask 1043456   ;;  %v933_v8 = vlaneseq }
 0x25b   :  { %s11325_s16 = sld [smem:[#allocation56_spill]]  ;;  %v1022_v7 = vld [vmem:[#allocation4 + $0x4] sm:$0xf]  ;;  %v1020_v11 = vld [vmem:[#allocation4] sm:$0xf]  ;;  %vm1023_vm2 = vcmask 31744  }
 0x25c   :  { %v10082_v12 = vshrl.u32 %v933_v8, 7  ;;  %v1226_v25 = vld [vmem:[#allocation4 + $0x8] sm:$0xf]  ;;  %s11330_s18 = sld [smem:[#allocation63_spill]]  ;;  %s11335_s22 = sld [smem:[#allocation59_spill]] }
 0x25d   :  { %s11336_s12 = sld [smem:[#allocation60_spill]]  ;;  %s11337_s23 = sld [smem:[#allocation62_spill]] }
 0x25e   :  { %v942_v18 = vand.u32 15, %v10082_v12  ;;  %v936_v19 = vadd.s32 16, %v10082_v12  ;;  %vm994_vm3 = vcmp.lt.s32.totalorder %v10082_v12, 1  ;;  %v935_v28 = vadd.s32 8, %v10082_v12  ;;  %s11338_s26 = sld [smem:[#allocation58_spill]]  ;;  %s11352_s28 = sld [smem:[#allocation65_spill]] }
 0x25f   :  { %v937_v34 = vadd.s32 24, %v10082_v12  ;;  %vm1011_vm6 = vcmp.lt.s32.totalorder %v10082_v12, 7  ;;  %s11349_s17 = sld [smem:[#allocation66_spill]]  ;;  %s11355_s3 = sld [smem:[#allocation67_spill]] }
 0x260   :  { %v504_v0 = vld [vmem:[%s11323_s25] sm:$0xff]  ;;  %v505_v1 = vld [vmem:[%s11323_s25 + $0x8] sm:$0xff]  ;;  %v506_v2 = vld [vmem:[%s11323_s25 + $0x10] sm:$0xff]  ;;  %vm10098_vm4 = vcmp.eq.s32.totalorder %v942_v18, 0  ;;  %v956_v26 = vand.u32 15, %v936_v19  ;;  %v949_v33 = vand.u32 15, %v935_v28 }
 0x261   :  { %v8239_v3 = vpack.c.bf16 %v505_v1, %v504_v0  ;;  %v507_v4 = vld [vmem:[%s11323_s25 + $0x18] sm:$0xff]  ;;  %v500_v5 = vld [vmem:[%s11324_s4] sm:$0xff]  ;;  %v501_v9 = vld [vmem:[%s11324_s4 + $0x8] sm:$0xff]  ;;  %v963_v40 = vand.u32 15, %v937_v34  ;;  %s9728_s20 = smov 96   ;;  %s11356_s1 = sld [smem:[#allocation71_spill]] }
 0x262   :  { %v8243_v6 = vpack.c.bf16 %v507_v4, %v506_v2  ;;  %7531 = vmatprep.mubr.msk.f32.mxu0 %vm515_vm0, %v500_v5  ;;  %v502_v10 = vld [vmem:[%s11324_s4 + $0x10] sm:$0xff]  ;;  %v932_v13 = vld [vmem:[%s11325_s16 + $0x18] sm:$0xff]  ;;  %v929_v15 = vld [vmem:[%s11325_s16] sm:$0xff]  ;;  %vm10111_vm5 = vcmp.eq.s32.totalorder %v956_v26, 0  ;;  %vm10132_vm7 = vcmp.eq.s32.totalorder %v949_v33, 15  ;;  %s11357_s29 = sld [smem:[#allocation74_spill]] }
 0x263   :  { %8240 = vmatprep.subr.bf16.mxu0 %v8239_v3  ;;  %v503_v14 = vld [vmem:[%s11324_s4 + $0x18] sm:$0xff]  ;;  %v990_v16 = vrot.slane %v929_v15, 7  ;;  %v993_v17 = vrot.slane %v932_v13, 7  ;;  %v930_v20 = vld [vmem:[%s11325_s16 + $0x8] sm:$0xff]  ;;  %v931_v21 = vld [vmem:[%s11325_s16 + $0x10] sm:$0xff]  ;;  %v1007_v35 = vrot.slane %v929_v15, 1 }
 0x264   :  { %8242 = vmatpush3.bf16.msra.mxu0 %v8239_v3  ;;  %v992_v22 = vrot.slane %v931_v21, 7  ;;  %v991_v27 = vrot.slane %v930_v20, 7  ;;  %v1009_v36 = vrot.slane %v931_v21, 1  ;;  %v1008_v38 = vrot.slane %v930_v20, 1  ;;  %v681_v50 = vld [vmem:[%s11330_s18] sm:$0xff]  ;;  %v682_v51 = vld [vmem:[%s11330_s18 + $0x8] sm:$0xff] }
 0x265   :  { %8244 = vmatprep.subr.bf16.mxu0 %v8243_v6  ;;  %v998_v24 = vsel %vm994_vm3, %v993_v17, %v990_v16  ;;  %v1010_v41 = vrot.slane %v932_v13, 1  ;;  %vm10144_vm8 = vcmp.eq.s32.totalorder %v963_v40, 15  ;;  %v8247_v52 = vpack.c.bf16 %v682_v51, %v681_v50  ;;  %v683_v53 = vld [vmem:[%s11330_s18 + $0x10] sm:$0xff]  ;;  %v684_v54 = vld [vmem:[%s11330_s18 + $0x18] sm:$0xff]  ;;  %v685_v56 = vld [vmem:[%s11330_s18 + $0x20] sm:$0xff]  ;;  %s11358_s2 = sld [smem:[#allocation73_spill]] }
 0x266   :  { %v999_v29 = vsel %vm10098_vm4, 0.0, %v998_v24  ;;  %v996_v31 = vsel %vm994_vm3, %v991_v27, %v992_v22  ;;  %v997_v32 = vsel %vm994_vm3, %v990_v16, %v991_v27  ;;  %v995_v39 = vsel %vm994_vm3, %v992_v22, %v993_v17  ;;  %v686_v57 = vld [vmem:[%s11330_s18 + $0x28] sm:$0xff]  ;;  %v687_v59 = vld [vmem:[%s11330_s18 + $0x30] sm:$0xff]  ;;  %v688_v60 = vld [vmem:[%s11330_s18 + $0x38] sm:$0xff]  ;;  %s11359_s8 = sld [smem:[#allocation76_spill]]  ;;  %s11360_s6 = sld [smem:[#allocation78_spill]] }
 0x267   :  { %v1001_v37 = vsel %vm10111_vm5, 0.0, %v996_v31  ;;  %v1014_v42 = vsel %vm1011_vm6, %v1007_v35, %v1008_v38  ;;  %v1013_v44 = vsel %vm1011_vm6, %v1008_v38, %v1009_v36  ;;  %v1012_v46 = vsel %vm1011_vm6, %v1009_v36, %v1010_v41  ;;  %8248 = vmatprep.subr.bf16.mxu1 %v8247_v52  ;;  %v689_v62 = vld [vmem:[%s11330_s18 + $0x40] sm:$0xff]  ;;  %v690_v63 = vld [vmem:[%s11330_s18 + $0x48] sm:$0xff]  ;;  %v691_v2 = vld [vmem:[%s11330_s18 + $0x50] sm:$0xff]  ;;  %s11361_s7 = sld [smem:[#allocation82_spill]]  ;;  %s11362_s10 = sld [smem:[#allocation81_spill]] }
 0x268   :  { %8246 = vmatpush3.bf16.msra.mxu0 %v8243_v6  ;;  %v1017_v45 = vsel %vm10132_vm7, 0.0, %v1013_v44  ;;  %v1015_v48 = vsel %vm1011_vm6, %v1010_v41, %v1007_v35  ;;  %8250 = vmatpush3.bf16.msra.mxu1 %v8247_v52  ;;  %v8251_v55 = vpack.c.bf16 %v684_v54, %v683_v53  ;;  %v8255_v58 = vpack.c.bf16 %v686_v57, %v685_v56  ;;  %v10166_v1 = vld [vmem:[%s11335_s22] sm:$0xff]  ;;  %v692_v3 = vld [vmem:[%s11330_s18 + $0x58] sm:$0xff]  ;;  %v694_v6 = vld [vmem:[%s11330_s18 + $0x68] sm:$0xff]  ;;  %s11363_s11 = sld [smem:[#allocation83_spill]] }
 0x269   :  { %7575 = vmatprep.subr.msk.mxu0 %vm1036_vm1, %v1022_v7  ;;  %v1019_v49 = vsel %vm10144_vm8, 0.0, %v1015_v48  ;;  %v8259_v61 = vpack.c.bf16 %v688_v60, %v687_v59  ;;  %v8263_v0 = vpack.c.bf16 %v690_v63, %v689_v62  ;;  %v8267_v4 = vpack.c.bf16 %v692_v3, %v691_v2  ;;  %v693_v5 = vld [vmem:[%s11330_s18 + $0x60] sm:$0xff]  ;;  %v6861_v44 = vld [vmem:[#allocation6] ss:$0 sm:$0xff] }
 0x26a   :  { %8252 = vmatprep.subr.bf16.mxu1 %v8251_v55  ;;  %v8271_v8 = vpack.c.bf16 %v694_v6, %v693_v5  ;;  %v9050_v30 = vld [vmem:[%s11335_s22] sm:$0xff] }
 0x26b   :  { %7532 = vmatmul.mubr.msk.f32.vlgmr.msra.gmra.mrb[0].mxu0 %vm515_vm0, %v501_v9  ;;  %v696_v9 = vld [vmem:[%s11330_s18 + $0x78] sm:$0xff] }
 0x26c   :  { %7576 = vmatpush3.msk.msra.mxu0 %vm1036_vm1, %v1022_v7  ;;  %7534 = vmatprep.mubr.msk.f32.mxu0 %vm515_vm0, %v502_v10  ;;  %v695_v7 = vld [vmem:[%s11330_s18 + $0x70] sm:$0xff] }
 0x26d   :  { %7583 = vmatprep.subr.msk.mxu0 %vm1036_vm1, %v1020_v11  ;;  %8254 = vmatpush3.bf16.msra.mxu1 %v8251_v55  ;;  %v8275_v10 = vpack.c.bf16 %v696_v9, %v695_v7 }
 0x26e   :  { %8256 = vmatprep.subr.bf16.mxu1 %v8255_v58 }
 0x26f   :  { %7535 = vmatmul.mubr.msk.f32.gmra.mrb[2].mxu0 %vm515_vm0, %v503_v14 }
 0x270   :  { %7577 = vmatprep.mubr.msk.f32.mxu0 %vm1023_vm2, %v929_v15  ;;  %v6840_v15 = vld [vmem:[%s11337_s23] ss:$0 sm:$0xff] }
 0x271   :  { %8258 = vmatpush3.bf16.msra.mxu1 %v8255_v58 }
 0x272   :  { %8260 = vmatprep.subr.bf16.mxu1 %v8259_v61 }
 0x273   :  { %7578 = vmatmul.mubr.msk.f32.vlgmr.msra.gmra.mrb[4].mxu0 %vm1023_vm2, %v930_v20 }
 0x274   :  { %7584 = vmatpush3.msk.msra.mxu0 %vm1036_vm1, %v1020_v11  ;;  %7580 = vmatprep.mubr.msk.f32.mxu0 %vm1023_vm2, %v931_v21  ;;  %v496_v11 = vld [vmem:[%s11336_s12] sm:$0xff] }
 0x275   :  { %7591 = vmatprep.subr.msk.mxu0 %vm1036_vm1, %v1226_v25  ;;  %8262 = vmatpush3.bf16.msra.mxu1 %v8259_v61 }
 0x276   :  { %8264 = vmatprep.subr.bf16.mxu1 %v8263_v0 }
 0x277   :  { %7581 = vmatmul.mubr.msk.f32.gmra.mrb[6].mxu0 %vm1023_vm2, %v932_v13  ;;  %v497_v13 = vld [vmem:[%s11336_s12 + $0x8] sm:$0xff] }
 0x278   :  { %7585 = vmatprep.mubr.msk.f32.mxu0 %vm1023_vm2, %v999_v29  ;;  %v10178_v14 = vpack.c.bf16 %v497_v13, %v496_v11 }
 0x279   :  { %8266 = vmatpush3.bf16.msra.mxu1 %v8263_v0 }
 0x27a   :  { %8268 = vmatprep.subr.bf16.mxu1 %v8267_v4 }
 0x27b   :  { %7586 = vmatmul.mubr.msk.f32.vlgmr.msra.gmra.mrb[4].mxu0 %vm1023_vm2, %v997_v32 }
 0x27c   :  { %7592 = vmatpush3.msk.msra.mxu0 %vm1036_vm1, %v1226_v25  ;;  %7588 = vmatprep.mubr.msk.f32.mxu0 %vm1023_vm2, %v1001_v37 }
 0x27d   :  { %8270 = vmatpush3.bf16.msra.mxu1 %v8267_v4 }
 0x27e   :  { %8272 = vmatprep.subr.bf16.mxu1 %v8271_v8 }
 0x27f   :  { %7589 = vmatmul.mubr.msk.f32.gmra.mrb[6].mxu0 %vm1023_vm2, %v995_v39 }
 0x280   :  { %7593 = vmatprep.mubr.msk.f32.mxu0 %vm1023_vm2, %v1014_v42 }
 0x281   :  { %8274 = vmatpush3.bf16.msra.mxu1 %v8271_v8 }
 0x282   :  { %8276 = vmatprep.subr.bf16.mxu1 %v8275_v10 }
 0x283   :  { %7594 = vmatmul.mubr.msk.f32.vlgmr.msra.gmra.mrb[4].mxu0 %vm1023_vm2, %v1017_v45 }
 0x284   :  { %7596 = vmatprep.mubr.msk.f32.mxu0 %vm1023_vm2, %v1012_v46 }
 0x285   :  { %8278 = vmatpush3.bf16.msra.mxu1 %v8275_v10 }
 0x286   :  { %8288 = vmatprep.subr.bf16.mxu1 %v10178_v14 }
 0x287   :  { %7597 = vmatmul.mubr.msk.f32.gmra.mrb[6].mxu0 %vm1023_vm2, %v1019_v49 }
 0x288   :  { %7607 = vmatprep.mubr.msk.f32.mxu0 %vm515_vm0, %v10166_v1 }
 0x33e   :  { %v7533_v16 = vpop.f32.mrb[0].mxu0 }
 0x33f   :  { %v10182_v17 = vadd.f32 %v7533_v16, %v6840_v15  ;;  %v594_v18 = vpop.f32.mrb[1].mxu0 }
 0x340   :  { %v10184_v19 = vadd.f32 %v6840_v15, %v594_v18 }
 0x341   :  { %v618_v20 = vand.u32 2147483647, %v10182_v17  ;;  %v614_v4 = vmax.f32 %v10182_v17, 0.0 }
 0x342   :  { %v617_v21 = vand.u32 2147483647, %v10184_v19  ;;  %v7536_v22 = vpop.f32.mrb[2].mxu0  ;;  %v613_v18 = vmax.f32 %v10184_v19, 0.0 }
 0x343   :  { %v622_v24 = vsub.f32 0.0, %v618_v20  ;;  %v10188_v25 = vadd.f32 %v7536_v22, %v6840_v15  ;;  %v604_v26 = vpop.f32.mrb[3].mxu0 }
 0x344   :  { %v621_v27 = vsub.f32 0.0, %v617_v21  ;;  %v10190_v28 = vadd.f32 %v6840_v15, %v604_v26  ;;  %v10209_v26 = vld [vmem:[%s11335_s22 + $0x8] sm:$0xff] }
 0x345   :  { %v627_v29 = vmul.f32 1.442695, %v622_v24  ;;  %v620_v31 = vand.u32 2147483647, %v10188_v25 }
 0x346   :  { %v625_v32 = vmul.f32 1.442695, %v621_v27  ;;  %v619_v33 = vand.u32 2147483647, %v10190_v28 }
 0x347   :  { %8774 = vpow2.f32 %v627_v29  ;;  %v624_v34 = vsub.f32 0.0, %v620_v31  ;;  %v616_v31 = vmax.f32 %v10188_v25, 0.0 }
 0x348   :  { %8776 = vpow2.f32 %v625_v32  ;;  %v623_v35 = vsub.f32 0.0, %v619_v33 }
 0x349   :  { %v631_v36 = vmul.f32 1.442695, %v624_v34  ;;  %v10213_v34 = vld [vmem:[%s11335_s22 + $0x10] sm:$0xff] }
 0x34a   :  { %v629_v37 = vmul.f32 1.442695, %v623_v35 }
 0x34b   :  { %8778 = vpow2.f32 %v631_v36 }
 0x34c   :  { %8780 = vpow2.f32 %v629_v37 }
 0x351   :  { %v8775_v38 = vpop.eup %8774 }
 0x352   :  { %v8777_v39 = vpop.eup %8776  ;;  %v642_v40 = vadd.f32 1.0, %v8775_v38  ;;  %v645_v49 = vmul.f32 -0.5, %v8775_v38  ;;  %v648_v55 = vand.u32 2147483647, %v8775_v38 }
 0x353   :  { %v633_v41 = vadd.f32 1.0, %v8777_v39  ;;  %v636_v52 = vmul.f32 -0.5, %v8777_v39  ;;  %v639_v2 = vand.u32 2147483647, %v8777_v39 }
 0x354   :  { %8782 = vlog2.f32 %v642_v40  ;;  %v646_v57 = vadd.f32 1.0, %v645_v49  ;;  %vm649_vm9 = vcmp.lt.f32.partialorder %v648_v55, 0.0004427343 }
 0x355   :  { %v8779_v42 = vpop.eup %8778  ;;  %8784 = vlog2.f32 %v633_v41  ;;  %v637_v62 = vadd.f32 1.0, %v636_v52  ;;  %vm640_vm10 = vcmp.lt.f32.partialorder %v639_v2, 0.0004427343  ;;  %v10221_v41 = vld [vmem:[%s11335_s22 + $0x18] sm:$0xff] }
 0x356   :  { %v8781_v45 = vpop.eup %8780  ;;  %v660_v46 = vadd.f32 1.0, %v8779_v42  ;;  %v7595_v48 = vpop.f32.mrb[4].mxu0  ;;  %v663_v58 = vmul.f32 -0.5, %v8779_v42  ;;  %v647_v8 = vmul.f32 %v8775_v38, %v646_v57  ;;  %v666_v13 = vand.u32 2147483647, %v8779_v42 }
 0x357   :  { %v651_v50 = vadd.f32 1.0, %v8781_v45  ;;  %v1308_v51 = vpop.f32.mrb[5].mxu0  ;;  %v10194_v53 = vadd.f32 %v7595_v48, %v6861_v44  ;;  %v654_v63 = vmul.f32 -0.5, %v8781_v45  ;;  %v638_v11 = vmul.f32 %v8777_v39, %v637_v62 }
 0x358   :  { %8786 = vlog2.f32 %v660_v46  ;;  %v10196_v54 = vadd.f32 %v6861_v44, %v1308_v51  ;;  %v664_v9 = vadd.f32 1.0, %v663_v58  ;;  %v657_v20 = vand.u32 2147483647, %v8781_v45  ;;  %v499_v46 = vld [vmem:[%s11336_s12 + $0x18] sm:$0xff] }
 0x359   :  { %8788 = vlog2.f32 %v651_v50  ;;  %v655_v15 = vadd.f32 1.0, %v654_v63  ;;  %vm667_vm11 = vcmp.lt.f32.partialorder %v666_v13, 0.0004427343  ;;  %v615_v38 = vmax.f32 %v10190_v28, 0.0  ;;  %v10247_v63 = vld [vmem:[%s11338_s26] sm:$0xff] }
 0x35a   :  { %v7598_v56 = vpop.f32.mrb[6].mxu0  ;;  %v8279_v59 = vpack.c.bf16 %v10194_v53, %v10196_v54  ;;  %v665_v33 = vmul.f32 %v8779_v42, %v664_v9  ;;  %vm658_vm12 = vcmp.lt.f32.partialorder %v657_v20, 0.0004427343  ;;  %v865_v2 = vand.u32 2147483647, %v10247_v63  ;;  %v10259_v9 = vld [vmem:[%s11338_s26 + $0x18] sm:$0xff] }
 0x35b   :  { %v10200_v60 = vadd.f32 %v7598_v56, %v6861_v44  ;;  %v1318_v61 = vpop.f32.mrb[7].mxu0  ;;  %v656_v36 = vmul.f32 %v8781_v45, %v655_v15  ;;  %v498_v45 = vld [vmem:[%s11336_s12 + $0x10] sm:$0xff] }
 0x35c   :  { %v10202_v0 = vadd.f32 %v6861_v44, %v1318_v61  ;;  %8280 = vmatprep.subr.bf16.mxu0 %v8279_v59  ;;  %v10231_v51 = vpack.c.bf16 %v499_v46, %v498_v45 }
 0x35d   :  { %8282 = vmatpush3.bf16.msra.mxu0 %v8279_v59 }
 0x35e   :  { %v8783_v3 = vpop.eup %8782  ;;  %v8283_v5 = vpack.c.bf16 %v10200_v60, %v10202_v0 }
 0x35f   :  { %v8785_v6 = vpop.eup %8784  ;;  %v644_v7 = vmul.f32 0.6931472, %v8783_v3  ;;  %v10251_v3 = vld [vmem:[%s11338_s26 + $0x8] sm:$0xff] }
 0x360   :  { %v635_v10 = vmul.f32 0.6931472, %v8785_v6  ;;  %8284 = vmatprep.subr.bf16.mxu0 %v8283_v5  ;;  %v869_v6 = vsub.f32 0.0, %v865_v2 }
 0x361   :  { %v650_v16 = vsel %vm649_vm9, %v647_v8, %v644_v7  ;;  %8286 = vmatpush3.bf16.msra.mxu0 %v8283_v5  ;;  %v6845_v5 = vld [vmem:[#allocation2] ss:$0 sm:$0xff]  ;;  %v866_v7 = vand.u32 2147483647, %v10251_v3 }
 0x362   :  { %v8787_v21 = vpop.eup %8786  ;;  %v670_v22 = vadd.f32 %v650_v16, %v614_v4  ;;  %v641_v24 = vsel %vm640_vm10, %v638_v11, %v635_v10  ;;  %v10254_v4 = vld [vmem:[%s11338_s26 + $0x10] sm:$0xff]  ;;  %v873_v13 = vmul.f32 1.442695, %v869_v6  ;;  %v868_v16 = vand.u32 2147483647, %v10259_v9 }
 0x363   :  { %v8789_v27 = vpop.eup %8788  ;;  %v669_v29 = vadd.f32 %v641_v24, %v613_v18  ;;  %v662_v32 = vmul.f32 0.6931472, %v8787_v21  ;;  %v867_v8 = vand.u32 2147483647, %v10254_v4  ;;  %v870_v15 = vsub.f32 0.0, %v866_v7 }
 0x364   :  { %8790 = vtanh.f32 %v670_v22  ;;  %v653_v35 = vmul.f32 0.6931472, %v8789_v27  ;;  %7608 = vmatmul.mubr.msk.f32.vlgmr.msra.gmra.mrb[8].mxu0 %vm515_vm0, %v10209_v26 }
 0x365   :  { %8792 = vtanh.f32 %v669_v29  ;;  %v668_v37 = vsel %vm667_vm11, %v665_v33, %v662_v32  ;;  %7610 = vmatprep.mubr.msk.f32.mxu0 %vm515_vm0, %v10213_v34  ;;  %v871_v18 = vsub.f32 0.0, %v867_v8  ;;  %v875_v27 = vmul.f32 1.442695, %v870_v15 }
 0x366   :  { %v672_v39 = vadd.f32 %v668_v37, %v616_v31  ;;  %v659_v40 = vsel %vm658_vm12, %v656_v36, %v653_v35  ;;  %v872_v29 = vsub.f32 0.0, %v868_v16 }
 0x367   :  { %v671_v42 = vadd.f32 %v659_v40, %v615_v38  ;;  %v877_v31 = vmul.f32 1.442695, %v871_v18 }
 0x368   :  { %8794 = vtanh.f32 %v672_v39  ;;  %7611 = vmatmul.mubr.msk.f32.gmra.mrb[10].mxu0 %vm515_vm0, %v10221_v41  ;;  %v879_v37 = vmul.f32 1.442695, %v872_v29 }
 0x369   :  { %8796 = vtanh.f32 %v671_v42  ;;  %7635 = vmatprep.mubr.msk.f32.mxu0 %vm515_vm0, %v10166_v1 }
 0x36a   :  { %8798 = vpow2.f32 %v873_v13 }
 0x36b   :  { %8800 = vpow2.f32 %v875_v27 }
 0x36c   :  { %8802 = vpow2.f32 %v877_v31 }
 0x36d   :  { %8804 = vpow2.f32 %v879_v37 }
 0x36e   :  { %v8791_v44 = vpop.eup %8790 }
 0x36f   :  { %v8793_v48 = vpop.eup %8792  ;;  %v678_v50 = vmul.f32 %v8791_v44, %v10182_v17 }
 0x370   :  { %v677_v49 = vmul.f32 %v8793_v48, %v10184_v19 }
 0x372   :  { %v8795_v52 = vpop.eup %8794  ;;  %7569 = vmatprep.mubr.f32.mxu1 %v677_v49 }
 0x373   :  { %v8797_v55 = vpop.eup %8796  ;;  %7570 = vmatmul.mubr.f32.vlgmr.msra.gmra.mrb[0].mxu1 %v678_v50  ;;  %v680_v57 = vmul.f32 %v8795_v52, %v10188_v25 }
 0x374   :  { %v679_v56 = vmul.f32 %v8797_v55, %v10190_v28  ;;  %8290 = vmatpush3.bf16.msra.mxu1 %v10178_v14  ;;  %v8799_v44 = vpop.eup %8798 }
 0x375   :  { %8292 = vmatprep.subr.bf16.mxu1 %v10231_v51  ;;  %v881_v48 = vadd.f32 1.0, %v8799_v44  ;;  %v8801_v49 = vpop.eup %8800  ;;  %v887_v6 = vand.u32 2147483647, %v8799_v44 }
 0x376   :  { %7572 = vmatprep.mubr.f32.mxu1 %v679_v56  ;;  %v8803_v50 = vpop.eup %8802  ;;  %v890_v52 = vadd.f32 1.0, %v8801_v49  ;;  %v893_v2 = vmul.f32 -0.5, %v8801_v49  ;;  %v896_v29 = vand.u32 2147483647, %v8801_v49 }
 0x377   :  { %7573 = vmatmul.mubr.f32.gmra.mrb[2].mxu1 %v680_v57  ;;  %v10274_v55 = vpop.eup %8804  ;;  %v899_v56 = vadd.f32 1.0, %v8803_v50  ;;  %v902_v7 = vmul.f32 -0.5, %v8803_v50  ;;  %vm10290_vm13 = vcmp.lt.f32.partialorder %v887_v6, 0.0004427343 }
 0x378   :  { %8294 = vmatpush3.bf16.msra.mxu1 %v10231_v51  ;;  %v894_v18 = vadd.f32 1.0, %v893_v2  ;;  %vm10300_vm14 = vcmp.lt.f32.partialorder %v896_v29, 0.0004427343 }
 0x379   :  { %8304 = vmatprep.subr.bf16.mxu1 %v10178_v14  ;;  %v903_v31 = vadd.f32 1.0, %v902_v7  ;;  %v863_v7 = vmax.f32 %v10254_v4, 0.0 }
 0x437   :  { %v7609_v17 = vpop.f32.mrb[8].mxu0 }
 0x438   :  { %v1422_v19 = vpop.f32.mrb[9].mxu0 }
 0x439   :  { %7621 = vmatprep.mubr.msk.f32.mxu1 %vm515_vm0, %v1422_v19 }
 0x43a   :  { %7622 = vmatmul.mubr.msk.f32.vlgmr.msra.gmra.mrb[4].mxu1 %vm515_vm0, %v7609_v17  ;;  %v908_v17 = vadd.f32 1.0, %v10274_v55 }
 0x43b   :  { %v7612_v28 = vpop.f32.mrb[10].mxu0  ;;  %8306 = vmatpush3.bf16.msra.mxu1 %v10178_v14 }
 0x43c   :  { %v1432_v25 = vpop.f32.mrb[11].mxu0  ;;  %8308 = vmatprep.subr.bf16.mxu1 %v10231_v51 }
 0x43d   :  { %7624 = vmatprep.mubr.msk.f32.mxu1 %vm515_vm0, %v1432_v25 }
 0x43e   :  { %7625 = vmatmul.mubr.msk.f32.gmra.mrb[6].mxu1 %vm515_vm0, %v7612_v28  ;;  %v884_v28 = vmul.f32 -0.5, %v8799_v44 }
 0x43f   :  { %8310 = vmatpush3.bf16.msra.mxu1 %v10231_v51 }
 0x446   :  { %v7571_v58 = vpop.f32.mrb[0].mxu1 }
 0x447   :  { %v770_v59 = vpop.f32.mrb[1].mxu1  ;;  %v10263_v11 = vadd.f32 %v7571_v58, %v6845_v5 }
 0x448   :  { %v10261_v10 = vadd.f32 %v6845_v5, %v770_v59 }
 0x449   :  { %v794_v21 = vand.u32 2147483647, %v10263_v11 }
 0x44a   :  { %v7574_v61 = vpop.f32.mrb[2].mxu1  ;;  %v793_v20 = vand.u32 2147483647, %v10261_v10 }
 0x44b   :  { %v780_v62 = vpop.f32.mrb[3].mxu1  ;;  %v10270_v24 = vadd.f32 %v7574_v61, %v6845_v5  ;;  %v798_v35 = vsub.f32 0.0, %v794_v21 }
 0x44c   :  { %v10268_v22 = vadd.f32 %v6845_v5, %v780_v62  ;;  %v797_v32 = vsub.f32 0.0, %v793_v20  ;;  %v885_v62 = vadd.f32 1.0, %v884_v28  ;;  %v911_v20 = vmul.f32 -0.5, %v10274_v55 }
 0x44d   :  { %v796_v36 = vand.u32 2147483647, %v10270_v24  ;;  %v803_v40 = vmul.f32 1.442695, %v798_v35  ;;  %v905_v35 = vand.u32 2147483647, %v8803_v50 }
 0x44e   :  { %v795_v33 = vand.u32 2147483647, %v10268_v22  ;;  %v801_v38 = vmul.f32 1.442695, %v797_v32  ;;  %v886_v16 = vmul.f32 %v8799_v44, %v885_v62  ;;  %v912_v44 = vadd.f32 1.0, %v911_v20 }
 0x44f   :  { %v800_v42 = vsub.f32 0.0, %v796_v36  ;;  %vm10307_vm15 = vcmp.lt.f32.partialorder %v905_v35, 0.0004427343 }
 0x450   :  { %v799_v39 = vsub.f32 0.0, %v795_v33  ;;  %8806 = vpow2.f32 %v801_v38  ;;  %v789_v33 = vmax.f32 %v10261_v10, 0.0  ;;  %v861_v38 = vmax.f32 %v10247_v63, 0.0 }
 0x451   :  { %8808 = vpow2.f32 %v803_v40  ;;  %v807_v46 = vmul.f32 1.442695, %v800_v42  ;;  %v895_v42 = vmul.f32 %v8801_v49, %v894_v18 }
 0x452   :  { %v805_v45 = vmul.f32 1.442695, %v799_v39 }
 0x454   :  { %8810 = vpow2.f32 %v805_v45 }
 0x455   :  { %8812 = vpow2.f32 %v807_v46 }
 0x456   :  { %8814 = vlog2.f32 %v881_v48 }
 0x457   :  { %8816 = vlog2.f32 %v890_v52  ;;  %v904_v52 = vmul.f32 %v8803_v50, %v903_v31  ;;  %v1825_v31 = vld [vmem:[%s11352_s28 + $0x8] sm:$0xff] }
 0x458   :  { %8818 = vlog2.f32 %v899_v56  ;;  %v914_v56 = vand.u32 2147483647, %v10274_v55 }
 0x459   :  { %8820 = vlog2.f32 %v908_v17 }
 0x45a   :  { %v10276_v57 = vpop.eup %8806  ;;  %vm10322_vm9 = vcmp.lt.f32.partialorder %v914_v56, 0.0004427343 }
 0x45b   :  { %v10279_v19 = vpop.eup %8808  ;;  %v809_v25 = vadd.f32 1.0, %v10276_v57  ;;  %v812_v37 = vmul.f32 -0.5, %v10276_v57  ;;  %v815_v28 = vand.u32 2147483647, %v10276_v57 }
 0x45c   :  { %v818_v59 = vadd.f32 1.0, %v10279_v19  ;;  %v821_v36 = vmul.f32 -0.5, %v10279_v19  ;;  %v824_v17 = vand.u32 2147483647, %v10279_v19 }
 0x45d   :  { %8822 = vlog2.f32 %v809_v25  ;;  %v813_v62 = vadd.f32 1.0, %v812_v37  ;;  %vm10326_vm10 = vcmp.lt.f32.partialorder %v815_v28, 0.0004427343  ;;  %v864_v37 = vmax.f32 %v10259_v9, 0.0 }
 0x45e   :  { %v10282_v58 = vpop.eup %8810  ;;  %8824 = vlog2.f32 %v818_v59  ;;  %v822_v49 = vadd.f32 1.0, %v821_v36  ;;  %vm10356_vm11 = vcmp.lt.f32.partialorder %v824_v17, 0.0004427343  ;;  %v6890_v17 = vld [vmem:[%s11355_s3 + $0x28] sm:$0xff] }
 0x45f   :  { %v10285_v61 = vpop.eup %8812  ;;  %v827_v8 = vadd.f32 1.0, %v10282_v58  ;;  %v833_v46 = vand.u32 2147483647, %v10282_v58 }
 0x460   :  { %v8815_v5 = vpop.eup %8814  ;;  %v836_v13 = vadd.f32 1.0, %v10285_v61  ;;  %v823_v56 = vmul.f32 %v10279_v19, %v822_v49 }
 0x461   :  { %v883_v15 = vmul.f32 0.6931472, %v8815_v5  ;;  %v8817_v21 = vpop.eup %8816  ;;  %8826 = vlog2.f32 %v827_v8  ;;  %v862_v5 = vmax.f32 %v10251_v3, 0.0  ;;  %vm10366_vm12 = vcmp.lt.f32.partialorder %v833_v46, 0.0004427343 }
 0x462   :  { %v8819_v32 = vpop.eup %8818  ;;  %8828 = vlog2.f32 %v836_v13  ;;  %v892_v40 = vmul.f32 0.6931472, %v8817_v21  ;;  %v913_v13 = vmul.f32 %v10274_v55, %v912_v44  ;;  %v839_v55 = vmul.f32 -0.5, %v10285_v61 }
 0x463   :  { %v889_v39 = vsel %vm10290_vm13, %v886_v16, %v883_v15  ;;  %v8821_v45 = vpop.eup %8820  ;;  %v901_v48 = vmul.f32 0.6931472, %v8819_v32  ;;  %v830_v16 = vmul.f32 -0.5, %v10282_v58 }
 0x464   :  { %v917_v2 = vadd.f32 %v889_v39, %v861_v38  ;;  %v898_v50 = vsel %vm10300_vm14, %v895_v42, %v892_v40  ;;  %v910_v8 = vmul.f32 0.6931472, %v8821_v45  ;;  %v840_v19 = vadd.f32 1.0, %v839_v55 }
 0x465   :  { %v907_v21 = vsel %vm10307_vm15, %v904_v52, %v901_v48  ;;  %v918_v36 = vadd.f32 %v898_v50, %v862_v5  ;;  %v831_v45 = vadd.f32 1.0, %v830_v16  ;;  %v1828_v5 = vld [vmem:[%s11349_s17] sm:$0xff]  ;;  %v791_v55 = vmax.f32 %v10268_v22, 0.0 }
 0x466   :  { %8830 = vtanh.f32 %v917_v2  ;;  %v919_v42 = vadd.f32 %v907_v21, %v863_v7  ;;  %v842_v7 = vand.u32 2147483647, %v10285_v61  ;;  %v790_v21 = vmax.f32 %v10263_v11, 0.0 }
 0x467   :  { %v8823_v59 = vpop.eup %8822  ;;  %8832 = vtanh.f32 %v918_v36  ;;  %vm1830_vm14 = vcmask 130048  }
 0x468   :  { %v8825_v15 = vpop.eup %8824  ;;  %v811_v29 = vmul.f32 0.6931472, %v8823_v59  ;;  %8834 = vtanh.f32 %v919_v42  ;;  %vm843_vm13 = vcmp.lt.f32.partialorder %v842_v7, 0.0004427343 }
 0x46b   :  { %v8827_v38 = vpop.eup %8826 }
 0x46c   :  { %v8829_v44 = vpop.eup %8828 }
 0x50d   :  { %v7623_v6 = vpop.f32.mrb[4].mxu1 }
 0x50e   :  { %v10318_v18 = vsub.f32 %v10194_v53, %v7623_v6  ;;  %v1519_v20 = vpop.f32.mrb[5].mxu1  ;;  %v814_v53 = vmul.f32 %v10276_v57, %v813_v62  ;;  %v820_v57 = vmul.f32 0.6931472, %v8825_v15  ;;  %v829_v62 = vmul.f32 0.6931472, %v8827_v38  ;;  %v1829_v6 = vld [vmem:[%s11349_s17 + $0x8] sm:$0xff] }
 0x50f   :  { %v10332_v32 = vsub.f32 %v10196_v54, %v1519_v20  ;;  %v916_v54 = vsel %vm10322_vm9, %v913_v13, %v910_v8  ;;  %v832_v8 = vmul.f32 %v10282_v58, %v831_v45  ;;  %v838_v15 = vmul.f32 0.6931472, %v8829_v44  ;;  %v1827_v44 = vld [vmem:[%s11352_s28 + $0x18] sm:$0xff] }
 0x510   :  { %v1543_v35 = vmul.f32 %v10318_v18, %v10318_v18  ;;  %v817_v28 = vsel %vm10326_vm10, %v814_v53, %v811_v29  ;;  %v920_v50 = vadd.f32 %v916_v54, %v864_v37  ;;  %v826_v49 = vsel %vm10356_vm11, %v823_v56, %v820_v57  ;;  %v1824_v29 = vld [vmem:[%s11352_s28] sm:$0xff]  ;;  %v1826_v54 = vld [vmem:[%s11352_s28 + $0x10] sm:$0xff] }
 0x511   :  { %v1542_v39 = vmul.f32 %v10332_v32, %v10332_v32  ;;  %v7626_v40 = vpop.f32.mrb[6].mxu1  ;;  %v845_v13 = vadd.f32 %v817_v28, %v789_v33  ;;  %v8311_v20 = vpack.c.bf16 %v1829_v6, %v1828_v5  ;;  %v835_v27 = vsel %vm10366_vm12, %v832_v8, %v829_v62  ;;  %v8831_v33 = vpop.eup %8830  ;;  %v6889_v8 = vld [vmem:[%s11355_s3 + $0x20] sm:$0xff] }
 0x512   :  { %v10344_v48 = vsub.f32 %v10200_v60, %v7626_v40  ;;  %v1529_v52 = vpop.f32.mrb[7].mxu1  ;;  %8836 = vtanh.f32 %v920_v50  ;;  %v841_v58 = vmul.f32 %v10285_v61, %v840_v19  ;;  %v846_v53 = vadd.f32 %v826_v49, %v790_v21  ;;  %v8833_v61 = vpop.eup %8832  ;;  %v2084_v21 = vld [vmem:[%s11355_s3] sm:$0xff] }
 0x513   :  { %v10350_v25 = vsub.f32 %v10202_v0, %v1529_v52  ;;  %v8295_v59 = vpack.c.bf16 %v1543_v35, %v1542_v39  ;;  %8838 = vtanh.f32 %v845_v13  ;;  %v847_v36 = vadd.f32 %v835_v27, %v791_v55  ;;  %v8835_v42 = vpop.eup %8834  ;;  %v2085_v27 = vld [vmem:[%s11355_s3 + $0x8] sm:$0xff] }
 0x514   :  { %v1545_v2 = vmul.f32 %v10344_v48, %v10344_v48  ;;  %v844_v35 = vsel %vm843_vm13, %v841_v58, %v838_v15  ;;  %v8315_v37 = vpack.c.bf16 %v1825_v31, %v1824_v29  ;;  %v792_v38 = vmax.f32 %v10270_v24, 0.0  ;;  %v6891_v15 = vld [vmem:[%s11355_s3 + $0x30] sm:$0xff] }
 0x515   :  { %v1544_v0 = vmul.f32 %v10350_v25, %v10350_v25  ;;  %8296 = vmatprep.subr.bf16.mxu0 %v8295_v59  ;;  %8840 = vtanh.f32 %v846_v53  ;;  %v10385_v40 = vmul.f32 %v8831_v33, %v10247_v63  ;;  %v10392_v57 = vmul.f32 %v8833_v61, %v10251_v3  ;;  %v6878_v61 = vld [vmem:[#allocation7] ss:$0 sm:$0xff] }
 0x516   :  { %8298 = vmatpush3.bf16.msra.mxu0 %v8295_v59  ;;  %v848_v39 = vadd.f32 %v844_v35, %v792_v38  ;;  %8842 = vtanh.f32 %v847_v36  ;;  %v10397_v63 = vmul.f32 %v8835_v42, %v10254_v4  ;;  %v8319_v46 = vpack.c.bf16 %v1827_v44, %v1826_v54  ;;  %v6879_v54 = vld [vmem:[#allocation9] ss:$0 sm:$0xff] }
 0x517   :  { %v8299_v16 = vpack.c.bf16 %v1545_v2, %v1544_v0  ;;  %v8323_v13 = vpack.c.bf16 %v6890_v17, %v6889_v8  ;;  %v10456_v29 = vpack.c.bf16 %v2085_v27, %v2084_v21 }
 0x518   :  { %8844 = vtanh.f32 %v848_v39 }
 0x519   :  { %8300 = vmatprep.subr.bf16.mxu0 %v8299_v16  ;;  %8324 = vmatprep.subr.bf16.mxu1 %v8323_v13 }
 0x51a   :  { %8302 = vmatpush3.bf16.msra.mxu0 %v8299_v16  ;;  %v6892_v16 = vld [vmem:[%s11355_s3 + $0x38] sm:$0xff] }
 0x51b   :  { %8312 = vmatprep.subr.bf16.mxu0 %v8311_v20 }
 0x51c   :  { %v8837_v45 = vpop.eup %8836 }
 0x51d   :  { %7636 = vmatmul.mubr.msk.f32.vlgmr.msra.gmra.mrb[12].mxu0 %vm515_vm0, %v10209_v26  ;;  %v8839_v52 = vpop.eup %8838  ;;  %v10402_v56 = vmul.f32 %v8837_v45, %v10259_v9 }
 0x51e   :  { %7638 = vmatprep.mubr.msk.f32.mxu0 %vm515_vm0, %v10213_v34  ;;  %8314 = vmatpush3.bf16.msra.mxu0 %v8311_v20  ;;  %v10407_v28 = vmul.f32 %v8839_v52, %v10261_v10  ;;  %v8327_v20 = vpack.c.bf16 %v6892_v16, %v6891_v15 }
 0x51f   :  { %8316 = vmatprep.subr.bf16.mxu0 %v8315_v37  ;;  %v8841_v3 = vpop.eup %8840 }
 0x520   :  { %v8843_v59 = vpop.eup %8842  ;;  %v10414_v4 = vmul.f32 %v8841_v3, %v10263_v11 }
 0x521   :  { %7639 = vmatmul.mubr.msk.f32.gmra.mrb[14].mxu0 %vm515_vm0, %v10221_v41  ;;  %v10417_v62 = vmul.f32 %v8843_v59, %v10268_v22 }
 0x522   :  { %7659 = vmatprep.mubr.msk.f32.mxu0 %vm1830_vm14, %v10385_v40  ;;  %v8845_v9 = vpop.eup %8844 }
 0x523   :  { %v10424_v10 = vmul.f32 %v8845_v9, %v10270_v24  ;;  %v6888_v24 = vld [vmem:[#allocation10] ss:$0 sm:$0xff] }
 0x525   :  { %7660 = vmatmul.mubr.msk.f32.vlgmr.msra.gmra.mrb[16].mxu0 %vm1830_vm14, %v10392_v57 }
 0x526   :  { %8318 = vmatpush3.bf16.msra.mxu0 %v8315_v37  ;;  %7662 = vmatprep.mubr.msk.f32.mxu0 %vm1830_vm14, %v10397_v63 }
 0x527   :  { %8320 = vmatprep.subr.bf16.mxu0 %v8319_v46 }
 0x529   :  { %7663 = vmatmul.mubr.msk.f32.gmra.mrb[18].mxu0 %vm1830_vm14, %v10402_v56 }
 0x52a   :  { %8322 = vmatpush3.bf16.msra.mxu0 %v8319_v46  ;;  %7673 = vmatprep.mubr.msk.f32.mxu0 %vm515_vm0, %v10407_v28 }
 0x52d   :  { %7674 = vmatmul.mubr.msk.f32.vlgmr.msra.gmra.mrb[16].mxu0 %vm515_vm0, %v10414_v4 }
 0x52e   :  { %7676 = vmatprep.mubr.msk.f32.mxu0 %vm515_vm0, %v10417_v62 }
 0x531   :  { %7677 = vmatmul.mubr.msk.f32.gmra.mrb[18].mxu0 %vm515_vm0, %v10424_v10 }
 0x532   :  { %7729 = vmatprep.mubr.msk.f32.mxu0 %vm515_vm0, %v10166_v1 }
 0x5f0   :  { %v7637_v11 = vpop.f32.mrb[12].mxu0 }
 0x5f1   :  { %v1612_v2 = vpop.f32.mrb[13].mxu0 }
 0x5f2   :  { %7649 = vmatprep.mubr.msk.f32.mxu1 %vm515_vm0, %v1612_v2 }
 0x5f3   :  { %7650 = vmatmul.mubr.msk.f32.vlgmr.msra.gmra.mrb[8].mxu1 %vm515_vm0, %v7637_v11 }
 0x5f4   :  { %v7640_v22 = vpop.f32.mrb[14].mxu0  ;;  %8326 = vmatpush3.bf16.msra.mxu1 %v8323_v13 }
 0x5f5   :  { %v1622_v5 = vpop.f32.mrb[15].mxu0  ;;  %8328 = vmatprep.subr.bf16.mxu1 %v8327_v20 }
 0x5f6   :  { %7652 = vmatprep.mubr.msk.f32.mxu1 %vm515_vm0, %v1622_v5 }
 0x5f7   :  { %7653 = vmatmul.mubr.msk.f32.gmra.mrb[10].mxu1 %vm515_vm0, %v7640_v22 }
 0x5f8   :  { %8330 = vmatpush3.bf16.msra.mxu1 %v8327_v20 }
 0x5f9   :  { %8332 = vmatprep.subr.bf16.mxu1 %v10456_v29 }
 0x600   :  { %v7675_v6 = vpop.f32.mrb[16].mxu0 }
 0x601   :  { %v2006_v50 = vpop.f32.mrb[17].mxu0  ;;  %v10438_v0 = vadd.f32 %v7675_v6, %v6888_v24 }
 0x602   :  { %v10434_v60 = vadd.f32 %v6888_v24, %v2006_v50 }
 0x604   :  { %2044 = vrot.lane.b32.xlu0 %v10434_v60, %s9728_s20  ;;  %v7678_v1 = vpop.f32.mrb[18].mxu0 }
 0x605   :  { %v2016_v19 = vpop.f32.mrb[19].mxu0  ;;  %v10446_v7 = vadd.f32 %v7678_v1, %v6888_v24 }
 0x606   :  { %v10440_v49 = vadd.f32 %v6888_v24, %v2016_v19 }
 0x608   :  { %2046 = vrot.lane.b32.xlu0 %v10438_v0, %s9728_s20  ;;  %2048 = vrot.lane.b32.xlu1 %v10440_v49, %s9728_s20 }
 0x60c   :  { %2050 = vrot.lane.b32.xlu1 %v10446_v7, %s9728_s20 }
 0x6c6   :  { %v7651_v31 = vpop.f32.mrb[8].mxu1 }
 0x6c7   :  { %v1715_v58 = vadd.f32 1e-05, %v7651_v31  ;;  %v1709_v55 = vpop.f32.mrb[9].mxu1 }
 0x6c8   :  { %v1710_v53 = vadd.f32 1e-05, %v1709_v55 }
 0x6c9   :  { %8846 = vrsqrt.f32 %v1715_v58 }
 0x6ca   :  { %8848 = vrsqrt.f32 %v1710_v53  ;;  %v7654_v33 = vpop.f32.mrb[10].mxu1 }
 0x6cb   :  { %v1725_v35 = vadd.f32 1e-05, %v7654_v33  ;;  %v1719_v36 = vpop.f32.mrb[11].mxu1 }
 0x6cc   :  { %v1720_v37 = vadd.f32 1e-05, %v1719_v36 }
 0x6cd   :  { %8850 = vrsqrt.f32 %v1725_v35 }
 0x6ce   :  { %8852 = vrsqrt.f32 %v1720_v37 }
 0x6d3   :  { %v8847_v38 = vpop.eup %8846 }
 0x6d4   :  { %v8849_v39 = vpop.eup %8848  ;;  %v1733_v42 = vmul.f32 %v8847_v38, %v10318_v18 }
 0x6d5   :  { %v1732_v44 = vmul.f32 %v8849_v39, %v10332_v32 }
 0x6d6   :  { %v1743_v45 = vmul.f32 %v6878_v61, %v1733_v42 }
 0x6d7   :  { %v8851_v46 = vpop.eup %8850  ;;  %v1742_v52 = vmul.f32 %v6878_v61, %v1732_v44 }
 0x6d8   :  { %v8853_v3 = vpop.eup %8852  ;;  %v10461_v59 = vadd.f32 %v6879_v54, %v1743_v45  ;;  %v1735_v9 = vmul.f32 %v8851_v46, %v10344_v48 }
 0x6d9   :  { %v1734_v11 = vmul.f32 %v8853_v3, %v10350_v25  ;;  %v10465_v2 = vadd.f32 %v6879_v54, %v1742_v52 }
 0x6da   :  { %v1761_v22 = vand.u32 2147483647, %v10461_v59  ;;  %v1745_v5 = vmul.f32 %v6878_v61, %v1735_v9  ;;  %v1757_v45 = vmax.f32 %v10461_v59, 0.0 }
 0x6db   :  { %v1744_v24 = vmul.f32 %v6878_v61, %v1734_v11  ;;  %v1760_v18 = vand.u32 2147483647, %v10465_v2 }
 0x6dc   :  { %v1765_v6 = vsub.f32 0.0, %v1761_v22  ;;  %v10469_v32 = vadd.f32 %v6879_v54, %v1745_v5 }
 0x6dd   :  { %v1764_v50 = vsub.f32 0.0, %v1760_v18  ;;  %v10471_v1 = vadd.f32 %v6879_v54, %v1744_v24 }
 0x6de   :  { %v1770_v19 = vmul.f32 1.442695, %v1765_v6  ;;  %v1763_v8 = vand.u32 2147483647, %v10469_v32  ;;  %v1756_v6 = vmax.f32 %v10465_v2, 0.0 }
 0x6df   :  { %v1768_v48 = vmul.f32 1.442695, %v1764_v50  ;;  %v1762_v25 = vand.u32 2147483647, %v10471_v1 }
 0x6e0   :  { %8854 = vpow2.f32 %v1770_v19  ;;  %v1767_v17 = vsub.f32 0.0, %v1763_v8 }
 0x6e1   :  { %8856 = vpow2.f32 %v1768_v48  ;;  %v1766_v13 = vsub.f32 0.0, %v1762_v25 }
 0x6e2   :  { %v1774_v15 = vmul.f32 1.442695, %v1767_v17 }
 0x6e3   :  { %v1772_v16 = vmul.f32 1.442695, %v1766_v13  ;;  %v1759_v13 = vmax.f32 %v10469_v32, 0.0 }
 0x6e4   :  { %8858 = vpow2.f32 %v1774_v15 }
 0x6e5   :  { %8860 = vpow2.f32 %v1772_v16 }
 0x6ea   :  { %v8855_v20 = vpop.eup %8854 }
 0x6eb   :  { %v8857_v21 = vpop.eup %8856  ;;  %v1785_v27 = vadd.f32 1.0, %v8855_v20  ;;  %v1788_v33 = vmul.f32 -0.5, %v8855_v20  ;;  %v1791_v38 = vand.u32 2147483647, %v8855_v20 }
 0x6ec   :  { %v1776_v31 = vadd.f32 1.0, %v8857_v21  ;;  %v1779_v36 = vmul.f32 -0.5, %v8857_v21  ;;  %v1782_v54 = vand.u32 2147483647, %v8857_v21 }
 0x6ed   :  { %8862 = vlog2.f32 %v1785_v27  ;;  %v1789_v37 = vadd.f32 1.0, %v1788_v33  ;;  %vm1792_vm15 = vcmp.lt.f32.partialorder %v1791_v38, 0.0004427343 }
 0x6ee   :  { %v8859_v58 = vpop.eup %8858  ;;  %8864 = vlog2.f32 %v1776_v31  ;;  %v1780_v39 = vadd.f32 1.0, %v1779_v36  ;;  %vm1783_vm9 = vcmp.lt.f32.partialorder %v1782_v54, 0.0004427343  ;;  %v2045_v36 = vpop.permute.xlu0 %2044 }
 0x6ef   :  { %v8861_v55 = vpop.eup %8860  ;;  %v1803_v53 = vadd.f32 1.0, %v8859_v58  ;;  %v1806_v61 = vmul.f32 -0.5, %v8859_v58  ;;  %v1790_v3 = vmul.f32 %v8855_v20, %v1789_v37  ;;  %v1809_v24 = vand.u32 2147483647, %v8859_v58 }
 0x6f0   :  { %v1794_v35 = vadd.f32 1.0, %v8861_v55  ;;  %v1797_v42 = vmul.f32 -0.5, %v8861_v55  ;;  %v1781_v22 = vmul.f32 %v8857_v21, %v1780_v39  ;;  %v1800_v50 = vand.u32 2147483647, %v8861_v55 }
 0x6f1   :  { %8866 = vlog2.f32 %v1803_v53  ;;  %v1807_v9 = vadd.f32 1.0, %v1806_v61  ;;  %vm1810_vm10 = vcmp.lt.f32.partialorder %v1809_v24, 0.0004427343  ;;  %v1758_v21 = vmax.f32 %v10471_v1, 0.0  ;;  %v2049_v61 = vpop.permute.xlu1 %2048 }
 0x6f2   :  { %8868 = vlog2.f32 %v1794_v35  ;;  %v1798_v5 = vadd.f32 1.0, %v1797_v42  ;;  %vm1801_vm11 = vcmp.lt.f32.partialorder %v1800_v50, 0.0004427343  ;;  %v2047_v54 = vpop.permute.xlu0 %2046  ;;  %v6902_v50 = vld [vmem:[%s11355_s3 + $0x48] sm:$0xff] }
 0x6f3   :  { %v1808_v16 = vmul.f32 %v8859_v58, %v1807_v9 }
 0x6f4   :  { %v1799_v27 = vmul.f32 %v8861_v55, %v1798_v5 }
 0x6f5   :  { %v2051_v24 = vpop.permute.xlu1 %2050 }
 0x6f7   :  { %v8863_v44 = vpop.eup %8862 }
 0x6f8   :  { %v8865_v46 = vpop.eup %8864  ;;  %v1787_v52 = vmul.f32 0.6931472, %v8863_v44 }
 0x6f9   :  { %v1778_v11 = vmul.f32 0.6931472, %v8865_v46  ;;  %v2087_v46 = vld [vmem:[%s11355_s3 + $0x18] sm:$0xff] }
 0x6fa   :  { %v1793_v18 = vsel %vm1792_vm15, %v1790_v3, %v1787_v52 }
 0x6fb   :  { %v8867_v19 = vpop.eup %8866  ;;  %v1813_v8 = vadd.f32 %v1793_v18, %v1757_v45  ;;  %v1784_v48 = vsel %vm1783_vm9, %v1781_v22, %v1778_v11  ;;  %v2086_v45 = vld [vmem:[%s11355_s3 + $0x10] sm:$0xff] }
 0x6fc   :  { %v8869_v25 = vpop.eup %8868  ;;  %v1812_v17 = vadd.f32 %v1784_v48, %v1756_v6  ;;  %v1805_v15 = vmul.f32 0.6931472, %v8867_v19  ;;  %v6901_v6 = vld [vmem:[%s11355_s3 + $0x40] sm:$0xff] }
 0x6fd   :  { %8870 = vtanh.f32 %v1813_v8  ;;  %v1796_v20 = vmul.f32 0.6931472, %v8869_v25  ;;  %v8339_v48 = vpack.c.bf16 %v6902_v50, %v6901_v6 }
 0x6fe   :  { %8872 = vtanh.f32 %v1812_v17  ;;  %v1811_v31 = vsel %vm1810_vm10, %v1808_v16, %v1805_v15  ;;  %v6903_v15 = vld [vmem:[%s11355_s3 + $0x50] sm:$0xff]  ;;  %v6904_v16 = vld [vmem:[%s11355_s3 + $0x58] sm:$0xff] }
 0x6ff   :  { %v1802_v53 = vsel %vm1801_vm11, %v1799_v27, %v1796_v20  ;;  %v1815_v33 = vadd.f32 %v1811_v31, %v1759_v13 }
 0x700   :  { %v1814_v35 = vadd.f32 %v1802_v53, %v1758_v21 }
 0x701   :  { %8874 = vtanh.f32 %v1815_v33  ;;  %v8343_v33 = vpack.c.bf16 %v6904_v16, %v6903_v15  ;;  %v9044_v15 = vld [vmem:[%s11325_s16 + $0x10] sm:$0xff]  ;;  %v9045_v16 = vld [vmem:[%s11325_s16 + $0x18] sm:$0xff] }
 0x702   :  { %8876 = vtanh.f32 %v1814_v35 }
 0x707   :  { %v8871_v37 = vpop.eup %8870 }
 0x708   :  { %v8873_v38 = vpop.eup %8872  ;;  %v1821_v58 = vmul.f32 %v8871_v37, %v10461_v59 }
 0x709   :  { %v1820_v55 = vmul.f32 %v8873_v38, %v10465_v2  ;;  %v8335_v2 = vpack.c.bf16 %v2087_v46, %v2086_v45 }
 0x70a   :  { %v2037_v39 = vmul.f32 %v10438_v0, %v1821_v58  ;;  %v10531_v58 = vld [vmem:[%s11335_s22] sm:$0xff] }
 0x70b   :  { %v8875_v42 = vpop.eup %8874  ;;  %v2036_v44 = vmul.f32 %v10434_v60, %v1820_v55 }
 0x70c   :  { %v8877_v52 = vpop.eup %8876  ;;  %v2057_v3 = vadd.f32 %v2047_v54, %v2037_v39  ;;  %v1823_v9 = vmul.f32 %v8875_v42, %v10469_v32 }
 0x70d   :  { %v2056_v11 = vadd.f32 %v2045_v36, %v2036_v44  ;;  %v1822_v59 = vmul.f32 %v8877_v52, %v10471_v1 }
 0x70e   :  { %v2039_v22 = vmul.f32 %v10446_v7, %v1823_v9  ;;  %v2061_v5 = vrot.slane %v2057_v3, 7  ;;  %v2073_v0 = vrot.slane %v2057_v3, 1 }
 0x70f   :  { %7687 = vmatprep.mubr.msk.f32.mxu1 %vm515_vm0, %v2056_v11  ;;  %v2038_v60 = vmul.f32 %v10440_v49, %v1822_v59  ;;  %v2060_v18 = vrot.slane %v2056_v11, 7  ;;  %v2072_v19 = vrot.slane %v2056_v11, 1 }
 0x710   :  { %7688 = vmatmul.mubr.msk.f32.vlgmr.msra.gmra.mrb[12].mxu1 %vm515_vm0, %v2057_v3  ;;  %v2059_v32 = vadd.f32 %v2051_v24, %v2039_v22 }
 0x711   :  { %8334 = vmatpush3.bf16.msra.mxu1 %v10456_v29  ;;  %v2058_v7 = vadd.f32 %v2049_v61, %v2038_v60  ;;  %v2066_v1 = vsel %vm994_vm3, %v2060_v18, %v2061_v5  ;;  %v2078_v8 = vsel %vm1011_vm6, %v2072_v19, %v2073_v0  ;;  %v6909_v61 = vld [vmem:[#allocation12] ss:$0 sm:$0xff] }
 0x712   :  { %8336 = vmatprep.subr.bf16.mxu1 %v8335_v2  ;;  %v2063_v49 = vrot.slane %v2059_v32, 7  ;;  %v2075_v25 = vrot.slane %v2059_v32, 1 }
 0x713   :  { %v2074_v17 = vrot.slane %v2058_v7, 1  ;;  %7690 = vmatprep.mubr.msk.f32.mxu1 %vm515_vm0, %v2058_v7  ;;  %v2062_v13 = vrot.slane %v2058_v7, 7 }
 0x714   :  { %7691 = vmatmul.mubr.msk.f32.gmra.mrb[14].mxu1 %vm515_vm0, %v2059_v32  ;;  %v2067_v29 = vsel %vm994_vm3, %v2063_v49, %v2060_v18  ;;  %v2079_v20 = vsel %vm1011_vm6, %v2075_v25, %v2072_v19 }
 0x715   :  { %8338 = vmatpush3.bf16.msra.mxu1 %v8335_v2  ;;  %v2068_v27 = vsel %vm10098_vm4, 0.0, %v2067_v29  ;;  %v2065_v21 = vsel %vm994_vm3, %v2061_v5, %v2062_v13  ;;  %v2064_v31 = vsel %vm994_vm3, %v2062_v13, %v2063_v49  ;;  %v2077_v53 = vsel %vm1011_vm6, %v2073_v0, %v2074_v17  ;;  %v10575_v49 = vld [vmem:[%s11335_s22 + $0x10] sm:$0xff]  ;;  %v9043_v13 = vld [vmem:[%s11325_s16 + $0x8] sm:$0xff] }
 0x716   :  { %7701 = vmatprep.mubr.msk.f32.mxu1 %vm515_vm0, %v2068_v27  ;;  %8340 = vmatprep.subr.bf16.mxu1 %v8339_v48  ;;  %v2076_v35 = vsel %vm1011_vm6, %v2074_v17, %v2075_v25  ;;  %v2070_v36 = vsel %vm10111_vm5, 0.0, %v2065_v21  ;;  %v2081_v37 = vsel %vm10132_vm7, 0.0, %v2077_v53  ;;  %v2083_v38 = vsel %vm10144_vm8, 0.0, %v2079_v20  ;;  %v9042_v25 = vld [vmem:[%s11325_s16] sm:$0xff]  ;;  %v2874_v17 = vld [vmem:[#allocation16] sm:$0xf] }
 0x717   :  { %v6935_v53 = vld [vmem:[%s11356_s1 + $0x28] sm:$0xff] }
 0x718   :  { %7702 = vmatmul.mubr.msk.f32.vlgmr.msra.gmra.mrb[12].mxu1 %vm515_vm0, %v2066_v1 }
 0x719   :  { %7704 = vmatprep.mubr.msk.f32.mxu1 %vm515_vm0, %v2070_v36  ;;  %8342 = vmatpush3.bf16.msra.mxu1 %v8339_v48  ;;  %v10580_v48 = vld [vmem:[%s11335_s22 + $0x18] sm:$0xff] }
 0x71a   :  { %8344 = vmatprep.subr.bf16.mxu1 %v8343_v33 }
 0x71c   :  { %7705 = vmatmul.mubr.msk.f32.gmra.mrb[14].mxu1 %vm515_vm0, %v2064_v31  ;;  %v6934_v31 = vld [vmem:[%s11356_s1 + $0x20] sm:$0xff] }
 0x71d   :  { %8346 = vmatpush3.bf16.msra.mxu1 %v8343_v33  ;;  %7715 = vmatprep.mubr.msk.f32.mxu1 %vm515_vm0, %v2078_v8  ;;  %v10570_v8 = vld [vmem:[%s11335_s22 + $0x8] sm:$0xff]  ;;  %v8379_v33 = vpack.c.bf16 %v6935_v53, %v6934_v31 }
 0x720   :  { %7716 = vmatmul.mubr.msk.f32.vlgmr.msra.gmra.mrb[12].mxu1 %vm515_vm0, %v2081_v37  ;;  %v6936_v37 = vld [vmem:[%s11356_s1 + $0x30] sm:$0xff] }
 0x721   :  { %7718 = vmatprep.mubr.msk.f32.mxu1 %vm515_vm0, %v2076_v35 }
 0x724   :  { %7719 = vmatmul.mubr.msk.f32.gmra.mrb[14].mxu1 %vm515_vm0, %v2083_v38  ;;  %v6937_v38 = vld [vmem:[%s11356_s1 + $0x38] sm:$0xff] }
 0x725   :  { %7757 = vmatprep.mubr.msk.f32.mxu1 %vm515_vm0, %v10531_v58 }
 0x7f3   :  { %v7717_v55 = vpop.f32.mrb[12].mxu1 }
 0x7f4   :  { %v2401_v39 = vadd.f32 %v7717_v55, %v6909_v61  ;;  %v2370_v42 = vpop.f32.mrb[13].mxu1 }
 0x7f5   :  { %v2400_v54 = vadd.f32 %v6909_v61, %v2370_v42  ;;  %v3002_v42 = vld [vmem:[%s11356_s1] sm:$0xff] }
 0x7f7   :  { %v8347_v44 = vpack.c.bf16 %v2401_v39, %v2400_v54  ;;  %v7720_v45 = vpop.f32.mrb[14].mxu1 }
 0x7f8   :  { %v2403_v46 = vadd.f32 %v7720_v45, %v6909_v61  ;;  %v2380_v52 = vpop.f32.mrb[15].mxu1 }
 0x7f9   :  { %v2402_v3 = vadd.f32 %v6909_v61, %v2380_v52  ;;  %8348 = vmatprep.subr.bf16.mxu0 %v8347_v44  ;;  %v8383_v61 = vpack.c.bf16 %v6937_v38, %v6936_v37 }
 0x7fa   :  { %8350 = vmatpush3.bf16.msra.mxu0 %v8347_v44 }
 0x7fb   :  { %v8351_v9 = vpack.c.bf16 %v2403_v46, %v2402_v3 }
 0x7fd   :  { %8352 = vmatprep.subr.bf16.mxu0 %v8351_v9 }
 0x7fe   :  { %8354 = vmatpush3.bf16.msra.mxu0 %v8351_v9 }
 0x7ff   :  { %8356 = vmatprep.subr.bf16.mxu0 %v10178_v14 }
 0x801   :  { %7730 = vmatmul.mubr.msk.f32.vlgmr.msra.gmra.mrb[20].mxu0 %vm515_vm0, %v10209_v26 }
 0x802   :  { %7732 = vmatprep.mubr.msk.f32.mxu0 %vm515_vm0, %v10213_v34  ;;  %8358 = vmatpush3.bf16.msra.mxu0 %v10178_v14 }
 0x803   :  { %8360 = vmatprep.subr.bf16.mxu0 %v10231_v51 }
 0x805   :  { %7733 = vmatmul.mubr.msk.f32.gmra.mrb[22].mxu0 %vm515_vm0, %v10221_v41 }
 0x806   :  { %8362 = vmatpush3.bf16.msra.mxu0 %v10231_v51 }
 0x807   :  { %8372 = vmatprep.subr.bf16.mxu0 %v10178_v14 }
 0x8d4   :  { %v7731_v11 = vpop.f32.mrb[20].mxu0 }
 0x8d5   :  { %v2472_v59 = vpop.f32.mrb[21].mxu0 }
 0x8d6   :  { %7743 = vmatprep.mubr.msk.f32.mxu0 %vm515_vm0, %v2472_v59 }
 0x8d7   :  { %7744 = vmatmul.mubr.msk.f32.vlgmr.msra.gmra.mrb[24].mxu0 %vm515_vm0, %v7731_v11 }
 0x8d8   :  { %v7734_v26 = vpop.f32.mrb[22].mxu0  ;;  %8374 = vmatpush3.bf16.msra.mxu0 %v10178_v14 }
 0x8d9   :  { %v2482_v34 = vpop.f32.mrb[23].mxu0  ;;  %8376 = vmatprep.subr.bf16.mxu0 %v10231_v51 }
 0x8da   :  { %7746 = vmatprep.mubr.msk.f32.mxu0 %vm515_vm0, %v2482_v34 }
 0x8db   :  { %7747 = vmatmul.mubr.msk.f32.gmra.mrb[26].mxu0 %vm515_vm0, %v7734_v26 }
 0x8dc   :  { %8378 = vmatpush3.bf16.msra.mxu0 %v10231_v51 }
 0x8dd   :  { %8380 = vmatprep.subr.bf16.mxu0 %v8379_v33 }
 0x9aa   :  { %v7745_v41 = vpop.f32.mrb[24].mxu0 }
 0x9ab   :  { %v10553_v22 = vsub.f32 %v2401_v39, %v7745_v41  ;;  %v2569_v2 = vpop.f32.mrb[25].mxu0  ;;  %v6926_v41 = vld [vmem:[#allocation13] ss:$0 sm:$0xff] }
 0x9ac   :  { %v10555_v5 = vsub.f32 %v2400_v54, %v2569_v2  ;;  %v3003_v54 = vld [vmem:[%s11356_s1 + $0x8] sm:$0xff] }
 0x9ad   :  { %v2593_v0 = vmul.f32 %v10553_v22, %v10553_v22  ;;  %v10614_v44 = vpack.c.bf16 %v3003_v54, %v3002_v42 }
 0x9ae   :  { %v2592_v24 = vmul.f32 %v10555_v5, %v10555_v5  ;;  %v7748_v60 = vpop.f32.mrb[26].mxu0 }
 0x9af   :  { %v10561_v18 = vsub.f32 %v2403_v46, %v7748_v60  ;;  %v2579_v6 = vpop.f32.mrb[27].mxu0 }
 0x9b0   :  { %v10563_v50 = vsub.f32 %v2402_v3, %v2579_v6  ;;  %v8363_v19 = vpack.c.bf16 %v2593_v0, %v2592_v24  ;;  %v6927_v24 = vld [vmem:[#allocation15] ss:$0 sm:$0xff] }
 0x9b1   :  { %v2595_v32 = vmul.f32 %v10561_v18, %v10561_v18 }
 0x9b2   :  { %v2594_v7 = vmul.f32 %v10563_v50, %v10563_v50  ;;  %8364 = vmatprep.subr.bf16.mxu1 %v8363_v19 }
 0x9b3   :  { %8366 = vmatpush3.bf16.msra.mxu1 %v8363_v19 }
 0x9b4   :  { %v8367_v1 = vpack.c.bf16 %v2595_v32, %v2594_v7 }
 0x9b6   :  { %8368 = vmatprep.subr.bf16.mxu1 %v8367_v1 }
 0x9b7   :  { %8370 = vmatpush3.bf16.msra.mxu1 %v8367_v1 }
 0x9b8   :  { %7777 = vmatprep.subr.msk.mxu1 %vm1036_vm1, %v2874_v17 }
 0x9ba   :  { %7758 = vmatmul.mubr.msk.f32.vlgmr.msra.gmra.mrb[16].mxu1 %vm515_vm0, %v10570_v8 }
 0x9bb   :  { %7760 = vmatprep.mubr.msk.f32.mxu1 %vm515_vm0, %v10575_v49  ;;  %7778 = vmatpush3.msk.msra.mxu1 %vm1036_vm1, %v2874_v17 }
 0x9be   :  { %7761 = vmatmul.mubr.msk.f32.gmra.mrb[18].mxu1 %vm515_vm0, %v10580_v48 }
 0x9bf   :  { %7779 = vmatprep.mubr.msk.f32.mxu1 %vm1023_vm2, %v9042_v25 }
 0x9c2   :  { %7780 = vmatmul.mubr.msk.f32.vlgmr.msra.gmra.mrb[20].mxu1 %vm1023_vm2, %v9043_v13 }
 0x9c3   :  { %7782 = vmatprep.mubr.msk.f32.mxu1 %vm1023_vm2, %v9044_v15 }
 0x9c6   :  { %7783 = vmatmul.mubr.msk.f32.gmra.mrb[22].mxu1 %vm1023_vm2, %v9045_v16 }
 0x9c7   :  { %7835 = vmatprep.mubr.msk.f32.mxu1 %vm515_vm0, %v10531_v58 }
 0xa8d   :  { %v7759_v29 = vpop.f32.mrb[16].mxu1 }
 0xa8e   :  { %v2662_v20 = vpop.f32.mrb[17].mxu1 }
 0xa8f   :  { %7771 = vmatprep.mubr.msk.f32.mxu0 %vm515_vm0, %v2662_v20 }
 0xa90   :  { %7772 = vmatmul.mubr.msk.f32.vlgmr.msra.gmra.mrb[28].mxu0 %vm515_vm0, %v7759_v29 }
 0xa91   :  { %v7762_v27 = vpop.f32.mrb[18].mxu1  ;;  %8382 = vmatpush3.bf16.msra.mxu0 %v8379_v33 }
 0xa92   :  { %v2672_v21 = vpop.f32.mrb[19].mxu1  ;;  %8384 = vmatprep.subr.bf16.mxu0 %v8383_v61 }
 0xa93   :  { %7774 = vmatprep.mubr.msk.f32.mxu0 %vm515_vm0, %v2672_v21 }
 0xa94   :  { %7775 = vmatmul.mubr.msk.f32.gmra.mrb[30].mxu0 %vm515_vm0, %v7762_v27 }
 0xa95   :  { %v10602_v35 = vpop.f32.mrb[20].mxu1  ;;  %8386 = vmatpush3.bf16.msra.mxu0 %v8383_v61 }
 0xa96   :  { %v10604_v36 = vpop.f32.mrb[21].mxu1  ;;  %8388 = vmatprep.subr.bf16.mxu0 %v10614_v44 }
 0xa99   :  { %v10608_v55 = vpop.f32.mrb[22].mxu1 }
 0xa9a   :  { %v10610_v39 = vpop.f32.mrb[23].mxu1 }
 0xb63   :  { %v7773_v45 = vpop.f32.mrb[28].mxu0 }
 0xb64   :  { %v2765_v46 = vadd.f32 1e-05, %v7773_v45  ;;  %v2759_v52 = vpop.f32.mrb[29].mxu0 }
 0xb65   :  { %v2760_v3 = vadd.f32 1e-05, %v2759_v52 }
 0xb66   :  { %8878 = vrsqrt.f32 %v2765_v46 }
 0xb67   :  { %8880 = vrsqrt.f32 %v2760_v3  ;;  %v7776_v9 = vpop.f32.mrb[30].mxu0 }
 0xb68   :  { %v2775_v11 = vadd.f32 1e-05, %v7776_v9  ;;  %v2769_v59 = vpop.f32.mrb[31].mxu0 }
 0xb69   :  { %v2770_v26 = vadd.f32 1e-05, %v2769_v59 }
 0xb6a   :  { %8882 = vrsqrt.f32 %v2775_v11 }
 0xb6b   :  { %8884 = vrsqrt.f32 %v2770_v26 }
 0xb70   :  { %v8879_v34 = vpop.eup %8878 }
 0xb71   :  { %v8881_v2 = vpop.eup %8880  ;;  %v2783_v0 = vmul.f32 %v8879_v34, %v10553_v22 }
 0xb72   :  { %v2782_v60 = vmul.f32 %v8881_v2, %v10555_v5 }
 0xb73   :  { %v2793_v6 = vmul.f32 %v6926_v41, %v2783_v0 }
 0xb74   :  { %v8883_v19 = vpop.eup %8882  ;;  %v2792_v32 = vmul.f32 %v6926_v41, %v2782_v60 }
 0xb75   :  { %v8885_v7 = vpop.eup %8884  ;;  %v10619_v1 = vadd.f32 %v6927_v24, %v2793_v6  ;;  %v2785_v25 = vmul.f32 %v8883_v19, %v10561_v18 }
 0xb76   :  { %v10622_v17 = vadd.f32 %v6927_v24, %v2792_v32  ;;  %v2784_v13 = vmul.f32 %v8885_v7, %v10563_v50 }
 0xb77   :  { %v2811_v15 = vand.u32 2147483647, %v10619_v1  ;;  %v2795_v16 = vmul.f32 %v6926_v41, %v2785_v25  ;;  %v2807_v19 = vmax.f32 %v10619_v1, 0.0 }
 0xb78   :  { %v2810_v22 = vand.u32 2147483647, %v10622_v17  ;;  %v2794_v29 = vmul.f32 %v6926_v41, %v2784_v13 }
 0xb79   :  { %v2815_v20 = vsub.f32 0.0, %v2811_v15  ;;  %v10627_v5 = vadd.f32 %v6927_v24, %v2795_v16 }
 0xb7a   :  { %v2814_v27 = vsub.f32 0.0, %v2810_v22  ;;  %v10629_v21 = vadd.f32 %v6927_v24, %v2794_v29 }
 0xb7b   :  { %v2820_v31 = vmul.f32 1.442695, %v2815_v20  ;;  %v2813_v53 = vand.u32 2147483647, %v10627_v5 }
 0xb7c   :  { %v2818_v18 = vmul.f32 1.442695, %v2814_v27  ;;  %v2812_v33 = vand.u32 2147483647, %v10629_v21  ;;  %v2806_v27 = vmax.f32 %v10622_v17, 0.0 }
 0xb7d   :  { %8886 = vpow2.f32 %v2820_v31  ;;  %v2817_v50 = vsub.f32 0.0, %v2813_v53 }
 0xb7e   :  { %8888 = vpow2.f32 %v2818_v18  ;;  %v2816_v37 = vsub.f32 0.0, %v2812_v33 }
 0xb7f   :  { %v2824_v38 = vmul.f32 1.442695, %v2817_v50 }
 0xb80   :  { %v2822_v61 = vmul.f32 1.442695, %v2816_v37 }
 0xb81   :  { %8890 = vpow2.f32 %v2824_v38  ;;  %v2809_v38 = vmax.f32 %v10627_v5, 0.0 }
 0xb82   :  { %8892 = vpow2.f32 %v2822_v61 }
 0xb87   :  { %v8887_v42 = vpop.eup %8886 }
 0xb88   :  { %v8889_v54 = vpop.eup %8888  ;;  %v2835_v45 = vadd.f32 1.0, %v8887_v42  ;;  %v2838_v11 = vmul.f32 -0.5, %v8887_v42  ;;  %v2841_v41 = vand.u32 2147483647, %v8887_v42 }
 0xb89   :  { %v2826_v46 = vadd.f32 1.0, %v8889_v54  ;;  %v2829_v26 = vmul.f32 -0.5, %v8889_v54  ;;  %v2832_v60 = vand.u32 2147483647, %v8889_v54 }
 0xb8a   :  { %8894 = vlog2.f32 %v2835_v45  ;;  %v2839_v34 = vadd.f32 1.0, %v2838_v11  ;;  %vm2842_vm1 = vcmp.lt.f32.partialorder %v2841_v41, 0.0004427343 }
 0xb8b   :  { %v8891_v52 = vpop.eup %8890  ;;  %8896 = vlog2.f32 %v2826_v46  ;;  %v2830_v0 = vadd.f32 1.0, %v2829_v26  ;;  %vm2833_vm12 = vcmp.lt.f32.partialorder %v2832_v60, 0.0004427343 }
 0xb8c   :  { %v8893_v3 = vpop.eup %8892  ;;  %v2853_v9 = vadd.f32 1.0, %v8891_v52  ;;  %v2856_v2 = vmul.f32 -0.5, %v8891_v52  ;;  %v2840_v25 = vmul.f32 %v8887_v42, %v2839_v34  ;;  %v2859_v22 = vand.u32 2147483647, %v8891_v52 }
 0xb8d   :  { %v2844_v59 = vadd.f32 1.0, %v8893_v3  ;;  %v2847_v24 = vmul.f32 -0.5, %v8893_v3  ;;  %v2831_v16 = vmul.f32 %v8889_v54, %v2830_v0  ;;  %v2850_v31 = vand.u32 2147483647, %v8893_v3  ;;  %v6933_v0 = vld [vmem:[#allocation18] ss:$0 sm:$0xff] }
 0xb8e   :  { %8898 = vlog2.f32 %v2853_v9  ;;  %v2857_v13 = vadd.f32 1.0, %v2856_v2  ;;  %vm2860_vm13 = vcmp.lt.f32.partialorder %v2859_v22, 0.0004427343  ;;  %v2808_v9 = vmax.f32 %v10629_v21, 0.0 }
 0xb8f   :  { %8900 = vlog2.f32 %v2844_v59  ;;  %v2848_v29 = vadd.f32 1.0, %v2847_v24  ;;  %vm2851_vm15 = vcmp.lt.f32.partialorder %v2850_v31, 0.0004427343  ;;  %v6949_v31 = vld [vmem:[%s11356_s1 + $0x58] sm:$0xff] }
 0xb90   :  { %v2858_v42 = vmul.f32 %v8891_v52, %v2857_v13 }
 0xb91   :  { %v2849_v54 = vmul.f32 %v8893_v3, %v2848_v29 }
 0xb94   :  { %v8895_v6 = vpop.eup %8894 }
 0xb95   :  { %v8897_v32 = vpop.eup %8896  ;;  %v2837_v7 = vmul.f32 0.6931472, %v8895_v6  ;;  %v3004_v6 = vld [vmem:[%s11356_s1 + $0x10] sm:$0xff] }
 0xb96   :  { %v2828_v15 = vmul.f32 0.6931472, %v8897_v32 }
 0xb97   :  { %v2843_v20 = vsel %vm2842_vm1, %v2840_v25, %v2837_v7 }
 0xb98   :  { %v8899_v53 = vpop.eup %8898  ;;  %v2863_v18 = vadd.f32 %v2843_v20, %v2807_v19  ;;  %v2834_v33 = vsel %vm2833_vm12, %v2831_v16, %v2828_v15  ;;  %v3005_v19 = vld [vmem:[%s11356_s1 + $0x18] sm:$0xff]  ;;  %v6947_v16 = vld [vmem:[%s11356_s1 + $0x48] sm:$0xff] }
 0xb99   :  { %v8901_v50 = vpop.eup %8900  ;;  %v2862_v37 = vadd.f32 %v2834_v33, %v2806_v27  ;;  %v2855_v61 = vmul.f32 0.6931472, %v8899_v53  ;;  %v8391_v15 = vpack.c.bf16 %v3005_v19, %v3004_v6  ;;  %v6948_v27 = vld [vmem:[%s11356_s1 + $0x50] sm:$0xff] }
 0xb9a   :  { %8902 = vtanh.f32 %v2863_v18  ;;  %v2846_v45 = vmul.f32 0.6931472, %v8901_v50  ;;  %v8399_v33 = vpack.c.bf16 %v6949_v31, %v6948_v27 }
 0xb9b   :  { %8904 = vtanh.f32 %v2862_v37  ;;  %v2861_v46 = vsel %vm2860_vm13, %v2858_v42, %v2855_v61 }
 0xb9c   :  { %v2865_v11 = vadd.f32 %v2861_v46, %v2809_v38  ;;  %v2852_v59 = vsel %vm2851_vm15, %v2849_v54, %v2846_v45 }
 0xb9d   :  { %v2864_v26 = vadd.f32 %v2852_v59, %v2808_v9 }
 0xb9e   :  { %8906 = vtanh.f32 %v2865_v11 }
 0xb9f   :  { %8908 = vtanh.f32 %v2864_v26 }
 0xba4   :  { %v8903_v34 = vpop.eup %8902 }
 0xba5   :  { %v8905_v41 = vpop.eup %8904  ;;  %v2871_v52 = vmul.f32 %v8903_v34, %v10619_v1 }
 0xba6   :  { %v2870_v2 = vmul.f32 %v8905_v41, %v10622_v17  ;;  %v6954_v41 = vld [vmem:[#allocation19] ss:$0 sm:$0xff] }
 0xba7   :  { %v2964_v3 = vadd.f32 %v10602_v35, %v2871_v52 }
 0xba8   :  { %v8907_v24 = vpop.eup %8906  ;;  %v2963_v60 = vadd.f32 %v10604_v36, %v2870_v2  ;;  %v6946_v36 = vld [vmem:[%s11356_s1 + $0x40] sm:$0xff] }
 0xba9   :  { %v8909_v32 = vpop.eup %8908  ;;  %v2873_v7 = vmul.f32 %v8907_v24, %v10627_v5  ;;  %v10647_v1 = vadd.f32 %v6933_v0, %v2964_v3 }
 0xbaa   :  { %v10644_v25 = vadd.f32 %v6933_v0, %v2963_v60  ;;  %v2872_v13 = vmul.f32 %v8909_v32, %v10629_v21  ;;  %v8395_v21 = vpack.c.bf16 %v6947_v16, %v6946_v36 }
 0xbab   :  { %v2966_v17 = vadd.f32 %v10608_v55, %v2873_v7  ;;  %v2979_v29 = vrot.slane %v10647_v1, 7  ;;  %v2991_v42 = vrot.slane %v10647_v1, 1 }
 0xbac   :  { %v2965_v35 = vadd.f32 %v10610_v39, %v2872_v13  ;;  %7793 = vmatprep.mubr.msk.f32.mxu0 %vm515_vm0, %v10644_v25  ;;  %v2978_v55 = vrot.slane %v10644_v25, 7  ;;  %v2990_v61 = vrot.slane %v10644_v25, 1 }
 0xbad   :  { %v10655_v22 = vadd.f32 %v6933_v0, %v2966_v17  ;;  %7794 = vmatmul.mubr.msk.f32.vlgmr.msra.gmra.mrb[32].mxu0 %vm515_vm0, %v10647_v1 }
 0xbae   :  { %v10659_v5 = vadd.f32 %v6933_v0, %v2965_v35  ;;  %8390 = vmatpush3.bf16.msra.mxu0 %v10614_v44  ;;  %v2984_v50 = vsel %vm994_vm3, %v2978_v55, %v2979_v29  ;;  %v2996_v54 = vsel %vm1011_vm6, %v2990_v61, %v2991_v42 }
 0xbaf   :  { %8392 = vmatprep.subr.bf16.mxu0 %v8391_v15  ;;  %v2981_v39 = vrot.slane %v10655_v22, 7  ;;  %v2993_v9 = vrot.slane %v10655_v22, 1 }
 0xbb0   :  { %7796 = vmatprep.mubr.msk.f32.mxu0 %vm515_vm0, %v10659_v5  ;;  %v2980_v20 = vrot.slane %v10659_v5, 7  ;;  %v2992_v37 = vrot.slane %v10659_v5, 1 }
 0xbb1   :  { %7797 = vmatmul.mubr.msk.f32.gmra.mrb[34].mxu0 %vm515_vm0, %v10655_v22  ;;  %v2985_v44 = vsel %vm994_vm3, %v2981_v39, %v2978_v55  ;;  %v2997_v26 = vsel %vm1011_vm6, %v2993_v9, %v2990_v61 }
 0xbb2   :  { %8394 = vmatpush3.bf16.msra.mxu0 %v8391_v15  ;;  %v2986_v53 = vsel %vm10098_vm4, 0.0, %v2985_v44  ;;  %v2983_v18 = vsel %vm994_vm3, %v2979_v29, %v2980_v20  ;;  %v2982_v45 = vsel %vm994_vm3, %v2980_v20, %v2981_v39  ;;  %v2995_v46 = vsel %vm1011_vm6, %v2991_v42, %v2992_v37  ;;  %v3792_v42 = vld [vmem:[%s11358_s2] sm:$0xff] }
 0xbb3   :  { %7807 = vmatprep.mubr.msk.f32.mxu0 %vm515_vm0, %v2986_v53  ;;  %8396 = vmatprep.subr.bf16.mxu0 %v8395_v21  ;;  %v2988_v38 = vsel %vm10111_vm5, 0.0, %v2983_v18  ;;  %v2999_v11 = vsel %vm10132_vm7, 0.0, %v2995_v46  ;;  %v2994_v59 = vsel %vm1011_vm6, %v2992_v37, %v2993_v9  ;;  %v3001_v34 = vsel %vm10144_vm8, 0.0, %v2997_v26  ;;  %v3794_v46 = vld [vmem:[%s11358_s2 + $0x10] sm:$0xff]  ;;  %v3795_v9 = vld [vmem:[%s11358_s2 + $0x18] sm:$0xff] }
 0xbb5   :  { %7808 = vmatmul.mubr.msk.f32.vlgmr.msra.gmra.mrb[32].mxu0 %vm515_vm0, %v2984_v50  ;;  %v3797_v50 = vld [vmem:[%s11357_s29 + $0x8] sm:$0xff] }
 0xbb6   :  { %7810 = vmatprep.mubr.msk.f32.mxu0 %vm515_vm0, %v2988_v38  ;;  %8398 = vmatpush3.bf16.msra.mxu0 %v8395_v21 }
 0xbb7   :  { %8400 = vmatprep.subr.bf16.mxu0 %v8399_v33 }
 0xbb9   :  { %7811 = vmatmul.mubr.msk.f32.gmra.mrb[34].mxu0 %vm515_vm0, %v2982_v45  ;;  %v3793_v45 = vld [vmem:[%s11358_s2 + $0x8] sm:$0xff] }
 0xbba   :  { %8402 = vmatpush3.bf16.msra.mxu0 %v8399_v33  ;;  %7821 = vmatprep.mubr.msk.f32.mxu0 %vm515_vm0, %v2996_v54  ;;  %v3796_v33 = vld [vmem:[%s11357_s29] sm:$0xff]  ;;  %v8439_v54 = vpack.c.bf16 %v3793_v45, %v3792_v42 }
 0xbbb   :  { %8428 = vmatprep.subr.bf16.mxu0 %v10178_v14  ;;  %v8435_v61 = vpack.c.bf16 %v3797_v50, %v3796_v33 }
 0xbbd   :  { %7822 = vmatmul.mubr.msk.f32.vlgmr.msra.gmra.mrb[32].mxu0 %vm515_vm0, %v2999_v11  ;;  %v8443_v11 = vpack.c.bf16 %v3795_v9, %v3794_v46 }
 0xbbe   :  { %7824 = vmatprep.mubr.msk.f32.mxu0 %vm515_vm0, %v2994_v59  ;;  %8430 = vmatpush3.bf16.msra.mxu0 %v10178_v14 }
 0xbbf   :  { %8432 = vmatprep.subr.bf16.mxu0 %v10231_v51 }
 0xbc1   :  { %7825 = vmatmul.mubr.msk.f32.gmra.mrb[34].mxu0 %vm515_vm0, %v3001_v34 }
 0xbc2   :  { %8434 = vmatpush3.bf16.msra.mxu0 %v10231_v51 }
 0xc90   :  { %v7823_v52 = vpop.f32.mrb[32].mxu0 }
 0xc91   :  { %v3319_v2 = vadd.f32 %v7823_v52, %v6954_v41  ;;  %v3288_v3 = vpop.f32.mrb[33].mxu0  ;;  %v6981_v52 = vld [vmem:[#allocation24] ss:$0 sm:$0xff] }
 0xc92   :  { %v3318_v0 = vadd.f32 %v6954_v41, %v3288_v3 }
 0xc94   :  { %v8403_v24 = vpack.c.bf16 %v3319_v2, %v3318_v0  ;;  %v7826_v60 = vpop.f32.mrb[34].mxu0 }
 0xc95   :  { %v3321_v6 = vadd.f32 %v7826_v60, %v6954_v41  ;;  %v3298_v19 = vpop.f32.mrb[35].mxu0 }
 0xc96   :  { %v3320_v32 = vadd.f32 %v6954_v41, %v3298_v19  ;;  %8404 = vmatprep.subr.bf16.mxu1 %v8403_v24 }
 0xc97   :  { %8406 = vmatpush3.bf16.msra.mxu1 %v8403_v24 }
 0xc98   :  { %v8407_v7 = vpack.c.bf16 %v3321_v6, %v3320_v32 }
 0xc9a   :  { %8408 = vmatprep.subr.bf16.mxu1 %v8407_v7 }
 0xc9b   :  { %8410 = vmatpush3.bf16.msra.mxu1 %v8407_v7  ;;  %v6983_v7 = vld [vmem:[%s11359_s8 + $0x28] sm:$0xff] }
 0xc9c   :  { %8412 = vmatprep.subr.bf16.mxu1 %v10178_v14 }
 0xc9e   :  { %7836 = vmatmul.mubr.msk.f32.vlgmr.msra.gmra.mrb[24].mxu1 %vm515_vm0, %v10570_v8 }
 0xc9f   :  { %7838 = vmatprep.mubr.msk.f32.mxu1 %vm515_vm0, %v10575_v49  ;;  %8414 = vmatpush3.bf16.msra.mxu1 %v10178_v14 }
 0xca0   :  { %8416 = vmatprep.subr.bf16.mxu1 %v10231_v51 }
 0xca2   :  { %7839 = vmatmul.mubr.msk.f32.gmra.mrb[26].mxu1 %vm515_vm0, %v10580_v48 }
 0xca3   :  { %8418 = vmatpush3.bf16.msra.mxu1 %v10231_v51 }
 0xd71   :  { %v7837_v13 = vpop.f32.mrb[24].mxu1 }
 0xd72   :  { %v3390_v17 = vpop.f32.mrb[25].mxu1 }
 0xd73   :  { %7849 = vmatprep.mubr.msk.f32.mxu1 %vm515_vm0, %v3390_v17  ;;  %v6984_v17 = vld [vmem:[%s11359_s8 + $0x30] sm:$0xff] }
 0xd74   :  { %7850 = vmatmul.mubr.msk.f32.vlgmr.msra.gmra.mrb[28].mxu1 %vm515_vm0, %v7837_v13 }
 0xd75   :  { %v7840_v15 = vpop.f32.mrb[26].mxu1 }
 0xd76   :  { %v3400_v35 = vpop.f32.mrb[27].mxu1 }
 0xd77   :  { %7852 = vmatprep.mubr.msk.f32.mxu1 %vm515_vm0, %v3400_v35 }
 0xd78   :  { %7853 = vmatmul.mubr.msk.f32.gmra.mrb[30].mxu1 %vm515_vm0, %v7840_v15  ;;  %v6985_v15 = vld [vmem:[%s11359_s8 + $0x38] sm:$0xff] }
 0xd79   :  { %7863 = vmatprep.mubr.msk.f32.mxu1 %vm515_vm0, %v10531_v58  ;;  %v8451_v35 = vpack.c.bf16 %v6985_v15, %v6984_v17 }
 0xe47   :  { %v7851_v36 = vpop.f32.mrb[28].mxu1 }
 0xe48   :  { %v10728_v16 = vsub.f32 %v3319_v2, %v7851_v36  ;;  %v3487_v55 = vpop.f32.mrb[29].mxu1  ;;  %v4027_v36 = vld [vmem:[%s11359_s8] sm:$0xff] }
 0xe49   :  { %v10730_v39 = vsub.f32 %v3318_v0, %v3487_v55  ;;  %v4028_v55 = vld [vmem:[%s11359_s8 + $0x8] sm:$0xff] }
 0xe4a   :  { %v3511_v21 = vmul.f32 %v10728_v16, %v10728_v16 }
 0xe4b   :  { %v3510_v29 = vmul.f32 %v10730_v39, %v10730_v39  ;;  %v7854_v20 = vpop.f32.mrb[30].mxu1 }
 0xe4c   :  { %v10736_v27 = vsub.f32 %v3321_v6, %v7854_v20  ;;  %v3497_v31 = vpop.f32.mrb[31].mxu1 }
 0xe4d   :  { %v10738_v44 = vsub.f32 %v3320_v32, %v3497_v31  ;;  %v8419_v53 = vpack.c.bf16 %v3511_v21, %v3510_v29  ;;  %v6982_v32 = vld [vmem:[%s11359_s8 + $0x20] sm:$0xff]  ;;  %v10800_v21 = vpack.c.bf16 %v4028_v55, %v4027_v36 }
 0xe4e   :  { %v3513_v18 = vmul.f32 %v10736_v27, %v10736_v27  ;;  %v8447_v13 = vpack.c.bf16 %v6983_v7, %v6982_v32 }
 0xe4f   :  { %v3512_v37 = vmul.f32 %v10738_v44, %v10738_v44  ;;  %8420 = vmatprep.subr.bf16.mxu1 %v8419_v53 }
 0xe50   :  { %8422 = vmatpush3.bf16.msra.mxu1 %v8419_v53  ;;  %8448 = vmatprep.subr.bf16.mxu0 %v8447_v13 }
 0xe51   :  { %v8423_v38 = vpack.c.bf16 %v3513_v18, %v3512_v37 }
 0xe53   :  { %8424 = vmatprep.subr.bf16.mxu1 %v8423_v38 }
 0xe54   :  { %8426 = vmatpush3.bf16.msra.mxu1 %v8423_v38 }
 0xe55   :  { %8436 = vmatprep.subr.bf16.mxu1 %v8435_v61 }
 0xe57   :  { %7864 = vmatmul.mubr.msk.f32.vlgmr.msra.gmra.mrb[32].mxu1 %vm515_vm0, %v10570_v8 }
 0xe58   :  { %7866 = vmatprep.mubr.msk.f32.mxu1 %vm515_vm0, %v10575_v49  ;;  %8438 = vmatpush3.bf16.msra.mxu1 %v8435_v61  ;;  %v6971_v61 = vld [vmem:[#allocation21] ss:$0 sm:$0xff] }
 0xe59   :  { %8440 = vmatprep.subr.bf16.mxu1 %v8439_v54 }
 0xe5b   :  { %7867 = vmatmul.mubr.msk.f32.gmra.mrb[34].mxu1 %vm515_vm0, %v10580_v48 }
 0xe5c   :  { %7887 = vmatprep.mubr.msk.f32.mxu1 %vm1830_vm14, %v10385_v40 }
 0xe5f   :  { %7888 = vmatmul.mubr.msk.f32.vlgmr.msra.gmra.mrb[36].mxu1 %vm1830_vm14, %v10392_v57 }
 0xe60   :  { %8442 = vmatpush3.bf16.msra.mxu1 %v8439_v54  ;;  %7890 = vmatprep.mubr.msk.f32.mxu1 %vm1830_vm14, %v10397_v63  ;;  %v6972_v54 = vld [vmem:[#allocation22] ss:$0 sm:$0xff] }
 0xe61   :  { %8444 = vmatprep.subr.bf16.mxu1 %v8443_v11 }
 0xe63   :  { %7891 = vmatmul.mubr.msk.f32.gmra.mrb[38].mxu1 %vm1830_vm14, %v10402_v56 }
 0xe64   :  { %8446 = vmatpush3.bf16.msra.mxu1 %v8443_v11  ;;  %7901 = vmatprep.mubr.msk.f32.mxu1 %vm515_vm0, %v10407_v28 }
 0xe67   :  { %7902 = vmatmul.mubr.msk.f32.vlgmr.msra.gmra.mrb[36].mxu1 %vm515_vm0, %v10414_v4 }
 0xe68   :  { %7904 = vmatprep.mubr.msk.f32.mxu1 %vm515_vm0, %v10417_v62 }
 0xe6b   :  { %7905 = vmatmul.mubr.msk.f32.gmra.mrb[38].mxu1 %vm515_vm0, %v10424_v10 }
 0xe6c   :  { %7957 = vmatprep.mubr.msk.f32.mxu1 %vm515_vm0, %v10531_v58 }
 0xf2a   :  { %v7865_v59 = vpop.f32.mrb[32].mxu1 }
 0xf2b   :  { %v3580_v26 = vpop.f32.mrb[33].mxu1 }
 0xf2c   :  { %7877 = vmatprep.mubr.msk.f32.mxu0 %vm515_vm0, %v3580_v26 }
 0xf2d   :  { %7878 = vmatmul.mubr.msk.f32.vlgmr.msra.gmra.mrb[36].mxu0 %vm515_vm0, %v7865_v59 }
 0xf2e   :  { %v7868_v34 = vpop.f32.mrb[34].mxu1  ;;  %8450 = vmatpush3.bf16.msra.mxu0 %v8447_v13 }
 0xf2f   :  { %v3590_v41 = vpop.f32.mrb[35].mxu1  ;;  %8452 = vmatprep.subr.bf16.mxu0 %v8451_v35 }
 0xf30   :  { %7880 = vmatprep.mubr.msk.f32.mxu0 %vm515_vm0, %v3590_v41 }
 0xf31   :  { %7881 = vmatmul.mubr.msk.f32.gmra.mrb[38].mxu0 %vm515_vm0, %v7868_v34 }
 0xf32   :  { %8454 = vmatpush3.bf16.msra.mxu0 %v8451_v35 }
 0xf33   :  { %8456 = vmatprep.subr.bf16.mxu0 %v10800_v21 }
 0xf3a   :  { %v7903_v2 = vpop.f32.mrb[36].mxu1 }
 0xf3b   :  { %v10778_v3 = vadd.f32 %v7903_v2, %v6981_v52  ;;  %v3949_v58 = vpop.f32.mrb[37].mxu1 }
 0xf3c   :  { %v10780_v0 = vadd.f32 %v6981_v52, %v3949_v58 }
 0xf3d   :  { %3989 = vrot.lane.b32.xlu1 %v10778_v3, %s9728_s20 }
 0xf3e   :  { %3987 = vrot.lane.b32.xlu0 %v10780_v0, %s9728_s20  ;;  %v7906_v24 = vpop.f32.mrb[38].mxu1 }
 0xf3f   :  { %v10786_v60 = vadd.f32 %v7906_v24, %v6981_v52  ;;  %v3959_v6 = vpop.f32.mrb[39].mxu1 }
 0xf40   :  { %v10788_v19 = vadd.f32 %v6981_v52, %v3959_v6 }
 0xf41   :  { %3993 = vrot.lane.b32.xlu1 %v10786_v60, %s9728_s20 }
 0xf42   :  { %3991 = vrot.lane.b32.xlu0 %v10788_v19, %s9728_s20 }
0x1000   :  { %v7879_v29 = vpop.f32.mrb[36].mxu0 }
0x1001   :  { %v3683_v20 = vadd.f32 1e-05, %v7879_v29  ;;  %v3677_v31 = vpop.f32.mrb[37].mxu0 }
0x1002   :  { %v3678_v53 = vadd.f32 1e-05, %v3677_v31 }
0x1003   :  { %8910 = vrsqrt.f32 %v3683_v20 }
0x1004   :  { %8912 = vrsqrt.f32 %v3678_v53  ;;  %v7882_v18 = vpop.f32.mrb[38].mxu0 }
0x1005   :  { %v3693_v33 = vadd.f32 1e-05, %v7882_v18  ;;  %v3687_v50 = vpop.f32.mrb[39].mxu0 }
0x1006   :  { %v3688_v37 = vadd.f32 1e-05, %v3687_v50 }
0x1007   :  { %8914 = vrsqrt.f32 %v3693_v33 }
0x1008   :  { %8916 = vrsqrt.f32 %v3688_v37 }
0x100d   :  { %v8911_v38 = vpop.eup %8910 }
0x100e   :  { %v8913_v42 = vpop.eup %8912  ;;  %v3701_v45 = vmul.f32 %v8911_v38, %v10728_v16 }
0x100f   :  { %v3700_v46 = vmul.f32 %v8913_v42, %v10730_v39 }
0x1010   :  { %v3711_v9 = vmul.f32 %v6971_v61, %v3701_v45 }
0x1011   :  { %v8915_v11 = vpop.eup %8914  ;;  %v3710_v59 = vmul.f32 %v6971_v61, %v3700_v46 }
0x1012   :  { %v8917_v26 = vpop.eup %8916  ;;  %v10805_v34 = vadd.f32 %v6972_v54, %v3711_v9  ;;  %v3703_v41 = vmul.f32 %v8915_v11, %v10736_v27 }
0x1013   :  { %v3702_v52 = vmul.f32 %v8917_v26, %v10738_v44  ;;  %v10809_v2 = vadd.f32 %v6972_v54, %v3710_v59 }
0x1014   :  { %v3729_v58 = vand.u32 2147483647, %v10805_v34  ;;  %v3713_v24 = vmul.f32 %v6971_v61, %v3703_v41  ;;  %v3725_v41 = vmax.f32 %v10805_v34, 0.0 }
0x1015   :  { %v3712_v6 = vmul.f32 %v6971_v61, %v3702_v52  ;;  %v3728_v16 = vand.u32 2147483647, %v10809_v2 }
0x1016   :  { %v3733_v32 = vsub.f32 0.0, %v3729_v58  ;;  %v10813_v39 = vadd.f32 %v6972_v54, %v3713_v24 }
0x1017   :  { %v3732_v7 = vsub.f32 0.0, %v3728_v16  ;;  %v10815_v13 = vadd.f32 %v6972_v54, %v3712_v6 }
0x1018   :  { %v3738_v17 = vmul.f32 1.442695, %v3733_v32  ;;  %v3731_v15 = vand.u32 2147483647, %v10813_v39 }
0x1019   :  { %v3736_v27 = vmul.f32 1.442695, %v3732_v7  ;;  %v3730_v44 = vand.u32 2147483647, %v10815_v13 }
0x101a   :  { %8918 = vpow2.f32 %v3738_v17  ;;  %v3735_v35 = vsub.f32 0.0, %v3731_v15 }
0x101b   :  { %8920 = vpow2.f32 %v3736_v27  ;;  %v3734_v36 = vsub.f32 0.0, %v3730_v44  ;;  %v3724_v27 = vmax.f32 %v10809_v2, 0.0 }
0x101c   :  { %v3742_v55 = vmul.f32 1.442695, %v3735_v35 }
0x101d   :  { %v3740_v29 = vmul.f32 1.442695, %v3734_v36 }
0x101e   :  { %8922 = vpow2.f32 %v3742_v55 }
0x101f   :  { %8924 = vpow2.f32 %v3740_v29 }
0x1024   :  { %v8919_v20 = vpop.eup %8918 }
0x1025   :  { %v8921_v31 = vpop.eup %8920  ;;  %v3753_v53 = vadd.f32 1.0, %v8919_v20  ;;  %v3756_v38 = vmul.f32 -0.5, %v8919_v20  ;;  %v3759_v54 = vand.u32 2147483647, %v8919_v20 }
0x1026   :  { %v3744_v18 = vadd.f32 1.0, %v8921_v31  ;;  %v3747_v42 = vmul.f32 -0.5, %v8921_v31  ;;  %v3750_v59 = vand.u32 2147483647, %v8921_v31 }
0x1027   :  { %8926 = vlog2.f32 %v3753_v53  ;;  %v3757_v45 = vadd.f32 1.0, %v3756_v38  ;;  %vm3760_vm9 = vcmp.lt.f32.partialorder %v3759_v54, 0.0004427343 }
0x1028   :  { %v8923_v33 = vpop.eup %8922  ;;  %8928 = vlog2.f32 %v3744_v18  ;;  %v3748_v9 = vadd.f32 1.0, %v3747_v42  ;;  %vm3751_vm10 = vcmp.lt.f32.partialorder %v3750_v59, 0.0004427343  ;;  %v3727_v18 = vmax.f32 %v10813_v39, 0.0  ;;  %v3990_v59 = vpop.permute.xlu1 %3989 }
0x1029   :  { %v8925_v50 = vpop.eup %8924  ;;  %v3771_v37 = vadd.f32 1.0, %v8923_v33  ;;  %v3774_v46 = vmul.f32 -0.5, %v8923_v33  ;;  %v3758_v24 = vmul.f32 %v8919_v20, %v3757_v45  ;;  %v3777_v17 = vand.u32 2147483647, %v8923_v33 }
0x102a   :  { %v3762_v61 = vadd.f32 1.0, %v8925_v50  ;;  %v3765_v11 = vmul.f32 -0.5, %v8925_v50  ;;  %v3749_v32 = vmul.f32 %v8921_v31, %v3748_v9  ;;  %v3768_v44 = vand.u32 2147483647, %v8925_v50 }
0x102b   :  { %8930 = vlog2.f32 %v3771_v37  ;;  %v3775_v6 = vadd.f32 1.0, %v3774_v46  ;;  %vm3778_vm11 = vcmp.lt.f32.partialorder %v3777_v17, 0.0004427343  ;;  %v3726_v31 = vmax.f32 %v10815_v13, 0.0 }
0x102c   :  { %8932 = vlog2.f32 %v3762_v61  ;;  %v3766_v7 = vadd.f32 1.0, %v3765_v11  ;;  %vm3769_vm1 = vcmp.lt.f32.partialorder %v3768_v44, 0.0004427343 }
0x102d   :  { %v3776_v20 = vmul.f32 %v8923_v33, %v3775_v6  ;;  %v4030_v6 = vld [vmem:[%s11359_s8 + $0x18] sm:$0xff] }
0x102e   :  { %v3767_v61 = vmul.f32 %v8925_v50, %v3766_v7 }
0x1031   :  { %v8927_v26 = vpop.eup %8926 }
0x1032   :  { %v8929_v52 = vpop.eup %8928  ;;  %v3755_v58 = vmul.f32 0.6931472, %v8927_v26  ;;  %v3988_v26 = vpop.permute.xlu0 %3987 }
0x1033   :  { %v3746_v16 = vmul.f32 0.6931472, %v8929_v52 }
0x1034   :  { %v3761_v15 = vsel %vm3760_vm9, %v3758_v24, %v3755_v58  ;;  %v4029_v24 = vld [vmem:[%s11359_s8 + $0x10] sm:$0xff] }
0x1035   :  { %v8931_v35 = vpop.eup %8930  ;;  %v3781_v36 = vadd.f32 %v3761_v15, %v3725_v41  ;;  %v3752_v55 = vsel %vm3751_vm10, %v3749_v32, %v3746_v16 }
0x1036   :  { %v8933_v29 = vpop.eup %8932  ;;  %v3780_v53 = vadd.f32 %v3752_v55, %v3724_v27  ;;  %v3773_v37 = vmul.f32 0.6931472, %v8931_v35  ;;  %v6995_v55 = vld [vmem:[%s11359_s8 + $0x48] sm:$0xff] }
0x1037   :  { %8934 = vtanh.f32 %v3781_v36  ;;  %v3764_v38 = vmul.f32 0.6931472, %v8933_v29  ;;  %v6994_v36 = vld [vmem:[%s11359_s8 + $0x40] sm:$0xff] }
0x1038   :  { %8936 = vtanh.f32 %v3780_v53  ;;  %v3779_v42 = vsel %vm3778_vm11, %v3776_v20, %v3773_v37  ;;  %v8463_v37 = vpack.c.bf16 %v6995_v55, %v6994_v36 }
0x1039   :  { %v3770_v45 = vsel %vm3769_vm1, %v3767_v61, %v3764_v38  ;;  %v3783_v54 = vadd.f32 %v3779_v42, %v3727_v18  ;;  %v6997_v42 = vld [vmem:[%s11359_s8 + $0x58] sm:$0xff] }
0x103a   :  { %v3782_v46 = vadd.f32 %v3770_v45, %v3726_v31  ;;  %v6996_v31 = vld [vmem:[%s11359_s8 + $0x50] sm:$0xff] }
0x103b   :  { %8938 = vtanh.f32 %v3783_v54 }
0x103c   :  { %8940 = vtanh.f32 %v3782_v46 }
0x1041   :  { %v8935_v9 = vpop.eup %8934 }
0x1042   :  { %v8937_v11 = vpop.eup %8936  ;;  %v3789_v33 = vmul.f32 %v8935_v9, %v10805_v34 }
0x1043   :  { %v3788_v50 = vmul.f32 %v8937_v11, %v10809_v2  ;;  %v8459_v2 = vpack.c.bf16 %v4030_v6, %v4029_v24 }
0x1044   :  { %v3980_v41 = vmul.f32 %v10778_v3, %v3789_v33  ;;  %v3994_v3 = vpop.permute.xlu1 %3993  ;;  %v8467_v33 = vpack.c.bf16 %v6997_v42, %v6996_v31  ;;  %v10912_v31 = vld [vmem:[%s11335_s22 + $0x18] sm:$0xff] }
0x1045   :  { %v8939_v52 = vpop.eup %8938  ;;  %v3979_v58 = vmul.f32 %v10780_v0, %v3788_v50 }
0x1046   :  { %v8941_v16 = vpop.eup %8940  ;;  %v4000_v32 = vadd.f32 %v3990_v59, %v3980_v41  ;;  %v3791_v7 = vmul.f32 %v8939_v52, %v10813_v39  ;;  %v3992_v39 = vpop.permute.xlu0 %3991  ;;  %v10875_v52 = vld [vmem:[%s11335_s22] sm:$0xff] }
0x1047   :  { %v3999_v17 = vadd.f32 %v3988_v26, %v3979_v58  ;;  %v3790_v34 = vmul.f32 %v8941_v16, %v10815_v13  ;;  %v7002_v58 = vld [vmem:[#allocation25] ss:$0 sm:$0xff] }
0x1048   :  { %v3982_v15 = vmul.f32 %v10786_v60, %v3791_v7  ;;  %v4004_v27 = vrot.slane %v4000_v32, 7  ;;  %v4016_v44 = vrot.slane %v4000_v32, 1 }
0x1049   :  { %7915 = vmatprep.mubr.msk.f32.mxu0 %vm515_vm0, %v3999_v17  ;;  %v3981_v0 = vmul.f32 %v10788_v19, %v3790_v34  ;;  %v4003_v35 = vrot.slane %v3999_v17, 7  ;;  %v4015_v29 = vrot.slane %v3999_v17, 1 }
0x104a   :  { %7916 = vmatmul.mubr.msk.f32.vlgmr.msra.gmra.mrb[40].mxu0 %vm515_vm0, %v4000_v32  ;;  %v4002_v13 = vadd.f32 %v3994_v3, %v3982_v15 }
0x104b   :  { %8458 = vmatpush3.bf16.msra.mxu0 %v10800_v21  ;;  %v4001_v60 = vadd.f32 %v3992_v39, %v3981_v0  ;;  %v4009_v53 = vsel %vm994_vm3, %v4003_v35, %v4004_v27  ;;  %v4021_v18 = vsel %vm1011_vm6, %v4015_v29, %v4016_v44 }
0x104c   :  { %8460 = vmatprep.subr.bf16.mxu0 %v8459_v2  ;;  %v4006_v19 = vrot.slane %v4002_v13, 7  ;;  %v4018_v20 = vrot.slane %v4002_v13, 1 }
0x104d   :  { %v4017_v38 = vrot.slane %v4001_v60, 1  ;;  %7918 = vmatprep.mubr.msk.f32.mxu0 %vm515_vm0, %v4001_v60  ;;  %v4005_v61 = vrot.slane %v4001_v60, 7 }
0x104e   :  { %7919 = vmatmul.mubr.msk.f32.gmra.mrb[42].mxu0 %vm515_vm0, %v4002_v13  ;;  %v4010_v21 = vsel %vm994_vm3, %v4006_v19, %v4003_v35  ;;  %v4022_v45 = vsel %vm1011_vm6, %v4018_v20, %v4015_v29 }
0x104f   :  { %8462 = vmatpush3.bf16.msra.mxu0 %v8459_v2  ;;  %v4011_v54 = vsel %vm10098_vm4, 0.0, %v4010_v21  ;;  %v4008_v46 = vsel %vm994_vm3, %v4004_v27, %v4005_v61  ;;  %v4007_v9 = vsel %vm994_vm3, %v4005_v61, %v4006_v19  ;;  %v4020_v11 = vsel %vm1011_vm6, %v4016_v44, %v4017_v38  ;;  %v10907_v61 = vld [vmem:[%s11335_s22 + $0x10] sm:$0xff] }
0x1050   :  { %7929 = vmatprep.mubr.msk.f32.mxu0 %vm515_vm0, %v4011_v54  ;;  %8464 = vmatprep.subr.bf16.mxu0 %v8463_v37  ;;  %v4019_v59 = vsel %vm1011_vm6, %v4017_v38, %v4018_v20  ;;  %v4013_v50 = vsel %vm10111_vm5, 0.0, %v4008_v46  ;;  %v4024_v26 = vsel %vm10132_vm7, 0.0, %v4020_v11  ;;  %v4026_v41 = vsel %vm10144_vm8, 0.0, %v4022_v45  ;;  %v10902_v38 = vld [vmem:[%s11335_s22 + $0x8] sm:$0xff]  ;;  %v7021_v46 = vld [vmem:[%s11360_s6 + $0x20] sm:$0xff]  ;;  %v7023_v11 = vld [vmem:[%s11360_s6 + $0x30] sm:$0xff] }
0x1052   :  { %7930 = vmatmul.mubr.msk.f32.vlgmr.msra.gmra.mrb[40].mxu0 %vm515_vm0, %v4009_v53 }
0x1053   :  { %7932 = vmatprep.mubr.msk.f32.mxu0 %vm515_vm0, %v4013_v50  ;;  %8466 = vmatpush3.bf16.msra.mxu0 %v8463_v37 }
0x1054   :  { %8468 = vmatprep.subr.bf16.mxu0 %v8467_v33 }
0x1056   :  { %7933 = vmatmul.mubr.msk.f32.gmra.mrb[42].mxu0 %vm515_vm0, %v4007_v9  ;;  %v7022_v9 = vld [vmem:[%s11360_s6 + $0x28] sm:$0xff] }
0x1057   :  { %8470 = vmatpush3.bf16.msra.mxu0 %v8467_v33  ;;  %7943 = vmatprep.mubr.msk.f32.mxu0 %vm515_vm0, %v4021_v18  ;;  %v8503_v33 = vpack.c.bf16 %v7022_v9, %v7021_v46 }
0x105a   :  { %7944 = vmatmul.mubr.msk.f32.vlgmr.msra.gmra.mrb[40].mxu0 %vm515_vm0, %v4024_v26  ;;  %v4845_v26 = vld [vmem:[%s11360_s6] sm:$0xff] }
0x105b   :  { %7946 = vmatprep.mubr.msk.f32.mxu0 %vm515_vm0, %v4019_v59  ;;  %v7024_v59 = vld [vmem:[%s11360_s6 + $0x38] sm:$0xff] }
0x105c   :  { %v8507_v50 = vpack.c.bf16 %v7024_v59, %v7023_v11 }
0x105e   :  { %7947 = vmatmul.mubr.msk.f32.gmra.mrb[42].mxu0 %vm515_vm0, %v4026_v41  ;;  %v4846_v41 = vld [vmem:[%s11360_s6 + $0x8] sm:$0xff] }
0x105f   :  { %7985 = vmatprep.mubr.msk.f32.mxu0 %vm515_vm0, %v10875_v52 }
0x112d   :  { %v7945_v24 = vpop.f32.mrb[40].mxu0 }
0x112e   :  { %v4344_v6 = vadd.f32 %v7945_v24, %v7002_v58  ;;  %v4313_v16 = vpop.f32.mrb[41].mxu0 }
0x112f   :  { %v4343_v32 = vadd.f32 %v7002_v58, %v4313_v16 }
0x1131   :  { %v8471_v7 = vpack.c.bf16 %v4344_v6, %v4343_v32  ;;  %v7948_v17 = vpop.f32.mrb[42].mxu0 }
0x1132   :  { %v4346_v34 = vadd.f32 %v7948_v17, %v7002_v58  ;;  %v4323_v15 = vpop.f32.mrb[43].mxu0 }
0x1133   :  { %v4345_v2 = vadd.f32 %v7002_v58, %v4323_v15  ;;  %8472 = vmatprep.subr.bf16.mxu1 %v8471_v7  ;;  %v10928_v58 = vpack.c.bf16 %v4846_v41, %v4845_v26 }
0x1134   :  { %8474 = vmatpush3.bf16.msra.mxu1 %v8471_v7 }
0x1135   :  { %v8475_v27 = vpack.c.bf16 %v4346_v34, %v4345_v2 }
0x1137   :  { %8476 = vmatprep.subr.bf16.mxu1 %v8475_v27 }
0x1138   :  { %8478 = vmatpush3.bf16.msra.mxu1 %v8475_v27  ;;  %v7019_v27 = vld [vmem:[#allocation27] ss:$0 sm:$0xff] }
0x1139   :  { %8480 = vmatprep.subr.bf16.mxu1 %v10178_v14 }
0x113b   :  { %7958 = vmatmul.mubr.msk.f32.vlgmr.msra.gmra.mrb[40].mxu1 %vm515_vm0, %v10570_v8 }
0x113c   :  { %7960 = vmatprep.mubr.msk.f32.mxu1 %vm515_vm0, %v10575_v49  ;;  %8482 = vmatpush3.bf16.msra.mxu1 %v10178_v14 }
0x113d   :  { %8484 = vmatprep.subr.bf16.mxu1 %v10231_v51 }
0x113f   :  { %7961 = vmatmul.mubr.msk.f32.gmra.mrb[42].mxu1 %vm515_vm0, %v10580_v48 }
0x1140   :  { %8486 = vmatpush3.bf16.msra.mxu1 %v10231_v51 }
0x1141   :  { %8496 = vmatprep.subr.bf16.mxu1 %v10178_v14 }
0x120e   :  { %v7959_v44 = vpop.f32.mrb[40].mxu1 }
0x120f   :  { %v4415_v3 = vpop.f32.mrb[41].mxu1 }
0x1210   :  { %7971 = vmatprep.mubr.msk.f32.mxu1 %vm515_vm0, %v4415_v3 }
0x1211   :  { %7972 = vmatmul.mubr.msk.f32.vlgmr.msra.gmra.mrb[44].mxu1 %vm515_vm0, %v7959_v44 }
0x1212   :  { %v7962_v8 = vpop.f32.mrb[42].mxu1  ;;  %8498 = vmatpush3.bf16.msra.mxu1 %v10178_v14 }
0x1213   :  { %v4425_v49 = vpop.f32.mrb[43].mxu1  ;;  %8500 = vmatprep.subr.bf16.mxu1 %v10231_v51 }
0x1214   :  { %7974 = vmatprep.mubr.msk.f32.mxu1 %vm515_vm0, %v4425_v49 }
0x1215   :  { %7975 = vmatmul.mubr.msk.f32.gmra.mrb[46].mxu1 %vm515_vm0, %v7962_v8  ;;  %v7020_v8 = vld [vmem:[#allocation28] ss:$0 sm:$0xff] }
0x1216   :  { %8502 = vmatpush3.bf16.msra.mxu1 %v10231_v51 }
0x12e4   :  { %v7973_v48 = vpop.f32.mrb[44].mxu1 }
0x12e5   :  { %v4532_v0 = vsub.f32 %v4344_v6, %v7973_v48  ;;  %v4512_v35 = vpop.f32.mrb[45].mxu1 }
0x12e6   :  { %v4531_v36 = vsub.f32 %v4343_v32, %v4512_v35 }
0x12e7   :  { %v4536_v55 = vmul.f32 %v4532_v0, %v4532_v0 }
0x12e8   :  { %v4535_v29 = vmul.f32 %v4531_v36, %v4531_v36  ;;  %v7976_v39 = vpop.f32.mrb[46].mxu1 }
0x12e9   :  { %v10897_v13 = vsub.f32 %v4346_v34, %v7976_v39  ;;  %v4522_v60 = vpop.f32.mrb[47].mxu1 }
0x12ea   :  { %v4533_v53 = vsub.f32 %v4345_v2, %v4522_v60  ;;  %v8487_v18 = vpack.c.bf16 %v4536_v55, %v4535_v29 }
0x12eb   :  { %v4538_v19 = vmul.f32 %v10897_v13, %v10897_v13 }
0x12ec   :  { %v4537_v37 = vmul.f32 %v4533_v53, %v4533_v53  ;;  %8488 = vmatprep.subr.bf16.mxu0 %v8487_v18 }
0x12ed   :  { %8490 = vmatpush3.bf16.msra.mxu0 %v8487_v18 }
0x12ee   :  { %v8491_v20 = vpack.c.bf16 %v4538_v19, %v4537_v37 }
0x12f0   :  { %8492 = vmatprep.subr.bf16.mxu0 %v8491_v20 }
0x12f1   :  { %8494 = vmatpush3.bf16.msra.mxu0 %v8491_v20 }
0x12f2   :  { %8504 = vmatprep.subr.bf16.mxu0 %v8503_v33 }
0x12f4   :  { %7986 = vmatmul.mubr.msk.f32.vlgmr.msra.gmra.mrb[44].mxu0 %vm515_vm0, %v10902_v38 }
0x12f5   :  { %7988 = vmatprep.mubr.msk.f32.mxu0 %vm515_vm0, %v10907_v61  ;;  %8506 = vmatpush3.bf16.msra.mxu0 %v8503_v33 }
0x12f6   :  { %8508 = vmatprep.subr.bf16.mxu0 %v8507_v50 }
0x12f8   :  { %7989 = vmatmul.mubr.msk.f32.gmra.mrb[46].mxu0 %vm515_vm0, %v10912_v31 }
0x12f9   :  { %8510 = vmatpush3.bf16.msra.mxu0 %v8507_v50 }
0x12fa   :  { %8512 = vmatprep.subr.bf16.mxu0 %v10928_v58 }
0x13c7   :  { %v7987_v42 = vpop.f32.mrb[44].mxu0 }
0x13c8   :  { %v4605_v21 = vpop.f32.mrb[45].mxu0 }
0x13c9   :  { %7999 = vmatprep.mubr.msk.f32.mxu1 %vm515_vm0, %v4605_v21 }
0x13ca   :  { %8000 = vmatmul.mubr.msk.f32.vlgmr.msra.gmra.mrb[48].mxu1 %vm515_vm0, %v7987_v42 }
0x13cb   :  { %v7990_v45 = vpop.f32.mrb[46].mxu0 }
0x13cc   :  { %v4615_v54 = vpop.f32.mrb[47].mxu0 }
0x13cd   :  { %8002 = vmatprep.mubr.msk.f32.mxu1 %vm515_vm0, %v4615_v54 }
0x13ce   :  { %8003 = vmatmul.mubr.msk.f32.gmra.mrb[50].mxu1 %vm515_vm0, %v7990_v45 }
0x13cf   :  { %8055 = vmatprep.mubr.msk.f32.mxu1 %vm515_vm0, %v10875_v52 }
0x149d   :  { %v8001_v24 = vpop.f32.mrb[48].mxu1 }
0x149e   :  { %v4708_v6 = vadd.f32 1e-05, %v8001_v24  ;;  %v4702_v16 = vpop.f32.mrb[49].mxu1 }
0x149f   :  { %v4703_v32 = vadd.f32 1e-05, %v4702_v16 }
0x14a0   :  { %8942 = vrsqrt.f32 %v4708_v6 }
0x14a1   :  { %8944 = vrsqrt.f32 %v4703_v32  ;;  %v8004_v7 = vpop.f32.mrb[50].mxu1 }
0x14a2   :  { %v4718_v17 = vadd.f32 1e-05, %v8004_v7  ;;  %v4712_v34 = vpop.f32.mrb[51].mxu1 }
0x14a3   :  { %v4713_v15 = vadd.f32 1e-05, %v4712_v34 }
0x14a4   :  { %8946 = vrsqrt.f32 %v4718_v17 }
0x14a5   :  { %8948 = vrsqrt.f32 %v4713_v15 }
0x14aa   :  { %v8943_v2 = vpop.eup %8942 }
0x14ab   :  { %v8945_v44 = vpop.eup %8944  ;;  %v4726_v3 = vmul.f32 %v8943_v2, %v4532_v0 }
0x14ac   :  { %v4725_v49 = vmul.f32 %v8945_v44, %v4531_v36 }
0x14ad   :  { %v4736_v48 = vmul.f32 %v7019_v27, %v4726_v3 }
0x14ae   :  { %v8947_v35 = vpop.eup %8946  ;;  %v4735_v55 = vmul.f32 %v7019_v27, %v4725_v49 }
0x14af   :  { %v8949_v29 = vpop.eup %8948  ;;  %v10931_v39 = vadd.f32 %v7020_v8, %v4736_v48  ;;  %v4728_v60 = vmul.f32 %v8947_v35, %v10897_v13 }
0x14b0   :  { %v4727_v18 = vmul.f32 %v8949_v29, %v4533_v53  ;;  %v10934_v19 = vadd.f32 %v7020_v8, %v4735_v55 }
0x14b1   :  { %v4754_v37 = vand.u32 2147483647, %v10931_v39  ;;  %v4738_v20 = vmul.f32 %v7019_v27, %v4728_v60  ;;  %v4750_v35 = vmax.f32 %v10931_v39, 0.0 }
0x14b2   :  { %v4737_v42 = vmul.f32 %v7019_v27, %v4727_v18  ;;  %v4753_v21 = vand.u32 2147483647, %v10934_v19 }
0x14b3   :  { %v4758_v0 = vsub.f32 0.0, %v4754_v37  ;;  %v10938_v45 = vadd.f32 %v7020_v8, %v4738_v20 }
0x14b4   :  { %v4757_v36 = vsub.f32 0.0, %v4753_v21  ;;  %v10940_v54 = vadd.f32 %v7020_v8, %v4737_v42 }
0x14b5   :  { %v4763_v46 = vmul.f32 1.442695, %v4758_v0  ;;  %v4756_v9 = vand.u32 2147483647, %v10938_v45 }
0x14b6   :  { %v4761_v11 = vmul.f32 1.442695, %v4757_v36  ;;  %v4755_v13 = vand.u32 2147483647, %v10940_v54  ;;  %v4749_v36 = vmax.f32 %v10934_v19, 0.0 }
0x14b7   :  { %8950 = vpow2.f32 %v4763_v46  ;;  %v4760_v53 = vsub.f32 0.0, %v4756_v9 }
0x14b8   :  { %8952 = vpow2.f32 %v4761_v11  ;;  %v4759_v33 = vsub.f32 0.0, %v4755_v13 }
0x14b9   :  { %v4767_v59 = vmul.f32 1.442695, %v4760_v53 }
0x14ba   :  { %v4765_v50 = vmul.f32 1.442695, %v4759_v33 }
0x14bb   :  { %8954 = vpow2.f32 %v4767_v59  ;;  %v4752_v59 = vmax.f32 %v10938_v45, 0.0 }
0x14bc   :  { %8956 = vpow2.f32 %v4765_v50 }
0x14c1   :  { %v8951_v26 = vpop.eup %8950 }
0x14c2   :  { %v8953_v41 = vpop.eup %8952  ;;  %v4778_v24 = vadd.f32 1.0, %v8951_v26  ;;  %v4781_v17 = vmul.f32 -0.5, %v8951_v26  ;;  %v4784_v27 = vand.u32 2147483647, %v8951_v26 }
0x14c3   :  { %v4769_v6 = vadd.f32 1.0, %v8953_v41  ;;  %v4772_v15 = vmul.f32 -0.5, %v8953_v41  ;;  %v4775_v49 = vand.u32 2147483647, %v8953_v41 }
0x14c4   :  { %8958 = vlog2.f32 %v4778_v24  ;;  %v4782_v2 = vadd.f32 1.0, %v4781_v17  ;;  %vm4785_vm12 = vcmp.lt.f32.partialorder %v4784_v27, 0.0004427343 }
0x14c5   :  { %v8955_v16 = vpop.eup %8954  ;;  %8960 = vlog2.f32 %v4769_v6  ;;  %v4773_v3 = vadd.f32 1.0, %v4772_v15  ;;  %vm4776_vm13 = vcmp.lt.f32.partialorder %v4775_v49, 0.0004427343  ;;  %v4751_v6 = vmax.f32 %v10940_v54, 0.0 }
0x14c6   :  { %v8957_v32 = vpop.eup %8956  ;;  %v4796_v7 = vadd.f32 1.0, %v8955_v16  ;;  %v4799_v44 = vmul.f32 -0.5, %v8955_v16  ;;  %v4783_v60 = vmul.f32 %v8951_v26, %v4782_v2  ;;  %v4802_v21 = vand.u32 2147483647, %v8955_v16 }
0x14c7   :  { %v4787_v34 = vadd.f32 1.0, %v8957_v32  ;;  %v4790_v8 = vmul.f32 -0.5, %v8957_v32  ;;  %v4774_v20 = vmul.f32 %v8953_v41, %v4773_v3  ;;  %v4793_v46 = vand.u32 2147483647, %v8957_v32  ;;  %v4848_v3 = vld [vmem:[%s11360_s6 + $0x18] sm:$0xff] }
0x14c8   :  { %8962 = vlog2.f32 %v4796_v7  ;;  %v4800_v18 = vadd.f32 1.0, %v4799_v44  ;;  %vm4803_vm15 = vcmp.lt.f32.partialorder %v4802_v21, 0.0004427343  ;;  %v4847_v44 = vld [vmem:[%s11360_s6 + $0x10] sm:$0xff] }
0x14c9   :  { %8964 = vlog2.f32 %v4787_v34  ;;  %v4791_v42 = vadd.f32 1.0, %v4790_v8  ;;  %vm4794_vm9 = vcmp.lt.f32.partialorder %v4793_v46, 0.0004427343 }
0x14ca   :  { %v4801_v26 = vmul.f32 %v8955_v16, %v4800_v18 }
0x14cb   :  { %v4792_v41 = vmul.f32 %v8957_v32, %v4791_v42  ;;  %v7036_v42 = vld [vmem:[%s11360_s6 + $0x58] sm:$0xff] }
0x14ce   :  { %v8959_v48 = vpop.eup %8958 }
0x14cf   :  { %v8961_v55 = vpop.eup %8960  ;;  %v4780_v29 = vmul.f32 0.6931472, %v8959_v48 }
0x14d0   :  { %v4771_v37 = vmul.f32 0.6931472, %v8961_v55 }
0x14d1   :  { %v4786_v0 = vsel %vm4785_vm12, %v4783_v60, %v4780_v29  ;;  %v8515_v29 = vpack.c.bf16 %v4848_v3, %v4847_v44  ;;  %v7034_v60 = vld [vmem:[%s11360_s6 + $0x48] sm:$0xff] }
0x14d2   :  { %v8963_v9 = vpop.eup %8962  ;;  %v4806_v11 = vadd.f32 %v4786_v0, %v4750_v35  ;;  %v4777_v13 = vsel %vm4776_vm13, %v4774_v20, %v4771_v37 }
0x14d3   :  { %v8965_v53 = vpop.eup %8964  ;;  %v4805_v33 = vadd.f32 %v4777_v13, %v4749_v36  ;;  %v4798_v50 = vmul.f32 0.6931472, %v8963_v9 }
0x14d4   :  { %8966 = vtanh.f32 %v4806_v11  ;;  %v4789_v24 = vmul.f32 0.6931472, %v8965_v53 }
0x14d5   :  { %8968 = vtanh.f32 %v4805_v33  ;;  %v4804_v7 = vsel %vm4803_vm15, %v4801_v26, %v4798_v50 }
0x14d6   :  { %v4795_v17 = vsel %vm4794_vm9, %v4792_v41, %v4789_v24  ;;  %v4808_v34 = vadd.f32 %v4804_v7, %v4752_v59  ;;  %v7041_v7 = vld [vmem:[#allocation30] ss:$0 sm:$0xff] }
0x14d7   :  { %v4807_v15 = vadd.f32 %v4795_v17, %v4751_v6 }
0x14d8   :  { %8970 = vtanh.f32 %v4808_v34 }
0x14d9   :  { %8972 = vtanh.f32 %v4807_v15 }
0x14de   :  { %v8967_v2 = vpop.eup %8966 }
0x14df   :  { %v8969_v16 = vpop.eup %8968  ;;  %v4814_v27 = vmul.f32 %v8967_v2, %v10931_v39 }
0x14e0   :  { %v4813_v32 = vmul.f32 %v8969_v16, %v10934_v19  ;;  %v7033_v19 = vld [vmem:[%s11360_s6 + $0x40] sm:$0xff] }
0x14e1   :  { %v10956_v35 = vadd.f32 %v4814_v27, %v10647_v1  ;;  %v8519_v37 = vpack.c.bf16 %v7034_v60, %v7033_v19 }
0x14e2   :  { %v8971_v8 = vpop.eup %8970  ;;  %v10953_v49 = vadd.f32 %v4813_v32, %v10644_v25 }
0x14e3   :  { %v8973_v48 = vpop.eup %8972  ;;  %v4816_v55 = vmul.f32 %v8971_v8, %v10938_v45  ;;  %v4834_v11 = vrot.slane %v10956_v35, 1 }
0x14e4   :  { %8013 = vmatprep.mubr.msk.f32.mxu0 %vm515_vm0, %v10953_v49  ;;  %v4815_v39 = vmul.f32 %v8973_v48, %v10940_v54  ;;  %v4821_v45 = vrot.slane %v10953_v49, 7  ;;  %v4822_v54 = vrot.slane %v10956_v35, 7  ;;  %v4833_v9 = vrot.slane %v10953_v49, 1 }
0x14e5   :  { %8014 = vmatmul.mubr.msk.f32.vlgmr.msra.gmra.mrb[48].mxu0 %vm515_vm0, %v10956_v35  ;;  %v10967_v25 = vadd.f32 %v4816_v55, %v10655_v22  ;;  %v7035_v22 = vld [vmem:[%s11360_s6 + $0x50] sm:$0xff] }
0x14e6   :  { %8514 = vmatpush3.bf16.msra.mxu0 %v10928_v58  ;;  %v10971_v1 = vadd.f32 %v4815_v39, %v10659_v5  ;;  %v8523_v0 = vpack.c.bf16 %v7036_v42, %v7035_v22  ;;  %v4827_v36 = vsel %vm994_vm3, %v4821_v45, %v4822_v54  ;;  %v4839_v33 = vsel %vm1011_vm6, %v4833_v9, %v4834_v11 }
0x14e7   :  { %8516 = vmatprep.subr.bf16.mxu0 %v8515_v29  ;;  %v4824_v18 = vrot.slane %v10967_v25, 7  ;;  %v4836_v50 = vrot.slane %v10967_v25, 1 }
0x14e8   :  { %8016 = vmatprep.mubr.msk.f32.mxu0 %vm515_vm0, %v10971_v1  ;;  %v4823_v20 = vrot.slane %v10971_v1, 7  ;;  %v4835_v13 = vrot.slane %v10971_v1, 1 }
0x14e9   :  { %8017 = vmatmul.mubr.msk.f32.gmra.mrb[50].mxu0 %vm515_vm0, %v10967_v25  ;;  %v4828_v5 = vsel %vm994_vm3, %v4824_v18, %v4821_v45  ;;  %v4840_v41 = vsel %vm1011_vm6, %v4836_v50, %v4833_v9 }
0x14ea   :  { %8518 = vmatpush3.bf16.msra.mxu0 %v8515_v29  ;;  %v4829_v58 = vsel %vm10098_vm4, 0.0, %v4828_v5  ;;  %v4826_v21 = vsel %vm994_vm3, %v4822_v54, %v4823_v20  ;;  %v4825_v53 = vsel %vm994_vm3, %v4823_v20, %v4824_v18  ;;  %v4838_v59 = vsel %vm1011_vm6, %v4834_v11, %v4835_v13 }
0x14eb   :  { %8027 = vmatprep.mubr.msk.f32.mxu0 %vm515_vm0, %v4829_v58  ;;  %8520 = vmatprep.subr.bf16.mxu0 %v8519_v37  ;;  %v4831_v46 = vsel %vm10111_vm5, 0.0, %v4826_v21  ;;  %v4842_v26 = vsel %vm10132_vm7, 0.0, %v4838_v59  ;;  %v4837_v24 = vsel %vm1011_vm6, %v4835_v13, %v4836_v50  ;;  %v4844_v6 = vsel %vm10144_vm8, 0.0, %v4840_v41  ;;  %v5635_v13 = vld [vmem:[%s11362_s10] sm:$0xff]  ;;  %v5637_v59 = vld [vmem:[%s11362_s10 + $0x10] sm:$0xff]  ;;  %v5638_v50 = vld [vmem:[%s11362_s10 + $0x18] sm:$0xff] }
0x14ed   :  { %8028 = vmatmul.mubr.msk.f32.vlgmr.msra.gmra.mrb[48].mxu0 %vm515_vm0, %v4827_v36  ;;  %v5640_v36 = vld [vmem:[%s11361_s7 + $0x8] sm:$0xff] }
0x14ee   :  { %8030 = vmatprep.mubr.msk.f32.mxu0 %vm515_vm0, %v4831_v46  ;;  %8522 = vmatpush3.bf16.msra.mxu0 %v8519_v37 }
0x14ef   :  { %8524 = vmatprep.subr.bf16.mxu0 %v8523_v0 }
0x14f1   :  { %8031 = vmatmul.mubr.msk.f32.gmra.mrb[50].mxu0 %vm515_vm0, %v4825_v53  ;;  %v5636_v53 = vld [vmem:[%s11362_s10 + $0x8] sm:$0xff] }
0x14f2   :  { %8526 = vmatpush3.bf16.msra.mxu0 %v8523_v0  ;;  %8041 = vmatprep.mubr.msk.f32.mxu0 %vm515_vm0, %v4839_v33  ;;  %v5639_v0 = vld [vmem:[%s11361_s7] sm:$0xff]  ;;  %v8563_v33 = vpack.c.bf16 %v5636_v53, %v5635_v13 }
0x14f3   :  { %8552 = vmatprep.subr.bf16.mxu0 %v10178_v14  ;;  %v8559_v11 = vpack.c.bf16 %v5640_v36, %v5639_v0 }
0x14f5   :  { %8042 = vmatmul.mubr.msk.f32.vlgmr.msra.gmra.mrb[48].mxu0 %vm515_vm0, %v4842_v26  ;;  %v8567_v26 = vpack.c.bf16 %v5638_v50, %v5637_v59 }
0x14f6   :  { %8044 = vmatprep.mubr.msk.f32.mxu0 %vm515_vm0, %v4837_v24  ;;  %8554 = vmatpush3.bf16.msra.mxu0 %v10178_v14 }
0x14f7   :  { %8556 = vmatprep.subr.bf16.mxu0 %v10231_v51 }
0x14f9   :  { %8045 = vmatmul.mubr.msk.f32.gmra.mrb[50].mxu0 %vm515_vm0, %v4844_v6 }
0x14fa   :  { %8558 = vmatpush3.bf16.msra.mxu0 %v10231_v51 }
0x15c8   :  { %v8043_v17 = vpop.f32.mrb[48].mxu0 }
0x15c9   :  { %v5162_v34 = vadd.f32 %v8043_v17, %v7041_v7  ;;  %v5131_v15 = vpop.f32.mrb[49].mxu0  ;;  %v7069_v17 = vld [vmem:[%s11363_s11 + $0x20] sm:$0xff] }
0x15ca   :  { %v5161_v2 = vadd.f32 %v7041_v7, %v5131_v15 }
0x15cc   :  { %v8527_v16 = vpack.c.bf16 %v5162_v34, %v5161_v2  ;;  %v8046_v27 = vpop.f32.mrb[50].mxu0 }
0x15cd   :  { %v5164_v32 = vadd.f32 %v8046_v27, %v7041_v7  ;;  %v5141_v44 = vpop.f32.mrb[51].mxu0 }
0x15ce   :  { %v5163_v3 = vadd.f32 %v7041_v7, %v5141_v44  ;;  %8528 = vmatprep.subr.bf16.mxu1 %v8527_v16  ;;  %v5871_v44 = vld [vmem:[%s11363_s11 + $0x8] sm:$0xff] }
0x15cf   :  { %8530 = vmatpush3.bf16.msra.mxu1 %v8527_v16  ;;  %v7072_v16 = vld [vmem:[%s11363_s11 + $0x38] sm:$0xff] }
0x15d0   :  { %v8531_v8 = vpack.c.bf16 %v5164_v32, %v5163_v3 }
0x15d2   :  { %8532 = vmatprep.subr.bf16.mxu1 %v8531_v8 }
0x15d3   :  { %8534 = vmatpush3.bf16.msra.mxu1 %v8531_v8 }
0x15d4   :  { %8536 = vmatprep.subr.bf16.mxu1 %v10178_v14 }
0x15d6   :  { %8056 = vmatmul.mubr.msk.f32.vlgmr.msra.gmra.mrb[52].mxu1 %vm515_vm0, %v10902_v38 }
0x15d7   :  { %8058 = vmatprep.mubr.msk.f32.mxu1 %vm515_vm0, %v10907_v61  ;;  %8538 = vmatpush3.bf16.msra.mxu1 %v10178_v14 }
0x15d8   :  { %8540 = vmatprep.subr.bf16.mxu1 %v10231_v51 }
0x15da   :  { %8059 = vmatmul.mubr.msk.f32.gmra.mrb[54].mxu1 %vm515_vm0, %v10912_v31 }
0x15db   :  { %8542 = vmatpush3.bf16.msra.mxu1 %v10231_v51 }
0x16a9   :  { %v8057_v48 = vpop.f32.mrb[52].mxu1 }
0x16aa   :  { %v5233_v55 = vpop.f32.mrb[53].mxu1 }
0x16ab   :  { %8069 = vmatprep.mubr.msk.f32.mxu1 %vm515_vm0, %v5233_v55 }
0x16ac   :  { %8070 = vmatmul.mubr.msk.f32.vlgmr.msra.gmra.mrb[56].mxu1 %vm515_vm0, %v8057_v48 }
0x16ad   :  { %v8060_v29 = vpop.f32.mrb[54].mxu1 }
0x16ae   :  { %v5243_v39 = vpop.f32.mrb[55].mxu1 }
0x16af   :  { %8072 = vmatprep.mubr.msk.f32.mxu1 %vm515_vm0, %v5243_v39 }
0x16b0   :  { %8073 = vmatmul.mubr.msk.f32.gmra.mrb[58].mxu1 %vm515_vm0, %v8060_v29 }
0x16b1   :  { %8083 = vmatprep.mubr.msk.f32.mxu1 %vm515_vm0, %v10875_v52 }
0x177f   :  { %v8071_v19 = vpop.f32.mrb[56].mxu1 }
0x1780   :  { %v11039_v60 = vsub.f32 %v5162_v34, %v8071_v19  ;;  %v5330_v45 = vpop.f32.mrb[57].mxu1  ;;  %v7070_v34 = vld [vmem:[%s11363_s11 + $0x28] sm:$0xff] }
0x1781   :  { %v11041_v18 = vsub.f32 %v5161_v2, %v5330_v45  ;;  %v8571_v15 = vpack.c.bf16 %v7070_v34, %v7069_v17  ;;  %v7071_v2 = vld [vmem:[%s11363_s11 + $0x30] sm:$0xff] }
0x1782   :  { %v5354_v37 = vmul.f32 %v11039_v60, %v11039_v60  ;;  %v8575_v27 = vpack.c.bf16 %v7072_v16, %v7071_v2 }
0x1783   :  { %v5353_v54 = vmul.f32 %v11041_v18, %v11041_v18  ;;  %v8074_v20 = vpop.f32.mrb[58].mxu1  ;;  %8572 = vmatprep.subr.bf16.mxu0 %v8571_v15 }
0x1784   :  { %v11047_v22 = vsub.f32 %v5164_v32, %v8074_v20  ;;  %v5340_v42 = vpop.f32.mrb[59].mxu1  ;;  %v5870_v32 = vld [vmem:[%s11363_s11] sm:$0xff]  ;;  %v7058_v20 = vld [vmem:[#allocation31] ss:$0 sm:$0xff] }
0x1785   :  { %v11049_v5 = vsub.f32 %v5163_v3, %v5340_v42  ;;  %v8543_v58 = vpack.c.bf16 %v5354_v37, %v5353_v54  ;;  %v11111_v3 = vpack.c.bf16 %v5871_v44, %v5870_v32 }
0x1786   :  { %v5356_v21 = vmul.f32 %v11047_v22, %v11047_v22 }
0x1787   :  { %v5355_v46 = vmul.f32 %v11049_v5, %v11049_v5  ;;  %8544 = vmatprep.subr.bf16.mxu1 %v8543_v58 }
0x1788   :  { %8546 = vmatpush3.bf16.msra.mxu1 %v8543_v58 }
0x1789   :  { %v8547_v9 = vpack.c.bf16 %v5356_v21, %v5355_v46  ;;  %v7059_v21 = vld [vmem:[#allocation33] ss:$0 sm:$0xff] }
0x178b   :  { %8548 = vmatprep.subr.bf16.mxu1 %v8547_v9 }
0x178c   :  { %8550 = vmatpush3.bf16.msra.mxu1 %v8547_v9 }
0x178d   :  { %8560 = vmatprep.subr.bf16.mxu1 %v8559_v11 }
0x178f   :  { %8084 = vmatmul.mubr.msk.f32.vlgmr.msra.gmra.mrb[60].mxu1 %vm515_vm0, %v10902_v38 }
0x1790   :  { %8086 = vmatprep.mubr.msk.f32.mxu1 %vm515_vm0, %v10907_v61  ;;  %8562 = vmatpush3.bf16.msra.mxu1 %v8559_v11 }
0x1791   :  { %8564 = vmatprep.subr.bf16.mxu1 %v8563_v33 }
0x1793   :  { %8087 = vmatmul.mubr.msk.f32.gmra.mrb[62].mxu1 %vm515_vm0, %v10912_v31 }
0x1794   :  { %8107 = vmatprep.mubr.msk.f32.mxu1 %vm1830_vm14, %v10385_v40 }
0x1797   :  { %8108 = vmatmul.mubr.msk.f32.vlgmr.msra.gmra.mrb[64].mxu1 %vm1830_vm14, %v10392_v57 }
0x1798   :  { %8566 = vmatpush3.bf16.msra.mxu1 %v8563_v33  ;;  %8110 = vmatprep.mubr.msk.f32.mxu1 %vm1830_vm14, %v10397_v63 }
0x1799   :  { %8568 = vmatprep.subr.bf16.mxu1 %v8567_v26 }
0x179b   :  { %8111 = vmatmul.mubr.msk.f32.gmra.mrb[66].mxu1 %vm1830_vm14, %v10402_v56 }
0x179c   :  { %8570 = vmatpush3.bf16.msra.mxu1 %v8567_v26  ;;  %8121 = vmatprep.mubr.msk.f32.mxu1 %vm515_vm0, %v10407_v28  ;;  %v7068_v28 = vld [vmem:[#allocation34] ss:$0 sm:$0xff] }
0x179f   :  { %8122 = vmatmul.mubr.msk.f32.vlgmr.msra.gmra.mrb[64].mxu1 %vm515_vm0, %v10414_v4 }
0x17a0   :  { %8124 = vmatprep.mubr.msk.f32.mxu1 %vm515_vm0, %v10417_v62 }
0x17a3   :  { %8125 = vmatmul.mubr.msk.f32.gmra.mrb[66].mxu1 %vm515_vm0, %v10424_v10 }
0x17a4   :  { %8177 = vmatprep.mubr.msk.f32.mxu1 %vm515_vm0, %v10875_v52 }
0x1862   :  { %v8085_v40 = vpop.f32.mrb[60].mxu1 }
0x1863   :  { %v5423_v57 = vpop.f32.mrb[61].mxu1 }
0x1864   :  { %8097 = vmatprep.mubr.msk.f32.mxu0 %vm515_vm0, %v5423_v57 }
0x1865   :  { %8098 = vmatmul.mubr.msk.f32.vlgmr.msra.gmra.mrb[52].mxu0 %vm515_vm0, %v8085_v40 }
0x1866   :  { %v8088_v63 = vpop.f32.mrb[62].mxu1  ;;  %8574 = vmatpush3.bf16.msra.mxu0 %v8571_v15 }
0x1867   :  { %v5433_v56 = vpop.f32.mrb[63].mxu1  ;;  %8576 = vmatprep.subr.bf16.mxu0 %v8575_v27 }
0x1868   :  { %8100 = vmatprep.mubr.msk.f32.mxu0 %vm515_vm0, %v5433_v56 }
0x1869   :  { %8101 = vmatmul.mubr.msk.f32.gmra.mrb[54].mxu0 %vm515_vm0, %v8088_v63 }
0x186a   :  { %8578 = vmatpush3.bf16.msra.mxu0 %v8575_v27 }
0x186b   :  { %8580 = vmatprep.subr.bf16.mxu0 %v11111_v3 }
0x1872   :  { %v8123_v4 = vpop.f32.mrb[64].mxu1 }
0x1873   :  { %v11089_v62 = vadd.f32 %v8123_v4, %v7068_v28  ;;  %v5792_v10 = vpop.f32.mrb[65].mxu1 }
0x1874   :  { %v11091_v52 = vadd.f32 %v7068_v28, %v5792_v10 }
0x1875   :  { %5832 = vrot.lane.b32.xlu1 %v11089_v62, %s9728_s20 }
0x1876   :  { %5830 = vrot.lane.b32.xlu0 %v11091_v52, %s9728_s20  ;;  %v8126_v24 = vpop.f32.mrb[66].mxu1 }
0x1877   :  { %v11097_v41 = vadd.f32 %v8126_v24, %v7068_v28  ;;  %v5802_v6 = vpop.f32.mrb[67].mxu1 }
0x1878   :  { %v11099_v7 = vadd.f32 %v7068_v28, %v5802_v6 }
0x1879   :  { %5836 = vrot.lane.b32.xlu1 %v11097_v41, %s9728_s20 }
0x187a   :  { %5834 = vrot.lane.b32.xlu0 %v11099_v7, %s9728_s20 }
0x1938   :  { %v8099_v8 = vpop.f32.mrb[52].mxu0 }
0x1939   :  { %v5526_v48 = vadd.f32 1e-05, %v8099_v8  ;;  %v5520_v55 = vpop.f32.mrb[53].mxu0 }
0x193a   :  { %v5521_v29 = vadd.f32 1e-05, %v5520_v55 }
0x193b   :  { %8974 = vrsqrt.f32 %v5526_v48 }
0x193c   :  { %8976 = vrsqrt.f32 %v5521_v29  ;;  %v8102_v39 = vpop.f32.mrb[54].mxu0 }
0x193d   :  { %v5536_v19 = vadd.f32 1e-05, %v8102_v39  ;;  %v5530_v45 = vpop.f32.mrb[55].mxu0 }
0x193e   :  { %v5531_v37 = vadd.f32 1e-05, %v5530_v45 }
0x193f   :  { %8978 = vrsqrt.f32 %v5536_v19 }
0x1940   :  { %8980 = vrsqrt.f32 %v5531_v37 }
0x1945   :  { %v8975_v54 = vpop.eup %8974 }
0x1946   :  { %v8977_v42 = vpop.eup %8976  ;;  %v5544_v58 = vmul.f32 %v8975_v54, %v11039_v60 }
0x1947   :  { %v5543_v0 = vmul.f32 %v8977_v42, %v11041_v18 }
0x1948   :  { %v5554_v36 = vmul.f32 %v7058_v20, %v5544_v58 }
0x1949   :  { %v8979_v46 = vpop.eup %8978  ;;  %v5553_v9 = vmul.f32 %v7058_v20, %v5543_v0 }
0x194a   :  { %v8981_v11 = vpop.eup %8980  ;;  %v11116_v13 = vadd.f32 %v7059_v21, %v5554_v36  ;;  %v5546_v53 = vmul.f32 %v8979_v46, %v11047_v22 }
0x194b   :  { %v5545_v33 = vmul.f32 %v8981_v11, %v11049_v5  ;;  %v11120_v59 = vadd.f32 %v7059_v21, %v5553_v9 }
0x194c   :  { %v5572_v50 = vand.u32 2147483647, %v11116_v13  ;;  %v5556_v26 = vmul.f32 %v7058_v20, %v5546_v53  ;;  %v5568_v42 = vmax.f32 %v11116_v13, 0.0 }
0x194d   :  { %v5555_v40 = vmul.f32 %v7058_v20, %v5545_v33  ;;  %v5571_v60 = vand.u32 2147483647, %v11120_v59 }
0x194e   :  { %v5576_v57 = vsub.f32 0.0, %v5572_v50  ;;  %v11124_v18 = vadd.f32 %v7059_v21, %v5556_v26  ;;  %v5567_v50 = vmax.f32 %v11120_v59, 0.0 }
0x194f   :  { %v5575_v63 = vsub.f32 0.0, %v5571_v60  ;;  %v11126_v56 = vadd.f32 %v7059_v21, %v5555_v40 }
0x1950   :  { %v5581_v28 = vmul.f32 1.442695, %v5576_v57  ;;  %v5574_v4 = vand.u32 2147483647, %v11124_v18 }
0x1951   :  { %v5579_v22 = vmul.f32 1.442695, %v5575_v63  ;;  %v5573_v5 = vand.u32 2147483647, %v11126_v56 }
0x1952   :  { %8982 = vpow2.f32 %v5581_v28  ;;  %v5578_v10 = vsub.f32 0.0, %v5574_v4  ;;  %v5570_v4 = vmax.f32 %v11124_v18, 0.0 }
0x1953   :  { %8984 = vpow2.f32 %v5579_v22  ;;  %v5577_v24 = vsub.f32 0.0, %v5573_v5 }
0x1954   :  { %v5585_v6 = vmul.f32 1.442695, %v5578_v10 }
0x1955   :  { %v5583_v17 = vmul.f32 1.442695, %v5577_v24 }
0x1956   :  { %8986 = vpow2.f32 %v5585_v6  ;;  %v5569_v6 = vmax.f32 %v11126_v56, 0.0 }
0x1957   :  { %8988 = vpow2.f32 %v5583_v17 }
0x195c   :  { %v8983_v34 = vpop.eup %8982 }
0x195d   :  { %v8985_v15 = vpop.eup %8984  ;;  %v5596_v2 = vadd.f32 1.0, %v8983_v34  ;;  %v5599_v8 = vmul.f32 -0.5, %v8983_v34  ;;  %v5602_v39 = vand.u32 2147483647, %v8983_v34 }
0x195e   :  { %v5587_v16 = vadd.f32 1.0, %v8985_v15  ;;  %v5590_v55 = vmul.f32 -0.5, %v8985_v15  ;;  %v5593_v54 = vand.u32 2147483647, %v8985_v15 }
0x195f   :  { %8990 = vlog2.f32 %v5596_v2  ;;  %v5600_v29 = vadd.f32 1.0, %v5599_v8  ;;  %vm5603_vm14 = vcmp.lt.f32.partialorder %v5602_v39, 0.0004427343  ;;  %v5833_v8 = vpop.permute.xlu1 %5832 }
0x1960   :  { %v8987_v27 = vpop.eup %8986  ;;  %8992 = vlog2.f32 %v5587_v16  ;;  %v5591_v45 = vadd.f32 1.0, %v5590_v55  ;;  %vm5594_vm10 = vcmp.lt.f32.partialorder %v5593_v54, 0.0004427343 }
0x1961   :  { %v8989_v32 = vpop.eup %8988  ;;  %v5614_v44 = vadd.f32 1.0, %v8987_v27  ;;  %v5617_v19 = vmul.f32 -0.5, %v8987_v27  ;;  %v5601_v0 = vmul.f32 %v8983_v34, %v5600_v29  ;;  %v5620_v53 = vand.u32 2147483647, %v8987_v27 }
0x1962   :  { %v5605_v48 = vadd.f32 1.0, %v8989_v32  ;;  %v5608_v37 = vmul.f32 -0.5, %v8989_v32  ;;  %v5592_v9 = vmul.f32 %v8985_v15, %v5591_v45  ;;  %v5611_v26 = vand.u32 2147483647, %v8989_v32  ;;  %v5873_v45 = vld [vmem:[%s11363_s11 + $0x18] sm:$0xff] }
0x1963   :  { %8994 = vlog2.f32 %v5614_v44  ;;  %v5618_v36 = vadd.f32 1.0, %v5617_v19  ;;  %vm5621_vm11 = vcmp.lt.f32.partialorder %v5620_v53, 0.0004427343  ;;  %v5872_v19 = vld [vmem:[%s11363_s11 + $0x10] sm:$0xff] }
0x1964   :  { %8996 = vlog2.f32 %v5605_v48  ;;  %v5609_v11 = vadd.f32 1.0, %v5608_v37  ;;  %vm5612_vm1 = vcmp.lt.f32.partialorder %v5611_v26, 0.0004427343  ;;  %v5831_v48 = vpop.permute.xlu0 %5830 }
0x1965   :  { %v5619_v5 = vmul.f32 %v8987_v27, %v5618_v36 }
0x1966   :  { %v5610_v24 = vmul.f32 %v8989_v32, %v5609_v11 }
0x1969   :  { %v8991_v20 = vpop.eup %8990 }
0x196a   :  { %v8993_v58 = vpop.eup %8992  ;;  %v5598_v21 = vmul.f32 0.6931472, %v8991_v20 }
0x196b   :  { %v5589_v46 = vmul.f32 0.6931472, %v8993_v58 }
0x196c   :  { %v5604_v33 = vsel %vm5603_vm14, %v5601_v0, %v5598_v21 }
0x196d   :  { %v8995_v40 = vpop.eup %8994  ;;  %v5624_v60 = vadd.f32 %v5604_v33, %v5568_v42  ;;  %v5595_v57 = vsel %vm5594_vm10, %v5592_v9, %v5589_v46  ;;  %v7081_v46 = vld [vmem:[%s11363_s11 + $0x40] sm:$0xff]  ;;  %v7082_v9 = vld [vmem:[%s11363_s11 + $0x48] sm:$0xff] }
0x196e   :  { %v8997_v63 = vpop.eup %8996  ;;  %v5623_v28 = vadd.f32 %v5595_v57, %v5567_v50  ;;  %v5616_v22 = vmul.f32 0.6931472, %v8995_v40  ;;  %v8587_v50 = vpack.c.bf16 %v7082_v9, %v7081_v46  ;;  %v7083_v57 = vld [vmem:[%s11363_s11 + $0x50] sm:$0xff] }
0x196f   :  { %8998 = vtanh.f32 %v5624_v60  ;;  %v5607_v10 = vmul.f32 0.6931472, %v8997_v63  ;;  %v7084_v63 = vld [vmem:[%s11363_s11 + $0x58] sm:$0xff] }
0x1970   :  { %9000 = vtanh.f32 %v5623_v28  ;;  %v5622_v17 = vsel %vm5621_vm11, %v5619_v5, %v5616_v22 }
0x1971   :  { %v5613_v34 = vsel %vm5612_vm1, %v5610_v24, %v5607_v10  ;;  %v5626_v15 = vadd.f32 %v5622_v17, %v5570_v4  ;;  %v8591_v24 = vpack.c.bf16 %v7084_v63, %v7083_v57 }
0x1972   :  { %v5625_v2 = vadd.f32 %v5613_v34, %v5569_v6  ;;  %v7089_v34 = vld [vmem:[#allocation36] ss:$0 sm:$0xff] }
0x1973   :  { %9002 = vtanh.f32 %v5626_v15 }
0x1974   :  { %9004 = vtanh.f32 %v5625_v2 }
0x1979   :  { %v8999_v16 = vpop.eup %8998 }
0x197a   :  { %v9001_v44 = vpop.eup %9000  ;;  %v5632_v27 = vmul.f32 %v8999_v16, %v11116_v13 }
0x197b   :  { %v5631_v32 = vmul.f32 %v9001_v44, %v11120_v59  ;;  %v8583_v59 = vpack.c.bf16 %v5873_v45, %v5872_v19 }
0x197c   :  { %v5823_v55 = vmul.f32 %v11089_v62, %v5632_v27  ;;  %v5837_v62 = vpop.permute.xlu1 %5836 }
0x197d   :  { %v9003_v29 = vpop.eup %9002  ;;  %v5822_v39 = vmul.f32 %v11091_v52, %v5631_v32 }
0x197e   :  { %v9005_v37 = vpop.eup %9004  ;;  %v5843_v54 = vadd.f32 %v5833_v8, %v5823_v55  ;;  %v5634_v20 = vmul.f32 %v9003_v29, %v11124_v18  ;;  %v5835_v18 = vpop.permute.xlu0 %5834 }
0x197f   :  { %v5842_v42 = vadd.f32 %v5831_v48, %v5822_v39  ;;  %v5633_v13 = vmul.f32 %v9005_v37, %v11126_v56 }
0x1980   :  { %v5825_v58 = vmul.f32 %v11097_v41, %v5634_v20  ;;  %v5847_v21 = vrot.slane %v5843_v54, 7  ;;  %v5859_v0 = vrot.slane %v5843_v54, 1 }
0x1981   :  { %8135 = vmatprep.mubr.msk.f32.mxu0 %vm515_vm0, %v5842_v42  ;;  %v5824_v52 = vmul.f32 %v11099_v7, %v5633_v13  ;;  %v5846_v36 = vrot.slane %v5842_v42, 7  ;;  %v5858_v11 = vrot.slane %v5842_v42, 1 }
0x1982   :  { %8136 = vmatmul.mubr.msk.f32.vlgmr.msra.gmra.mrb[56].mxu0 %vm515_vm0, %v5843_v54  ;;  %v5845_v56 = vadd.f32 %v5837_v62, %v5825_v58  ;;  %v9052_v62 = vld [vmem:[%s11335_s22 + $0x10] sm:$0xff] }
0x1983   :  { %8582 = vmatpush3.bf16.msra.mxu0 %v11111_v3  ;;  %v5844_v41 = vadd.f32 %v5835_v18, %v5824_v52  ;;  %v5852_v53 = vsel %vm994_vm3, %v5846_v36, %v5847_v21  ;;  %v5864_v33 = vsel %vm1011_vm6, %v5858_v11, %v5859_v0  ;;  %v9053_v52 = vld [vmem:[%s11335_s22 + $0x18] sm:$0xff]  ;;  %v6664_v18 = vld [vmem:[%s9957_s13] sm:$0xff] }
0x1984   :  { %8584 = vmatprep.subr.bf16.mxu0 %v8583_v59  ;;  %v5849_v7 = vrot.slane %v5845_v56, 7  ;;  %v5861_v26 = vrot.slane %v5845_v56, 1 }
0x1985   :  { %v5860_v40 = vrot.slane %v5844_v41, 1  ;;  %8138 = vmatprep.mubr.msk.f32.mxu0 %vm515_vm0, %v5844_v41  ;;  %v5848_v60 = vrot.slane %v5844_v41, 7  ;;  %v6666_v41 = vld [vmem:[%s9957_s13 + $0x10] sm:$0xff] }
0x1986   :  { %8139 = vmatmul.mubr.msk.f32.gmra.mrb[58].mxu0 %vm515_vm0, %v5845_v56  ;;  %v5853_v3 = vsel %vm994_vm3, %v5849_v7, %v5846_v36  ;;  %v5865_v28 = vsel %vm1011_vm6, %v5861_v26, %v5858_v11  ;;  %v6665_v56 = vld [vmem:[%s9957_s13 + $0x8] sm:$0xff] }
0x1987   :  { %8586 = vmatpush3.bf16.msra.mxu0 %v8583_v59  ;;  %v5854_v4 = vsel %vm10098_vm4, 0.0, %v5853_v3  ;;  %v5851_v22 = vsel %vm994_vm3, %v5847_v21, %v5848_v60  ;;  %v5850_v5 = vsel %vm994_vm3, %v5848_v60, %v5849_v7  ;;  %v5863_v10 = vsel %vm1011_vm6, %v5859_v0, %v5860_v40 }
0x1988   :  { %8149 = vmatprep.mubr.msk.f32.mxu0 %vm515_vm0, %v5854_v4  ;;  %8588 = vmatprep.subr.bf16.mxu0 %v8587_v50  ;;  %v5862_v6 = vsel %vm1011_vm6, %v5860_v40, %v5861_v26  ;;  %v5856_v23 = vsel %vm10111_vm5, 0.0, %v5851_v22  ;;  %v5867_v17 = vsel %vm10132_vm7, 0.0, %v5863_v10  ;;  %v5869_v12 = vsel %vm10144_vm8, 0.0, %v5865_v28  ;;  %v7106_v22 = vld [vmem:[#allocation37] ss:$0 sm:$0xff] }
0x198a   :  { %8150 = vmatmul.mubr.msk.f32.vlgmr.msra.gmra.mrb[56].mxu0 %vm515_vm0, %v5852_v53  ;;  %v8627_v53 = vpack.c.bf16 %v6665_v56, %v6664_v18 }
0x198b   :  { %8152 = vmatprep.mubr.msk.f32.mxu0 %vm515_vm0, %v5856_v23  ;;  %8590 = vmatpush3.bf16.msra.mxu0 %v8587_v50 }
0x198c   :  { %8592 = vmatprep.subr.bf16.mxu0 %v8591_v24 }
0x198e   :  { %8153 = vmatmul.mubr.msk.f32.gmra.mrb[58].mxu0 %vm515_vm0, %v5850_v5 }
0x198f   :  { %8594 = vmatpush3.bf16.msra.mxu0 %v8591_v24  ;;  %8163 = vmatprep.mubr.msk.f32.mxu0 %vm515_vm0, %v5864_v33  ;;  %v6667_v33 = vld [vmem:[%s9957_s13 + $0x18] sm:$0xff] }
0x1990   :  { %v8631_v7 = vpack.c.bf16 %v6667_v33, %v6666_v41  ;;  %v7107_v24 = vld [vmem:[#allocation39] ss:$0 sm:$0xff] }
0x1992   :  { %8164 = vmatmul.mubr.msk.f32.vlgmr.msra.gmra.mrb[56].mxu0 %vm515_vm0, %v5867_v17 }
0x1993   :  { %8166 = vmatprep.mubr.msk.f32.mxu0 %vm515_vm0, %v5862_v6 }
0x1996   :  { %8167 = vmatmul.mubr.msk.f32.gmra.mrb[58].mxu0 %vm515_vm0, %v5869_v12 }
0x1997   :  { %8205 = vmatprep.mubr.msk.f32.mxu0 %vm515_vm0, %v9050_v30 }
0x1a65   :  { %v8165_v15 = vpop.f32.mrb[56].mxu0 }
0x1a66   :  { %v6187_v2 = vadd.f32 %v8165_v15, %v7089_v34  ;;  %v6156_v16 = vpop.f32.mrb[57].mxu0 }
0x1a67   :  { %v6186_v44 = vadd.f32 %v7089_v34, %v6156_v16 }
0x1a69   :  { %v8595_v27 = vpack.c.bf16 %v6187_v2, %v6186_v44  ;;  %v8168_v43 = vpop.f32.mrb[58].mxu0 }
0x1a6a   :  { %v6189_v8 = vadd.f32 %v8168_v43, %v7089_v34  ;;  %v6166_v32 = vpop.f32.mrb[59].mxu0 }
0x1a6b   :  { %v6188_v48 = vadd.f32 %v7089_v34, %v6166_v32  ;;  %8596 = vmatprep.subr.bf16.mxu1 %v8595_v27 }
0x1a6c   :  { %8598 = vmatpush3.bf16.msra.mxu1 %v8595_v27 }
0x1a6d   :  { %v8599_v55 = vpack.c.bf16 %v6189_v8, %v6188_v48 }
0x1a6f   :  { %8600 = vmatprep.subr.bf16.mxu1 %v8599_v55 }
0x1a70   :  { %8602 = vmatpush3.bf16.msra.mxu1 %v8599_v55 }
0x1a71   :  { %8604 = vmatprep.subr.bf16.mxu1 %v10178_v14 }
0x1a73   :  { %8178 = vmatmul.mubr.msk.f32.vlgmr.msra.gmra.mrb[68].mxu1 %vm515_vm0, %v10902_v38 }
0x1a74   :  { %8180 = vmatprep.mubr.msk.f32.mxu1 %vm515_vm0, %v10907_v61  ;;  %8606 = vmatpush3.bf16.msra.mxu1 %v10178_v14 }
0x1a75   :  { %8608 = vmatprep.subr.bf16.mxu1 %v10231_v51 }
0x1a77   :  { %8181 = vmatmul.mubr.msk.f32.gmra.mrb[70].mxu1 %vm515_vm0, %v10912_v31 }
0x1a78   :  { %8610 = vmatpush3.bf16.msra.mxu1 %v10231_v51 }
0x1a79   :  { %8620 = vmatprep.subr.bf16.mxu1 %v10178_v14 }
0x1b46   :  { %v8179_v47 = vpop.f32.mrb[68].mxu1 }
0x1b47   :  { %v6258_v29 = vpop.f32.mrb[69].mxu1 }
0x1b48   :  { %8191 = vmatprep.mubr.msk.f32.mxu1 %vm515_vm0, %v6258_v29 }
0x1b49   :  { %8192 = vmatmul.mubr.msk.f32.vlgmr.msra.gmra.mrb[72].mxu1 %vm515_vm0, %v8179_v47 }
0x1b4a   :  { %v8182_v38 = vpop.f32.mrb[70].mxu1  ;;  %8622 = vmatpush3.bf16.msra.mxu1 %v10178_v14 }
0x1b4b   :  { %v6268_v61 = vpop.f32.mrb[71].mxu1  ;;  %8624 = vmatprep.subr.bf16.mxu1 %v10231_v51 }
0x1b4c   :  { %8194 = vmatprep.mubr.msk.f32.mxu1 %vm515_vm0, %v6268_v61 }
0x1b4d   :  { %8195 = vmatmul.mubr.msk.f32.gmra.mrb[74].mxu1 %vm515_vm0, %v8182_v38 }
0x1b4e   :  { %8626 = vmatpush3.bf16.msra.mxu1 %v10231_v51  ;;  %v9051_v51 = vld [vmem:[%s11335_s22 + $0x8] sm:$0xff] }
0x1b4f   :  { %8635 = vmatprep.subr.bf16.mxu1 %v8627_v53 }
0x1c1c   :  { %v8193_v31 = vpop.f32.mrb[72].mxu1 }
0x1c1d   :  { %v6375_v39 = vsub.f32 %v6187_v2, %v8193_v31  ;;  %v6355_v19 = vpop.f32.mrb[73].mxu1 }
0x1c1e   :  { %v6374_v45 = vsub.f32 %v6186_v44, %v6355_v19 }
0x1c1f   :  { %v6379_v37 = vmul.f32 %v6375_v39, %v6375_v39 }
0x1c20   :  { %v6378_v54 = vmul.f32 %v6374_v45, %v6374_v45  ;;  %v8196_v20 = vpop.f32.mrb[74].mxu1 }
0x1c21   :  { %v6377_v14 = vsub.f32 %v6189_v8, %v8196_v20  ;;  %v6365_v42 = vpop.f32.mrb[75].mxu1 }
0x1c22   :  { %v6376_v13 = vsub.f32 %v6188_v48, %v6365_v42  ;;  %v8611_v58 = vpack.c.bf16 %v6379_v37, %v6378_v54 }
0x1c23   :  { %v6381_v59 = vmul.f32 %v6377_v14, %v6377_v14 }
0x1c24   :  { %v6380_v21 = vmul.f32 %v6376_v13, %v6376_v13  ;;  %8612 = vmatprep.subr.bf16.mxu0 %v8611_v58 }
0x1c25   :  { %8614 = vmatpush3.bf16.msra.mxu0 %v8611_v58 }
0x1c26   :  { %v8615_v0 = vpack.c.bf16 %v6381_v59, %v6380_v21 }
0x1c28   :  { %8616 = vmatprep.subr.bf16.mxu0 %v8615_v0 }
0x1c29   :  { %8618 = vmatpush3.bf16.msra.mxu0 %v8615_v0 }
0x1c2a   :  { %8628 = vmatprep.subr.bf16.mxu0 %v8627_v53 }
0x1c2c   :  { %8206 = vmatmul.mubr.msk.f32.vlgmr.msra.gmra.mrb[60].mxu0 %vm515_vm0, %v9051_v51 }
0x1c2d   :  { %8208 = vmatprep.mubr.msk.f32.mxu0 %vm515_vm0, %v9052_v62  ;;  %8630 = vmatpush3.bf16.msra.mxu0 %v8627_v53 }
0x1c2e   :  { %8632 = vmatprep.subr.bf16.mxu0 %v8631_v7 }
0x1c30   :  { %8209 = vmatmul.mubr.msk.f32.gmra.mrb[62].mxu0 %vm515_vm0, %v9053_v52 }
0x1c31   :  { %8634 = vmatpush3.bf16.msra.mxu0 %v8631_v7 }
0x1cff   :  { %v8207_v36 = vpop.f32.mrb[60].mxu0 }
0x1d00   :  { %v6448_v46 = vpop.f32.mrb[61].mxu0 }
0x1d01   :  { %8219 = vmatprep.mubr.msk.f32.mxu1 %vm515_vm0, %v6448_v46 }
0x1d02   :  { %8220 = vmatmul.mubr.msk.f32.vlgmr.msra.gmra.mrb[76].mxu1 %vm515_vm0, %v8207_v36 }
0x1d03   :  { %v8210_v9 = vpop.f32.mrb[62].mxu0  ;;  %8637 = vmatpush3.bf16.msra.mxu1 %v8627_v53 }
0x1d04   :  { %v6458_v11 = vpop.f32.mrb[63].mxu0  ;;  %8636 = vmatprep.subr.bf16.mxu1 %v8631_v7 }
0x1d05   :  { %8222 = vmatprep.mubr.msk.f32.mxu1 %vm515_vm0, %v6458_v11 }
0x1d06   :  { %8223 = vmatmul.mubr.msk.f32.gmra.mrb[78].mxu1 %vm515_vm0, %v8210_v9 }
0x1d07   :  { %8638 = vmatpush3.bf16.msra.mxu1 %v8631_v7 }
0x1dd5   :  { %v8221_v50 = vpop.f32.mrb[76].mxu1 }
0x1dd6   :  { %v6551_v26 = vadd.f32 1e-05, %v8221_v50  ;;  %v6545_v40 = vpop.f32.mrb[77].mxu1 }
0x1dd7   :  { %v6546_v60 = vadd.f32 1e-05, %v6545_v40 }
0x1dd8   :  { %9006 = vrsqrt.f32 %v6551_v26 }
0x1dd9   :  { %9008 = vrsqrt.f32 %v6546_v60  ;;  %v8224_v57 = vpop.f32.mrb[78].mxu1 }
0x1dda   :  { %v6561_v63 = vadd.f32 1e-05, %v8224_v57  ;;  %v6555_v3 = vpop.f32.mrb[79].mxu1 }
0x1ddb   :  { %v6556_v28 = vadd.f32 1e-05, %v6555_v3 }
0x1ddc   :  { %9010 = vrsqrt.f32 %v6561_v63 }
0x1ddd   :  { %9012 = vrsqrt.f32 %v6556_v28 }
0x1de2   :  { %v9007_v4 = vpop.eup %9006 }
0x1de3   :  { %v9009_v5 = vpop.eup %9008  ;;  %v6569_v10 = vmul.f32 %v9007_v4, %v6375_v39 }
0x1de4   :  { %v6568_v6 = vmul.f32 %v9009_v5, %v6374_v45 }
0x1de5   :  { %v6579_v23 = vmul.f32 %v7106_v22, %v6569_v10 }
0x1de6   :  { %v9011_v17 = vpop.eup %9010  ;;  %v6578_v12 = vmul.f32 %v7106_v22, %v6568_v6 }
0x1de7   :  { %v9013_v30 = vpop.eup %9012  ;;  %v11219_v34 = vadd.f32 %v7107_v24, %v6579_v23  ;;  %v6571_v15 = vmul.f32 %v9011_v17, %v6377_v14 }
0x1de8   :  { %v6570_v2 = vmul.f32 %v9013_v30, %v6376_v13  ;;  %v11221_v16 = vadd.f32 %v7107_v24, %v6578_v12 }
0x1de9   :  { %v6597_v44 = vand.u32 2147483647, %v11219_v34  ;;  %v6581_v27 = vmul.f32 %v7106_v22, %v6571_v15  ;;  %v6593_v56 = vmax.f32 %v11219_v34, 0.0 }
0x1dea   :  { %v6580_v43 = vmul.f32 %v7106_v22, %v6570_v2  ;;  %v6596_v8 = vand.u32 2147483647, %v11221_v16  ;;  %v6592_v63 = vmax.f32 %v11221_v16, 0.0 }
0x1deb   :  { %v6601_v32 = vsub.f32 0.0, %v6597_v44  ;;  %v11225_v48 = vadd.f32 %v7107_v24, %v6581_v27 }
0x1dec   :  { %v6600_v55 = vsub.f32 0.0, %v6596_v8  ;;  %v11227_v47 = vadd.f32 %v7107_v24, %v6580_v43 }
0x1ded   :  { %v6606_v29 = vmul.f32 1.442695, %v6601_v32  ;;  %v6599_v38 = vand.u32 2147483647, %v11225_v48  ;;  %v6595_v10 = vmax.f32 %v11225_v48, 0.0 }
0x1dee   :  { %v6604_v61 = vmul.f32 1.442695, %v6600_v55  ;;  %v6598_v31 = vand.u32 2147483647, %v11227_v47  ;;  %v6594_v15 = vmax.f32 %v11227_v47, 0.0 }
0x1def   :  { %9014 = vpow2.f32 %v6606_v29  ;;  %v6603_v39 = vsub.f32 0.0, %v6599_v38 }
0x1df0   :  { %9016 = vpow2.f32 %v6604_v61  ;;  %v6602_v19 = vsub.f32 0.0, %v6598_v31 }
0x1df1   :  { %v6610_v45 = vmul.f32 1.442695, %v6603_v39 }
0x1df2   :  { %v6608_v37 = vmul.f32 1.442695, %v6602_v19 }
0x1df3   :  { %9018 = vpow2.f32 %v6610_v45 }
0x1df4   :  { %9020 = vpow2.f32 %v6608_v37 }
0x1df9   :  { %v9015_v54 = vpop.eup %9014 }
0x1dfa   :  { %v9017_v20 = vpop.eup %9016  ;;  %v6621_v14 = vadd.f32 1.0, %v9015_v54  ;;  %v6624_v21 = vmul.f32 -0.5, %v9015_v54  ;;  %v6627_v52 = vand.u32 2147483647, %v9015_v54 }
0x1dfb   :  { %v6612_v42 = vadd.f32 1.0, %v9017_v20  ;;  %v6615_v51 = vmul.f32 -0.5, %v9017_v20  ;;  %v6618_v11 = vand.u32 2147483647, %v9017_v20 }
0x1dfc   :  { %9022 = vlog2.f32 %v6621_v14  ;;  %v6625_v62 = vadd.f32 1.0, %v6624_v21  ;;  %vm6628_vm3 = vcmp.lt.f32.partialorder %v6627_v52, 0.0004427343 }
0x1dfd   :  { %v9019_v13 = vpop.eup %9018  ;;  %9024 = vlog2.f32 %v6612_v42  ;;  %v6616_v46 = vadd.f32 1.0, %v6615_v51  ;;  %vm6619_vm4 = vcmp.lt.f32.partialorder %v6618_v11, 0.0004427343 }
0x1dfe   :  { %v9021_v58 = vpop.eup %9020  ;;  %v6639_v59 = vadd.f32 1.0, %v9019_v13  ;;  %v6642_v36 = vmul.f32 -0.5, %v9019_v13  ;;  %v6626_v33 = vmul.f32 %v9015_v54, %v6625_v62  ;;  %v6645_v50 = vand.u32 2147483647, %v9019_v13 }
0x1dff   :  { %v6630_v0 = vadd.f32 1.0, %v9021_v58  ;;  %v6633_v9 = vmul.f32 -0.5, %v9021_v58  ;;  %v6617_v40 = vmul.f32 %v9017_v20, %v6616_v46  ;;  %v6636_v3 = vand.u32 2147483647, %v9021_v58 }
0x1e00   :  { %9026 = vlog2.f32 %v6639_v59  ;;  %v6643_v7 = vadd.f32 1.0, %v6642_v36  ;;  %vm6646_vm5 = vcmp.lt.f32.partialorder %v6645_v50, 0.0004427343 }
0x1e01   :  { %9028 = vlog2.f32 %v6630_v0  ;;  %v6634_v60 = vadd.f32 1.0, %v6633_v9  ;;  %vm6637_vm6 = vcmp.lt.f32.partialorder %v6636_v3, 0.0004427343 }
0x1e02   :  { %v6644_v6 = vmul.f32 %v9019_v13, %v6643_v7 }
0x1e03   :  { %v6635_v12 = vmul.f32 %v9021_v58, %v6634_v60 }
0x1e06   :  { %v9023_v18 = vpop.eup %9022 }
0x1e07   :  { %v9025_v41 = vpop.eup %9024  ;;  %v6623_v53 = vmul.f32 0.6931472, %v9023_v18 }
0x1e08   :  { %v6614_v26 = vmul.f32 0.6931472, %v9025_v41 }
0x1e09   :  { %v6629_v57 = vsel %vm6628_vm3, %v6626_v33, %v6623_v53 }
0x1e0a   :  { %v9027_v28 = vpop.eup %9026  ;;  %v6649_v4 = vadd.f32 %v6629_v57, %v6593_v56  ;;  %v6620_v22 = vsel %vm6619_vm4, %v6617_v40, %v6614_v26 }
0x1e0b   :  { %v9029_v5 = vpop.eup %9028  ;;  %v6641_v24 = vmul.f32 0.6931472, %v9027_v28  ;;  %v6648_v23 = vadd.f32 %v6620_v22, %v6592_v63 }
0x1e0c   :  { %9030 = vtanh.f32 %v6649_v4  ;;  %v6632_v17 = vmul.f32 0.6931472, %v9029_v5 }
0x1e0d   :  { %v6647_v30 = vsel %vm6646_vm5, %v6644_v6, %v6641_v24  ;;  %9032 = vtanh.f32 %v6648_v23 }
0x1e0e   :  { %v6651_v2 = vadd.f32 %v6647_v30, %v6595_v10  ;;  %v6638_v44 = vsel %vm6637_vm6, %v6635_v12, %v6632_v17 }
0x1e0f   :  { %v6650_v27 = vadd.f32 %v6638_v44, %v6594_v15 }
0x1e10   :  { %9034 = vtanh.f32 %v6651_v2 }
0x1e11   :  { %9036 = vtanh.f32 %v6650_v27 }
0x1e16   :  { %v9031_v43 = vpop.eup %9030 }
0x1e17   :  { %v9033_v8 = vpop.eup %9032  ;;  %v6657_v32 = vmul.f32 %v9031_v43, %v11219_v34 }
0x1e18   :  { %v6656_v55 = vmul.f32 %v9033_v8, %v11221_v16 }
0x1e19   :  { %v6661_v31 = vadd.f32 %v6657_v32, %v10956_v35 }
0x1e1a   :  { %v9035_v29 = vpop.eup %9034  ;;  %v6660_v38 = vadd.f32 %v6656_v55, %v10953_v49  ;;  %v7108_v49 = vld [vmem:[#allocation40] ss:$0 sm:$0xff] }
0x1e1b   :  { %v9037_v61 = vpop.eup %9036  ;;  %v6659_v39 = vmul.f32 %v9035_v29, %v11225_v48 }
0x1e1c   :  { %8233 = vmatprep.mubr.msk.f32.mxu0 %vm515_vm0, %v6660_v38  ;;  %v6658_v19 = vmul.f32 %v9037_v61, %v11227_v47 }
0x1e1d   :  { %8234 = vmatmul.mubr.msk.f32.vlgmr.msra.gmra.mrb[64].mxu0 %vm515_vm0, %v6661_v31  ;;  %v6663_v16 = vadd.f32 %v6659_v39, %v10967_v25 }
0x1e1e   :  { %v6662_v34 = vadd.f32 %v6658_v19, %v10971_v1 }
0x1e20   :  { %8236 = vmatprep.mubr.msk.f32.mxu1 %vm515_vm0, %v6662_v34 }
0x1e21   :  { %8237 = vmatmul.mubr.msk.f32.vlgmr.msra.gmra.mrb[80].mxu1 %vm515_vm0, %v6663_v16 }
0x1ef0   :  { %v8235_v35 = vpop.f32.mrb[64].mxu0 }
0x1ef1   :  { %v6759_v45 = vadd.f32 %v8235_v35, %v7108_v49  ;;  %v6753_v48 = vpop.f32.mrb[65].mxu0 }
0x1ef2   :  { %v6754_v37 = vadd.f32 %v7108_v49, %v6753_v48 }
0x1ef3   :  { %6773 = vst.msk [vmem:[%s9967_s30 + $0x8] sm:$0xff] %vm1023_vm2, %v6759_v45 }
0x1ef4   :  { %6772 = vst.msk [vmem:[%s9967_s30] sm:$0xff] %vm1023_vm2, %v6754_v37  ;;  %v8238_v47 = vpop.f32.mrb[80].mxu1 }
0x1ef5   :  { %v6769_v54 = vadd.f32 %v8238_v47, %v7108_v49  ;;  %v6763_v20 = vpop.f32.mrb[81].mxu1 }
0x1ef6   :  { %v6764_v1 = vadd.f32 %v7108_v49, %v6763_v20 }
0x1ef7   :  { %6775 = vst.msk [vmem:[%s9967_s30 + $0x18] sm:$0xff] %vm1023_vm2, %v6769_v54 }
0x1ef8   :  { %6774 = vst.msk [vmem:[%s9967_s30 + $0x10] sm:$0xff] %vm1023_vm2, %v6764_v1 }
0x1ef9   :  { %6780 = vsyncpa [#allocation3], 1 }
0x1efa   :  { %6781 = vsyncpa [#allocation5], 1 }
0x1efb   :  { %6782 = vsyncpa [#allocation8], 1 }
0x1efc   :  { %6783 = vsyncpa [#allocation11], 1 }
0x1efd   :  { %6784 = vsyncpa [#allocation14], 1 }
0x1efe   :  { %6785 = vsyncpa [#allocation17], 1 }
0x1eff   :  { %6786 = vsyncpa [#allocation20], 1 }
0x1f00   :  { %6787 = vsyncpa [#allocation23], 1 }
0x1f01   :  { %6788 = vsyncpa [#allocation26], 1 }
0x1f02   :  { %6789 = vsyncpa [#allocation29], 1 }
0x1f03   :  { %6790 = vsyncpa [#allocation32], 1 }
0x1f04   :  { %6791 = vsyncpa [#allocation35], 1 }
0x1f05   :  { %6792 = vsyncpa [#allocation38], 1 }
0x1f06   :  { %6793 = vsyncpa [#allocation41], 1 }

</bundles_post_ra>
